<compile_context>
chip_gen: v6e
topology: v6e:2x2x1
jax: 0.10.0
libtpu: 0.0.40
codegen_flags: <defaults>
</compile_context>

<pallas_src>
import jax
import jax.numpy as jnp
from jax.experimental import pallas as pl
from jax.experimental.pallas import tpu as pltpu

H = 256  # the PyTorch module hardcodes self.hidden_size = 256


# ----------------------------------------------------------------------------- kernel
def attn_decoder_kernel(
    di_ref,                                   # SMEM scalar-prefetch: (1,) int32
    enc_ref, dh_ref, h0_ref, c0_ref,          # activations (h0/c0 blocked per dir)
    wa_enc_ref, wa_hid_ref, ba_ref,           # attn Linear(4H -> 1), split, f32
    wcT_ref, bc_ref,                          # attn_combine: wcT bf16 (4H, H), bc f32
    wih_ref, whh_ref, bl_ref,                 # per-direction LSTM weights (bf16 / f32 bias)
    out_ref, hn_ref, cn_ref,                  # outputs (per-direction blocks)
    x_scr,                                    # VMEM scratch (b, H) f32, persists over grid
):
    d = pl.program_id(0)                      # 0: forward direction, 1: reverse
    b, t, two_h = enc_ref.shape
    h = two_h // 2

    # ---- attention + attn_combine: compute once, keep in scratch ----------------
    @pl.when(d == 0)
    def _():
        enc = enc_ref[...]                                            # (b, t, 2H)
        dh = dh_ref[...]                                              # (b, 2H), PyTorch
        # view(-1, 2H) quirk: (dir, batch) interleave is intentional.
        part_enc = jnp.sum(enc * wa_enc_ref[...][None, :, :], axis=-1)   # (b, t)
        part_hid = jnp.sum(dh * wa_hid_ref[...], axis=-1, keepdims=True)  # (b, 1)
        logits = part_enc + part_hid + ba_ref[...]                       # (b, t)

        # softmax over time (dim=1 in the PyTorch code)
        m = jnp.max(logits, axis=1, keepdims=True)
        e = jnp.exp(logits - m)
        aw = e / jnp.sum(e, axis=1, keepdims=True)                       # (b, t)

        # attn_applied = bmm(enc^T, attn_weights).squeeze(2)
        attn_applied = jnp.sum(enc * aw[:, :, None], axis=1)             # (b, 2H)

        # encoder_outputs[:, di, :] via dynamic slice on the VMEM ref
        di = di_ref[0]
        x_di = enc_ref[:, pl.ds(di, 1), :][:, 0, :]                      # (b, 2H)

        # attn_combine(cat(x_di, attn_applied)) + relu  (bf16 MXU operands, f32 acc)
        comb = (
            jnp.dot(x_di.astype(jnp.bfloat16), wcT_ref[:two_h, :],
                    preferred_element_type=jnp.float32)
            + jnp.dot(attn_applied.astype(jnp.bfloat16), wcT_ref[two_h:, :],
                      preferred_element_type=jnp.float32)
            + bc_ref[...]                                                # (1, H)
        )
        x_scr[...] = jnp.maximum(comb, 0.0)                              # (b, H)

    # ---- single-step LSTM, direction d ------------------------------------------
    x = x_scr[...]                                                       # (b, H) f32
    wih = wih_ref[0]                                                     # (H, 4H) bf16
    whh = whh_ref[0]                                                     # (H, 4H) bf16
    bsum = bl_ref[0]                                                     # (1, 4H) f32
    h0d = h0_ref[0]                                                      # (b, H) f32
    c0d = c0_ref[0]                                                      # (b, H) f32

    gates = (
        jnp.dot(x.astype(jnp.bfloat16), wih, preferred_element_type=jnp.float32)
        + jnp.dot(h0d.astype(jnp.bfloat16), whh, preferred_element_type=jnp.float32)
        + bsum
    )                                                                    # (b, 4H) f32
    ig = jax.nn.sigmoid(gates[:, 0:h])
    fg = jax.nn.sigmoid(gates[:, h:2 * h])
    gg = jnp.tanh(gates[:, 2 * h:3 * h])
    og = jax.nn.sigmoid(gates[:, 3 * h:4 * h])
    c_new = fg * c0d + ig * gg
    h_new = og * jnp.tanh(c_new)

    hn_ref[0] = h_new
    cn_ref[0] = c_new
    out_ref[...] = h_new[:, None, :]        # lane-aligned slice d*H of (b, 1, 2H)


# ----------------------------------------------------------------------------- wrapper
def attn_decoder_forward(params, hidden, encoder_outputs, di):
    """Pallas version of AttnDecoderRNN.forward(hidden, encoder_outputs, di)."""
    h0, c0 = hidden
    b, t, two_h = encoder_outputs.shape
    assert two_h == 2 * H

    # glue: same flattening as hidden[0].view(-1, 2*hidden_size) in PyTorch
    dh = h0.reshape(-1, 2 * H)
    di_arr = jnp.asarray([di], dtype=jnp.int32)

    inputs = (
        encoder_outputs, dh, h0, c0,
        params["wa_enc"], params["wa_hid"], params["ba"],
        params["wcT"], params["bc"],
        params["wihT"], params["whhT"], params["blstm"],
    )

    def full(shape):
        n = len(shape)
        return pl.BlockSpec(shape, lambda d, di_ref, n=n: (0,) * n)

    def per_dir(shape):
        n = len(shape)
        return pl.BlockSpec((1,) + tuple(shape[1:]),
                            lambda d, di_ref, n=n: (d,) + (0,) * (n - 1))

    in_specs = [
        full(encoder_outputs.shape),    # enc: same block across both steps -> resident
        full(dh.shape),
        per_dir(h0.shape),
        per_dir(c0.shape),
        full(params["wa_enc"].shape),
        full(params["wa_hid"].shape),
        full(params["ba"].shape),
        full(params["wcT"].shape),
        full(params["bc"].shape),
        per_dir(params["wihT"].shape),  # per-direction weights -> double-buffered DMA
        per_dir(params["whhT"].shape),
        per_dir(params["blstm"].shape),
    ]
    out_specs = [
        pl.BlockSpec((b, 1, H), lambda d, di_ref: (0, 0, d)),   # out[:, 0, d*H:(d+1)*H]
        pl.BlockSpec((1, b, H), lambda d, di_ref: (d, 0, 0)),   # h_n[d]
        pl.BlockSpec((1, b, H), lambda d, di_ref: (d, 0, 0)),   # c_n[d]
    ]

    grid_spec = pltpu.PrefetchScalarGridSpec(
        num_scalar_prefetch=1,
        grid=(2,),                      # direction axis; dir 1 reads scratch from dir 0
        in_specs=in_specs,
        out_specs=out_specs,
        scratch_shapes=[pltpu.VMEM((b, H), jnp.float32)],
    )

    out, h_n, c_n = pl.pallas_call(
        attn_decoder_kernel,
        out_shape=(
            jax.ShapeDtypeStruct((b, 1, 2 * H), jnp.float32),
            jax.ShapeDtypeStruct((2, b, H), jnp.float32),
            jax.ShapeDtypeStruct((2, b, H), jnp.float32),
        ),
        grid_spec=grid_spec,
        compiler_params=pltpu.CompilerParams(
            # "arbitrary": step 1 depends on the VMEM scratch written at step 0.
            dimension_semantics=("arbitrary",),
            vmem_limit_bytes=16 << 20,
        ),
    )(di_arr, *inputs)
    return out, (h_n, c_n)


# ----------------------------------------------------------------------------- params
def init_params(key):
    """Deterministic init, PyTorch-style U(-1/sqrt(fan_in), 1/sqrt(fan_in))."""
    ks = jax.random.split(key, 12)

    def u(k, shape, fan_in):
        bound = 1.0 / (fan_in ** 0.5)
        return jax.random.uniform(k, shape, jnp.float32, -bound, bound)

    attn_w = u(ks[0], (1, 4 * H), 4 * H)          # Linear(4H, 1).weight
    attn_b = u(ks[1], (1,), 4 * H)
    comb_w = u(ks[2], (H, 4 * H), 4 * H)          # Linear(4H, H).weight
    comb_b = u(ks[3], (H,), 4 * H)
    wih = [u(ks[4 + d], (4 * H, H), H) for d in range(2)]   # LSTM weight_ih (per dir)
    whh = [u(ks[6 + d], (4 * H, H), H) for d in range(2)]   # LSTM weight_hh
    bih = [u(ks[8 + d], (4 * H,), H) for d in range(2)]
    bhh = [u(ks[10 + d], (4 * H,), H) for d in range(2)]
    # self.W / self.v are zero-initialized and never used in forward(): skipped.

    torch_params = dict(attn_w=attn_w, attn_b=attn_b, comb_w=comb_w, comb_b=comb_b,
                        wih=wih, whh=whh, bih=bih, bhh=bhh)

    kernel_params = dict(
        wa_enc=attn_w[:, : 2 * H],                                  # (1, 2H) f32
        wa_hid=attn_w[:, 2 * H:],                                   # (1, 2H) f32
        ba=attn_b.reshape(1, 1),                                    # (1, 1)  f32
        wcT=comb_w.T.astype(jnp.bfloat16),                          # (4H, H) bf16
        bc=comb_b.reshape(1, H),                                    # (1, H)  f32
        wihT=jnp.stack([w.T for w in wih]).astype(jnp.bfloat16),    # (2, H, 4H) bf16
        whhT=jnp.stack([w.T for w in whh]).astype(jnp.bfloat16),    # (2, H, 4H) bf16
        blstm=jnp.stack([(bih[d] + bhh[d]).reshape(1, 4 * H)        # (2, 1, 4H) f32
                         for d in range(2)]),
    )
    return torch_params, kernel_params


# ----------------------------------------------------------------------------- pure-JAX reference
def reference_forward(tp, hidden, enc, di):
    h0, c0 = hidden
    b, t, _ = enc.shape
    dh = h0.reshape(-1, 2 * H)
    hr = jnp.repeat(dh[:, None, :], t, axis=1)
    logits = jnp.concatenate([enc, hr], axis=2) @ tp["attn_w"].T + tp["attn_b"]
    aw = jax.nn.softmax(logits, axis=1)                                   # (b, t, 1)
    attn_applied = jnp.matmul(jnp.transpose(enc, (0, 2, 1)), aw)[..., 0]  # (b, 2H)
    out = jnp.concatenate([enc[:, di, :], attn_applied], axis=1)
    x = jax.nn.relu(out @ tp["comb_w"].T + tp["comb_b"])                  # (b, H)

    hs, cs = [], []
    for d in range(2):
        gates = x @ tp["wih"][d].T + tp["bih"][d] + h0[d] @ tp["whh"][d].T + tp["bhh"][d]
        i, f, g, o = jnp.split(gates, 4, axis=1)
        i, f, g, o = jax.nn.sigmoid(i), jax.nn.sigmoid(f), jnp.tanh(g), jax.nn.sigmoid(o)
        c_new = f * c0[d] + i * g
        h_new = o * jnp.tanh(c_new)
        hs.append(h_new)
        cs.append(c_new)
    out_seq = jnp.concatenate(hs, axis=-1)[:, None, :]
    return out_seq, (jnp.stack(hs), jnp.stack(cs))


# ----------------------------------------------------------------------------- main
if __name__ == "__main__":
    key = jax.random.PRNGKey(0)
    kp, ke, kh, kc = jax.random.split(key, 4)

    torch_params, kernel_params = init_params(kp)

    B, T, DI = 2, 8, 3
    encoder_outputs = jax.random.normal(ke, (B, T, 2 * H), jnp.float32) * 0.5
    h0 = jax.random.normal(kh, (2, B, H), jnp.float32) * 0.5
    c0 = jax.random.normal(kc, (2, B, H), jnp.float32) * 0.5
    hidden = (h0, c0)

    out, (h_n, c_n) = attn_decoder_forward(kernel_params, hidden, encoder_outputs, DI)
    jax.block_until_ready((out, h_n, c_n))

    ref_out, (ref_h, ref_c) = reference_forward(torch_params, hidden, encoder_outputs, DI)
    # bf16 MXU operands vs f32 reference -> bf16-appropriate tolerances
    ok = (
        jnp.allclose(out, ref_out, rtol=2e-2, atol=2e-2)
        and jnp.allclose(h_n, ref_h, rtol=2e-2, atol=2e-2)
        and jnp.allclose(c_n, ref_c, rtol=2e-2, atol=2e-2)
    )
    if not bool(ok):
        raise AssertionError("Pallas kernel output mismatch vs pure-JAX reference")
    print("KERNEL_OK")
</pallas_src>

<mosaic_0001>
module attributes {stable_mosaic.version = 11 : i64} {
  func.func @attn_decoder_kernel(%arg0: i32, %arg1: memref<1xi32, #tpu.memory_space<smem>>, %arg2: memref<2x8x512xf32, #tpu.memory_space<vmem>>, %arg3: memref<2x512xf32, #tpu.memory_space<vmem>>, %arg4: memref<1x2x256xf32, #tpu.memory_space<vmem>>, %arg5: memref<1x2x256xf32, #tpu.memory_space<vmem>>, %arg6: memref<1x512xf32, #tpu.memory_space<vmem>>, %arg7: memref<1x512xf32, #tpu.memory_space<vmem>>, %arg8: memref<1x1xf32, #tpu.memory_space<vmem>>, %arg9: memref<1024x256xbf16, #tpu.memory_space<vmem>>, %arg10: memref<1x256xf32, #tpu.memory_space<vmem>>, %arg11: memref<1x256x1024xbf16, #tpu.memory_space<vmem>>, %arg12: memref<1x256x1024xbf16, #tpu.memory_space<vmem>>, %arg13: memref<1x1x1024xf32, #tpu.memory_space<vmem>>, %arg14: memref<2x1x256xf32, #tpu.memory_space<vmem>>, %arg15: memref<1x2x256xf32, #tpu.memory_space<vmem>>, %arg16: memref<1x2x256xf32, #tpu.memory_space<vmem>>, %arg17: memref<2x256xf32, #tpu.memory_space<vmem>>) attributes {dimension_semantics = [#tpu.dimension_semantics<arbitrary>], iteration_bounds = array<i64: 2>, scalar_prefetch = 1 : i64, scratch_operands = 1 : i64, tpu.core_type = #tpu.core_type<tc>, window_params = [{pipeline_mode = #tpu.pipeline_mode<synchronous>, transform_indices = @transform_0, window_bounds = array<i64: 2, 8, 512>}, {pipeline_mode = #tpu.pipeline_mode<synchronous>, transform_indices = @transform_1, window_bounds = array<i64: 2, 512>}, {transform_indices = @transform_2, window_bounds = array<i64: 1, 2, 256>}, {transform_indices = @transform_3, window_bounds = array<i64: 1, 2, 256>}, {pipeline_mode = #tpu.pipeline_mode<synchronous>, transform_indices = @transform_4, window_bounds = array<i64: 1, 512>}, {pipeline_mode = #tpu.pipeline_mode<synchronous>, transform_indices = @transform_5, window_bounds = array<i64: 1, 512>}, {pipeline_mode = #tpu.pipeline_mode<synchronous>, transform_indices = @transform_6, window_bounds = array<i64: 1, 1>}, {pipeline_mode = #tpu.pipeline_mode<synchronous>, transform_indices = @transform_7, window_bounds = array<i64: 1024, 256>}, {pipeline_mode = #tpu.pipeline_mode<synchronous>, transform_indices = @transform_8, window_bounds = array<i64: 1, 256>}, {transform_indices = @transform_9, window_bounds = array<i64: 1, 256, 1024>}, {transform_indices = @transform_10, window_bounds = array<i64: 1, 256, 1024>}, {transform_indices = @transform_11, window_bounds = array<i64: 1, 1, 1024>}, {transform_indices = @transform_12, window_bounds = array<i64: 2, 1, 256>}, {transform_indices = @transform_13, window_bounds = array<i64: 1, 2, 256>}, {transform_indices = @transform_14, window_bounds = array<i64: 1, 2, 256>}]} {
    %c0_i32 = arith.constant 0 : i32
    %0 = arith.cmpi eq, %arg0, %c0_i32 : i32
    %1 = arith.extui %0 : i1 to i32
    %c0_i32_0 = arith.constant 0 : i32
    %2 = arith.cmpi ne, %1, %c0_i32_0 : i32
    scf.if %2 {
      %c0_30 = arith.constant 0 : index
      %c0_31 = arith.constant 0 : index
      %c0_32 = arith.constant 0 : index
      %54 = vector.load %arg2[%c0_30, %c0_31, %c0_32] : memref<2x8x512xf32, #tpu.memory_space<vmem>>, vector<2x8x512xf32>
      %c0_33 = arith.constant 0 : index
      %c0_34 = arith.constant 0 : index
      %55 = vector.load %arg3[%c0_33, %c0_34] : memref<2x512xf32, #tpu.memory_space<vmem>>, vector<2x512xf32>
      %c0_35 = arith.constant 0 : index
      %c0_36 = arith.constant 0 : index
      %56 = vector.load %arg6[%c0_35, %c0_36] : memref<1x512xf32, #tpu.memory_space<vmem>>, vector<1x512xf32>
      %57 = vector.shape_cast %56 : vector<1x512xf32> to vector<1x1x512xf32>
      %58 = vector.broadcast %57 : vector<1x1x512xf32> to vector<2x8x512xf32>
      %59 = arith.mulf %54, %58 : vector<2x8x512xf32>
      %cst_37 = arith.constant dense<0.000000e+00> : vector<2x8xf32>
      %60 = vector.multi_reduction <add>, %59, %cst_37 [2] : vector<2x8x512xf32> to vector<2x8xf32>
      %c0_38 = arith.constant 0 : index
      %c0_39 = arith.constant 0 : index
      %61 = vector.load %arg7[%c0_38, %c0_39] : memref<1x512xf32, #tpu.memory_space<vmem>>, vector<1x512xf32>
      %62 = vector.broadcast %61 : vector<1x512xf32> to vector<2x512xf32>
      %63 = arith.mulf %55, %62 : vector<2x512xf32>
      %cst_40 = arith.constant dense<0.000000e+00> : vector<2xf32>
      %64 = vector.multi_reduction <add>, %63, %cst_40 [1] : vector<2x512xf32> to vector<2xf32>
      %65 = vector.shape_cast %64 : vector<2xf32> to vector<2x1xf32>
      %66 = vector.broadcast %65 : vector<2x1xf32> to vector<2x8xf32>
      %67 = arith.addf %60, %66 : vector<2x8xf32>
      %c0_41 = arith.constant 0 : index
      %c0_42 = arith.constant 0 : index
      %68 = vector.load %arg8[%c0_41, %c0_42] : memref<1x1xf32, #tpu.memory_space<vmem>>, vector<1x1xf32>
      %69 = vector.broadcast %68 : vector<1x1xf32> to vector<2x8xf32>
      %70 = arith.addf %67, %69 : vector<2x8xf32>
      %cst_43 = arith.constant dense<0xFF800000> : vector<2xf32>
      %71 = vector.multi_reduction <maximumf>, %70, %cst_43 [1] : vector<2x8xf32> to vector<2xf32>
      %72 = vector.shape_cast %71 : vector<2xf32> to vector<2x1xf32>
      %73 = vector.broadcast %72 : vector<2x1xf32> to vector<2x8xf32>
      %74 = arith.subf %70, %73 : vector<2x8xf32>
      %75 = math.exp %74 : vector<2x8xf32>
      %cst_44 = arith.constant dense<0.000000e+00> : vector<2xf32>
      %76 = vector.multi_reduction <add>, %75, %cst_44 [1] : vector<2x8xf32> to vector<2xf32>
      %77 = vector.shape_cast %76 : vector<2xf32> to vector<2x1xf32>
      %78 = vector.broadcast %77 : vector<2x1xf32> to vector<2x8xf32>
      %79 = arith.divf %75, %78 : vector<2x8xf32>
      %80 = vector.shape_cast %79 : vector<2x8xf32> to vector<2x8x1xf32>
      %81 = vector.broadcast %80 : vector<2x8x1xf32> to vector<2x8x512xf32>
      %82 = arith.mulf %54, %81 : vector<2x8x512xf32>
      %cst_45 = arith.constant dense<0.000000e+00> : vector<2x512xf32>
      %83 = vector.multi_reduction <add>, %82, %cst_45 [1] : vector<2x8x512xf32> to vector<2x512xf32>
      %c0_46 = arith.constant 0 : index
      %84 = memref.load %arg1[%c0_46] : memref<1xi32, #tpu.memory_space<smem>>
      %c0_47 = arith.constant 0 : index
      %85 = arith.index_cast %84 : i32 to index
      %c0_48 = arith.constant 0 : index
      %86 = vector.load %arg2[%c0_47, %85, %c0_48] : memref<2x8x512xf32, #tpu.memory_space<vmem>>, vector<2x1x512xf32>
      %87 = vector.shape_cast %86 : vector<2x1x512xf32> to vector<2x512xf32>
      %88 = arith.truncf %87 : vector<2x512xf32> to vector<2x512xbf16>
      %c0_49 = arith.constant 0 : index
      %c0_50 = arith.constant 0 : index
      %89 = vector.load %arg9[%c0_49, %c0_50] : memref<1024x256xbf16, #tpu.memory_space<vmem>>, vector<512x256xbf16>
      %cst_51 = arith.constant dense<0.000000e+00> : vector<2x256xf32>
      %90 = tpu.matmul %88, %89, %cst_51 {dimension_numbers = #tpu.dot_dimension_numbers<[1], [0], [0], [1], [0, 0, 1, 1], [], []>} : vector<2x512xbf16>, vector<512x256xbf16>, vector<2x256xf32> -> vector<2x256xf32>
      %91 = arith.truncf %83 : vector<2x512xf32> to vector<2x512xbf16>
      %c512 = arith.constant 512 : index
      %c0_52 = arith.constant 0 : index
      %92 = vector.load %arg9[%c512, %c0_52] : memref<1024x256xbf16, #tpu.memory_space<vmem>>, vector<512x256xbf16>
      %cst_53 = arith.constant dense<0.000000e+00> : vector<2x256xf32>
      %93 = tpu.matmul %91, %92, %cst_53 {dimension_numbers = #tpu.dot_dimension_numbers<[1], [0], [0], [1], [0, 0, 1, 1], [], []>} : vector<2x512xbf16>, vector<512x256xbf16>, vector<2x256xf32> -> vector<2x256xf32>
      %94 = arith.addf %90, %93 : vector<2x256xf32>
      %c0_54 = arith.constant 0 : index
      %c0_55 = arith.constant 0 : index
      %95 = vector.load %arg10[%c0_54, %c0_55] : memref<1x256xf32, #tpu.memory_space<vmem>>, vector<1x256xf32>
      %96 = vector.broadcast %95 : vector<1x256xf32> to vector<2x256xf32>
      %97 = arith.addf %94, %96 : vector<2x256xf32>
      %cst_56 = arith.constant 0.000000e+00 : f32
      %98 = vector.broadcast %cst_56 : f32 to vector<2x256xf32>
      %99 = arith.maximumf %97, %98 : vector<2x256xf32>
      %c0_57 = arith.constant 0 : index
      %c0_58 = arith.constant 0 : index
      %100 = vector.load %arg17[%c0_57, %c0_58] : memref<2x256xf32, #tpu.memory_space<vmem>>, vector<2x256xf32>
      tpu.vector_store %arg17[%c0_57, %c0_58], %99 {strides = array<i32>} : memref<2x256xf32, #tpu.memory_space<vmem>>, vector<2x256xf32>,
    } else {
    }
    %c0 = arith.constant 0 : index
    %c0_1 = arith.constant 0 : index
    %3 = vector.load %arg17[%c0, %c0_1] : memref<2x256xf32, #tpu.memory_space<vmem>>, vector<2x256xf32>
    %c0_2 = arith.constant 0 : index
    %c0_3 = arith.constant 0 : index
    %c0_4 = arith.constant 0 : index
    %4 = vector.load %arg11[%c0_2, %c0_3, %c0_4] : memref<1x256x1024xbf16, #tpu.memory_space<vmem>>, vector<1x256x1024xbf16>
    %5 = vector.shape_cast %4 : vector<1x256x1024xbf16> to vector<256x1024xbf16>
    %c0_5 = arith.constant 0 : index
    %c0_6 = arith.constant 0 : index
    %c0_7 = arith.constant 0 : index
    %6 = vector.load %arg12[%c0_5, %c0_6, %c0_7] : memref<1x256x1024xbf16, #tpu.memory_space<vmem>>, vector<1x256x1024xbf16>
    %7 = vector.shape_cast %6 : vector<1x256x1024xbf16> to vector<256x1024xbf16>
    %c0_8 = arith.constant 0 : index
    %c0_9 = arith.constant 0 : index
    %c0_10 = arith.constant 0 : index
    %8 = vector.load %arg13[%c0_8, %c0_9, %c0_10] : memref<1x1x1024xf32, #tpu.memory_space<vmem>>, vector<1x1x1024xf32>
    %9 = vector.shape_cast %8 : vector<1x1x1024xf32> to vector<1x1024xf32>
    %c0_11 = arith.constant 0 : index
    %c0_12 = arith.constant 0 : index
    %c0_13 = arith.constant 0 : index
    %10 = vector.load %arg4[%c0_11, %c0_12, %c0_13] : memref<1x2x256xf32, #tpu.memory_space<vmem>>, vector<1x2x256xf32>
    %11 = vector.shape_cast %10 : vector<1x2x256xf32> to vector<2x256xf32>
    %c0_14 = arith.constant 0 : index
    %c0_15 = arith.constant 0 : index
    %c0_16 = arith.constant 0 : index
    %12 = vector.load %arg5[%c0_14, %c0_15, %c0_16] : memref<1x2x256xf32, #tpu.memory_space<vmem>>, vector<1x2x256xf32>
    %13 = vector.shape_cast %12 : vector<1x2x256xf32> to vector<2x256xf32>
    %14 = arith.truncf %3 : vector<2x256xf32> to vector<2x256xbf16>
    %cst = arith.constant dense<0.000000e+00> : vector<2x1024xf32>
    %15 = tpu.matmul %14, %5, %cst {dimension_numbers = #tpu.dot_dimension_numbers<[1], [0], [0], [1], [0, 0, 1, 1], [], []>} : vector<2x256xbf16>, vector<256x1024xbf16>, vector<2x1024xf32> -> vector<2x1024xf32>
    %16 = arith.truncf %11 : vector<2x256xf32> to vector<2x256xbf16>
    %cst_17 = arith.constant dense<0.000000e+00> : vector<2x1024xf32>
    %17 = tpu.matmul %16, %7, %cst_17 {dimension_numbers = #tpu.dot_dimension_numbers<[1], [0], [0], [1], [0, 0, 1, 1], [], []>} : vector<2x256xbf16>, vector<256x1024xbf16>, vector<2x1024xf32> -> vector<2x1024xf32>
    %18 = arith.addf %15, %17 : vector<2x1024xf32>
    %19 = vector.broadcast %9 : vector<1x1024xf32> to vector<2x1024xf32>
    %20 = arith.addf %18, %19 : vector<2x1024xf32>
    %21 = vector.extract_strided_slice %20 {offsets = [0, 0], sizes = [2, 256], strides = [1, 1]} : vector<2x1024xf32> to vector<2x256xf32>
    %22 = arith.negf %21 : vector<2x256xf32>
    %23 = math.exp %22 : vector<2x256xf32>
    %cst_18 = arith.constant 1.000000e+00 : f32
    %24 = vector.broadcast %cst_18 : f32 to vector<2x256xf32>
    %25 = arith.addf %24, %23 : vector<2x256xf32>
    %26 = arith.divf %24, %25 : vector<2x256xf32>
    %27 = vector.extract_strided_slice %20 {offsets = [0, 256], sizes = [2, 256], strides = [1, 1]} : vector<2x1024xf32> to vector<2x256xf32>
    %28 = arith.negf %27 : vector<2x256xf32>
    %29 = math.exp %28 : vector<2x256xf32>
    %cst_19 = arith.constant 1.000000e+00 : f32
    %30 = vector.broadcast %cst_19 : f32 to vector<2x256xf32>
    %31 = arith.addf %30, %29 : vector<2x256xf32>
    %32 = arith.divf %30, %31 : vector<2x256xf32>
    %33 = vector.extract_strided_slice %20 {offsets = [0, 512], sizes = [2, 256], strides = [1, 1]} : vector<2x1024xf32> to vector<2x256xf32>
    %34 = math.tanh %33 : vector<2x256xf32>
    %35 = vector.extract_strided_slice %20 {offsets = [0, 768], sizes = [2, 256], strides = [1, 1]} : vector<2x1024xf32> to vector<2x256xf32>
    %36 = arith.negf %35 : vector<2x256xf32>
    %37 = math.exp %36 : vector<2x256xf32>
    %cst_20 = arith.constant 1.000000e+00 : f32
    %38 = vector.broadcast %cst_20 : f32 to vector<2x256xf32>
    %39 = arith.addf %38, %37 : vector<2x256xf32>
    %40 = arith.divf %38, %39 : vector<2x256xf32>
    %41 = arith.mulf %32, %13 : vector<2x256xf32>
    %42 = arith.mulf %26, %34 : vector<2x256xf32>
    %43 = arith.addf %41, %42 : vector<2x256xf32>
    %44 = math.tanh %43 : vector<2x256xf32>
    %45 = arith.mulf %40, %44 : vector<2x256xf32>
    %c0_21 = arith.constant 0 : index
    %c0_22 = arith.constant 0 : index
    %c0_23 = arith.constant 0 : index
    %46 = vector.load %arg15[%c0_21, %c0_22, %c0_23] : memref<1x2x256xf32, #tpu.memory_space<vmem>>, vector<1x2x256xf32>
    %47 = vector.shape_cast %46 : vector<1x2x256xf32> to vector<2x256xf32>
    %48 = vector.shape_cast %45 : vector<2x256xf32> to vector<1x2x256xf32>
    tpu.vector_store %arg15[%c0_21, %c0_22, %c0_23], %48 {strides = array<i32>} : memref<1x2x256xf32, #tpu.memory_space<vmem>>, vector<1x2x256xf32>,
    %c0_24 = arith.constant 0 : index
    %c0_25 = arith.constant 0 : index
    %c0_26 = arith.constant 0 : index
    %49 = vector.load %arg16[%c0_24, %c0_25, %c0_26] : memref<1x2x256xf32, #tpu.memory_space<vmem>>, vector<1x2x256xf32>
    %50 = vector.shape_cast %49 : vector<1x2x256xf32> to vector<2x256xf32>
    %51 = vector.shape_cast %43 : vector<2x256xf32> to vector<1x2x256xf32>
    tpu.vector_store %arg16[%c0_24, %c0_25, %c0_26], %51 {strides = array<i32>} : memref<1x2x256xf32, #tpu.memory_space<vmem>>, vector<1x2x256xf32>,
    %52 = vector.shape_cast %45 : vector<2x256xf32> to vector<2x1x256xf32>
    %c0_27 = arith.constant 0 : index
    %c0_28 = arith.constant 0 : index
    %c0_29 = arith.constant 0 : index
    %53 = vector.load %arg14[%c0_27, %c0_28, %c0_29] : memref<2x1x256xf32, #tpu.memory_space<vmem>>, vector<2x1x256xf32>
    tpu.vector_store %arg14[%c0_27, %c0_28, %c0_29], %52 {strides = array<i32>} : memref<2x1x256xf32, #tpu.memory_space<vmem>>, vector<2x1x256xf32>,
    return
  }
  func.func @transform_0(%arg0: i32, %arg1: memref<1xi32, #tpu.memory_space<smem>>) -> (i32, i32, i32) {
    %c0_i32 = arith.constant 0 : i32
    %c0_i32_0 = arith.constant 0 : i32
    %c0_i32_1 = arith.constant 0 : i32
    %c0_i32_2 = arith.constant 0 : i32
    return %c0_i32, %c0_i32_0, %c0_i32_1 : i32, i32, i32
  }
  func.func @transform_1(%arg0: i32, %arg1: memref<1xi32, #tpu.memory_space<smem>>) -> (i32, i32) {
    %c0_i32 = arith.constant 0 : i32
    %c0_i32_0 = arith.constant 0 : i32
    %c0_i32_1 = arith.constant 0 : i32
    return %c0_i32, %c0_i32_0 : i32, i32
  }
  func.func @transform_2(%arg0: i32, %arg1: memref<1xi32, #tpu.memory_space<smem>>) -> (i32, i32, i32) {
    %c0_i32 = arith.constant 0 : i32
    %c0_i32_0 = arith.constant 0 : i32
    %c0_i32_1 = arith.constant 0 : i32
    return %arg0, %c0_i32, %c0_i32_0 : i32, i32, i32
  }
  func.func @transform_3(%arg0: i32, %arg1: memref<1xi32, #tpu.memory_space<smem>>) -> (i32, i32, i32) {
    %c0_i32 = arith.constant 0 : i32
    %c0_i32_0 = arith.constant 0 : i32
    %c0_i32_1 = arith.constant 0 : i32
    return %arg0, %c0_i32, %c0_i32_0 : i32, i32, i32
  }
  func.func @transform_4(%arg0: i32, %arg1: memref<1xi32, #tpu.memory_space<smem>>) -> (i32, i32) {
    %c0_i32 = arith.constant 0 : i32
    %c0_i32_0 = arith.constant 0 : i32
    %c0_i32_1 = arith.constant 0 : i32
    return %c0_i32, %c0_i32_0 : i32, i32
  }
  func.func @transform_5(%arg0: i32, %arg1: memref<1xi32, #tpu.memory_space<smem>>) -> (i32, i32) {
    %c0_i32 = arith.constant 0 : i32
    %c0_i32_0 = arith.constant 0 : i32
    %c0_i32_1 = arith.constant 0 : i32
    return %c0_i32, %c0_i32_0 : i32, i32
  }
  func.func @transform_6(%arg0: i32, %arg1: memref<1xi32, #tpu.memory_space<smem>>) -> (i32, i32) {
    %c0_i32 = arith.constant 0 : i32
    %c0_i32_0 = arith.constant 0 : i32
    %c0_i32_1 = arith.constant 0 : i32
    return %c0_i32, %c0_i32_0 : i32, i32
  }
  func.func @transform_7(%arg0: i32, %arg1: memref<1xi32, #tpu.memory_space<smem>>) -> (i32, i32) {
    %c0_i32 = arith.constant 0 : i32
    %c0_i32_0 = arith.constant 0 : i32
    %c0_i32_1 = arith.constant 0 : i32
    return %c0_i32, %c0_i32_0 : i32, i32
  }
  func.func @transform_8(%arg0: i32, %arg1: memref<1xi32, #tpu.memory_space<smem>>) -> (i32, i32) {
    %c0_i32 = arith.constant 0 : i32
    %c0_i32_0 = arith.constant 0 : i32
    %c0_i32_1 = arith.constant 0 : i32
    return %c0_i32, %c0_i32_0 : i32, i32
  }
  func.func @transform_9(%arg0: i32, %arg1: memref<1xi32, #tpu.memory_space<smem>>) -> (i32, i32, i32) {
    %c0_i32 = arith.constant 0 : i32
    %c0_i32_0 = arith.constant 0 : i32
    %c0_i32_1 = arith.constant 0 : i32
    return %arg0, %c0_i32, %c0_i32_0 : i32, i32, i32
  }
  func.func @transform_10(%arg0: i32, %arg1: memref<1xi32, #tpu.memory_space<smem>>) -> (i32, i32, i32) {
    %c0_i32 = arith.constant 0 : i32
    %c0_i32_0 = arith.constant 0 : i32
    %c0_i32_1 = arith.constant 0 : i32
    return %arg0, %c0_i32, %c0_i32_0 : i32, i32, i32
  }
  func.func @transform_11(%arg0: i32, %arg1: memref<1xi32, #tpu.memory_space<smem>>) -> (i32, i32, i32) {
    %c0_i32 = arith.constant 0 : i32
    %c0_i32_0 = arith.constant 0 : i32
    %c0_i32_1 = arith.constant 0 : i32
    return %arg0, %c0_i32, %c0_i32_0 : i32, i32, i32
  }
  func.func @transform_12(%arg0: i32, %arg1: memref<1xi32, #tpu.memory_space<smem>>) -> (i32, i32, i32) {
    %c0_i32 = arith.constant 0 : i32
    %c0_i32_0 = arith.constant 0 : i32
    %c0_i32_1 = arith.constant 0 : i32
    return %c0_i32, %c0_i32_0, %arg0 : i32, i32, i32
  }
  func.func @transform_13(%arg0: i32, %arg1: memref<1xi32, #tpu.memory_space<smem>>) -> (i32, i32, i32) {
    %c0_i32 = arith.constant 0 : i32
    %c0_i32_0 = arith.constant 0 : i32
    %c0_i32_1 = arith.constant 0 : i32
    return %arg0, %c0_i32, %c0_i32_0 : i32, i32, i32
  }
  func.func @transform_14(%arg0: i32, %arg1: memref<1xi32, #tpu.memory_space<smem>>) -> (i32, i32, i32) {
    %c0_i32 = arith.constant 0 : i32
    %c0_i32_0 = arith.constant 0 : i32
    %c0_i32_1 = arith.constant 0 : i32
    return %arg0, %c0_i32, %c0_i32_0 : i32, i32, i32
  }
}

</mosaic_0001>

<bundles_post_ra>
// kernel: tpu_custom_call.1
= control target key start
LH: loop header
LB: loop body
LE: loop exit
PB: predicated region body
PF: predicated region fallthrough
CT: control target
= control target key end

     0   :  { %s6576_s0 = inlined_call_operand.<no memory space> [shape: s32[1], index: 0, kind: input, shape index: {}]   ;;  %s6577_s1 = inlined_call_operand.hbm [shape: f32[2,8,512], index: 1, kind: input, shape index: {}]   ;;  %s6578_s2 = inlined_call_operand.hbm [shape: f32[2,512], index: 2, kind: input, shape index: {}]   ;;  %s6579_s3 = inlined_call_operand.hbm [shape: f32[2,2,256], index: 3, kind: input, shape index: {}]   ;;  %s6580_s4 = inlined_call_operand.hbm [shape: f32[2,2,256], index: 4, kind: input, shape index: {}]   ;;  %s6581_s5 = inlined_call_operand.vmem [shape: f32[1,512], index: 5, kind: input, shape index: {}]   ;;  %s6582_s6 = inlined_call_operand.hbm [shape: f32[1,512], index: 6, kind: input, shape index: {}]   ;;  %s6583_s7 = inlined_call_operand.<no memory space> [shape: f32[1,1], index: 7, kind: input, shape index: {}]   ;;  %s6584_s8 = inlined_call_operand.hbm [shape: bf16[1024,256], index: 8, kind: input, shape index: {}]   ;;  %s6585_s9 = inlined_call_operand.vmem [shape: f32[1,256], index: 9, kind: input, shape index: {}]   ;;  %s6586_s10 = inlined_call_operand.hbm [shape: bf16[2,256,1024], index: 10, kind: input, shape index: {}]   ;;  %s6587_s11 = inlined_call_operand.hbm [shape: bf16[2,256,1024], index: 11, kind: input, shape index: {}]   ;;  %s6588_s12 = inlined_call_operand.vmem [shape: f32[2,1,1024], index: 12, kind: input, shape index: {}]   ;;  %s6589_s13 = inlined_call_operand.hbm [shape: f32[2,1,512], index: 13, kind: output, shape index: {0}]   ;;  %s6590_s14 = inlined_call_operand.hbm [shape: f32[2,2,256], index: 14, kind: output, shape index: {1}]   ;;  %s6591_s15 = inlined_call_operand.hbm [shape: f32[2,2,256], index: 15, kind: output, shape index: {2}]  }
   0x1   :  { %6616 = sst [smem:[#allocation36_spill]] %s6577_s1  ;;  %v22_v0 = vstv %s6583_s7 }
   0x2   :  { %6617 = sst [smem:[#allocation37_spill]] %s6579_s3  ;;  %23 = vst [vmem:[#allocation5] sm:$0x1] %v22_v0 }
   0x3   :  { %6618 = sst [smem:[#allocation38_spill]] %s6581_s5 }
   0x4   :  { %6619 = sst [smem:[#allocation39_spill]] %s6585_s9 }
   0x5   :  { %6620 = sst [smem:[#allocation40_spill]] %s6589_s13 }
   0x6   :  { %6621 = sst [smem:[#allocation41_spill]] %s6590_s14 }
   0x7   :  { %6622 = sst [smem:[#allocation42_spill]] %s6591_s15 }
   0x8   :  { %21 = sst [smem:[#allocation4]] %s6576_s0 }
   0x9   :  { %24 = vsyncpa [#allocation7], 0 }
   0xa   :  { %25 = vsyncpa [#allocation10], 0 }
   0xb   :  { %26 = vsyncpa [#allocation15], 0 }
   0xc   :  { %27 = vsyncpa [#allocation8], 0 }
   0xd   :  { %29 = vsyncpa [#allocation8 + $0x1], 0 }
   0xe   :  { %30 = vsyncpa [#allocation20], 0 }
   0xf   :  { %32 = vsyncpa [#allocation20 + $0x1], 0  ;;  %s5700_s22 = smov 0   ;;  %s5702_s23 = smov 0  }
  0x10   :  { %s5704_s24 = smov 0   ;;  %s5706_s25 = smov 0  }
  0x11 LB: > { %6623 = sst [smem:[#allocation30_spill]] %s5579_s22  ;;  %s5721_s0 = sadd.s32 4294967295, %s5591_s25   ;;  %s5591_s25 = sphi %s5706_s25, %s6671_s25   ;;  %s5587_s24 = sphi %s5704_s24, %s6673_s24   ;;  %s5583_s23 = sphi %s5702_s23, %s6675_s23   ;;  %s5579_s22 = sphi %s5700_s22, %s6674_s22  }
  0x12   : > { %6624 = sst [smem:[#allocation31_spill]] %s5587_s24  ;;  %s6592_s7 = sadd.s32 4294967294, %s5591_s25  }
  0x13   : > { %p100_p0 = scmp.ne.s32.totalorder %s5583_s23, %s5579_s22  ;;  %p6606_p1 = scmp.eq.s32.totalorder %s5721_s0, 0 }
  0x14   : > { %p333_p2 = scmp.eq.s32.totalorder %s5721_s0, 1  ;;  %p339_p3 = scmp.eq.s32.totalorder %s6592_s7, 1 }
  0x15   : > { %p5732_p4 = por %p6606_p1, %p100_p0  ;;  %p4427_p5 = scmp.ge.s32.totalorder %s5591_s25, 1 }
  0x16   : > { %p5737_p6 = por %p339_p3, %p100_p0  ;;  %p398_p7 = scmp.lt.s32.totalorder %s5591_s25, 3 }
  0x17   : > { %s6625_s26 = scalar_select %p5732_p4, 1, 0 }
  0x18   : > { %s6626_s27 = scalar_select %p5737_p6, 1, 0 }
  0x19   : > { %p5743_p9 = pnand %p4427_p5, %p398_p7  ;;  %s5593_s29 = smov [#allocation6]  }
  0x1a   : > { %6627 = sst [smem:[#allocation32_spill]] %s6626_s27  ;;  %s410_s30 = sshll.u32 %s5593_s29, 4  ;;  %s411_s30 = int_to_ptr.vmem [resolvable:$true] %s410_s30 }
  0x1b   : > { %s6628_s28 = scalar_select %p5743_p9, 1, 0 }
  0x1c   : > { %p4909_p10 = pneg %p5743_p9  ;;  %s5757_s17 = sadd.s32 1, %s5591_s25  }
  0x1d   : > { %6630 = sst [smem:[#allocation33_spill]] %s5757_s17  ;;  %s87_s18 = sadd.s32 1, %s5587_s24 }
  0x1e   : > { %p5752_p12 = pnand %p4909_p10, %p6606_p1  ;;  %s84_s19 = ssub.s32 %s5591_s25, %s5757_s17 }
  0x1f   : > { %s5246_s20 = scalar_lea.vmem %s411_s30, 1024  ;;  %p5254_p7 = scmp.lt.s32.totalorder %s411_s30, %s411_s30 }
  0x20   : > { %s6629_s16 = scalar_select %p5752_p12, 1, 0 }
  0x21   : > { %p6607_p13 = pneg %p5752_p12  ;;  %p5247_p0 = scmp.ne.s32.totalorder %s411_s30, %s5246_s20 }
  0x22   : > { %p5255_p10 = scmp.lt.s32.totalorder %s5246_s20, %s5246_s20 }
  0x23   : > { %p5249_p3 = pnand %p5247_p0, %p6607_p13 }
  0x24   : > { %p5256_p11 = por %p5255_p10, %p5254_p7 }
  0x25   : > { %p5250_p5 = pneg %p5249_p3 }
  0x27   : > { %p5257_p8 = pnand %p5256_p11, %p5250_p5 }
  0x29   : > { %5260 = shalt.err (!%p5257_p8)
}
  0x2a   : > { %s6600_s21 = smov 512   ;;  %s6602_s29 = smov 32  }
  0x2b   : > { %s6631_s1 = sld [smem:[#allocation36_spill]]  ;;  %p85_p8 = scmp.eq.s32.totalorder %s84_s19, 0 }
  0x2c   : > { %p94_p11 = scmp.ne.s32.totalorder %s5587_s24, %s5583_s23  ;;  %p95_p0 = scmp.eq.s32.totalorder %s5591_s25, 0 }
  0x2d   : > { %p4949_p3 = scmp.lt.s32.totalorder %s5591_s25, 2  ;;  %s468_s22 = sand.u32 1, %s5591_s25  }
  0x2e   : > { %s5780_s17 = scalar_select %p85_p8, %s5587_s24, %s87_s18  }
  0x2f   : > { %p96_p5 = por %p95_p0, %p94_p11  ;;  %p5784_p7 = por %p333_p2, %p94_p11 }
  0x30   : > { %6632 = sst [smem:[#allocation34_spill]] %s5780_s17  ;;  %s470_s13 = sand.u32 1, %s5587_s24  }
  0x31   : > { %4912 = dma.hbm_to_vmem [thread:$0]  (!%p5752_p12), %s6631_s1, 1024, %s411_s30, [#allocation7], %s6600_s21, %s6600_s21, %s6602_s29  }
  0x32   : > { %s6633_s27 = scalar_select %p5784_p7, 1, 0 }
  0x33   : > { %s5790_s15 = sshll.u32 %s470_s13, 2  ;;  %s6604_s14 = sshll.u32 %s5591_s25, 6 }
  0x34   : > { %6634 = sst [smem:[#allocation35_spill]] %s6633_s27  ;;  %s472_s18 = scalar_lea.vmem [#allocation11], %s5790_s15 }
  0x35   : > { %s6635_s3 = sld [smem:[#allocation37_spill]]  ;;  %s480_s20 = sshll.u32 %s472_s18, 4  ;;  %s5801_s20 = int_to_ptr.vmem [resolvable:$true] %s480_s20 }
  0x36   : > { %p5803_p2 = pnand %p4949_p3, %p96_p5  ;;  %s5807_s29 = sshll.u32 %s470_s13, 10 }
  0x37   : > { %s5809_s1 = scalar_lea.sflag [#allocation7], %s468_s22 }
  0x38   : > { %p5815_p8 = pneg %p5803_p2 }
  0x3b   : > { %s5798_s19 = scalar_lea.hbm %s6635_s3, %s6604_s14  ;;  %s5266_s14 = scalar_lea.hbm %s6635_s3, 128 }
  0x3c   : > { %s5261_s17 = scalar_lea.hbm %s5798_s19, 64  ;;  %p5267_p3 = scmp.lt.s32.totalorder %s5798_s19, %s6635_s3 }
  0x3d   : > { %p5262_p10 = scmp.ne.s32.totalorder %s5798_s19, %s5261_s17  ;;  %p5268_p5 = scmp.lt.s32.totalorder %s5266_s14, %s5261_s17 }
  0x3f   : > { %p5264_p11 = pnand %p5815_p8, %p5262_p10  ;;  %p5269_p1 = por %p5268_p5, %p5267_p3 }
  0x41   : > { %p5265_p0 = pneg %p5264_p11 }
  0x43   : > { %p5270_p13 = pnand %p5269_p1, %p5265_p0 }
  0x45   : > { %5273 = shalt.err (!%p5270_p13)
}
  0x46   : > { %s5274_s22 = scalar_lea.vmem %s5801_s20, 64  ;;  %s5596_s27 = smov [#allocation11]  }
  0x47   : > { %p5275_p6 = scmp.ne.s32.totalorder %s5801_s20, %s5274_s22  ;;  %s5279_s30 = sshll.u32 %s5596_s27, 4  ;;  %s5280_s30 = int_to_ptr.vmem [resolvable:$false] %s5279_s30 }
  0x48   : > { %s5281_s18 = scalar_lea.vmem %s5280_s30, 128  ;;  %p5282_p7 = scmp.lt.s32.totalorder %s5801_s20, %s5280_s30 }
  0x49   : > { %p5277_p10 = pnand %p5275_p6, %p5815_p8  ;;  %p5283_p4 = scmp.lt.s32.totalorder %s5281_s18, %s5274_s22 }
  0x4b   : > { %p5278_p11 = pneg %p5277_p10  ;;  %p5284_p9 = por %p5283_p4, %p5282_p7 }
  0x4d   : > { %p5285_p12 = pnand %p5284_p9, %p5278_p11 }
  0x4f   : > { %5288 = shalt.err (!%p5285_p12)
}
  0x50   : > { %4925 = dma.hbm_to_vmem [thread:$0]  (!%p5803_p2), %s5798_s19, 64, %s5801_s20, %s5809_s1  }
  0x51   : > { %s510_s14 = scalar_lea.vmem [#allocation16], %s5807_s29  ;;  %s531_s27 = scalar_lea.vmem [#allocation17], %s5807_s29 }
  0x52   : > { %s517_s24 = sshll.u32 %s510_s14, 4  ;;  %s538_s17 = sshll.u32 %s531_s27, 4  ;;  %s5839_s24 = int_to_ptr.vmem [resolvable:$true] %s517_s24  ;;  %s5842_s17 = int_to_ptr.vmem [resolvable:$true] %s538_s17 }
  0x53   : > { %s6638_s13 = sshll.u32 %s5591_s25, 6  ;;  %s491_s3 = scalar_lea.vmem [#allocation12], %s5790_s15 }
  0x54   : > { %s5849_s18 = scalar_lea.hbm %s6580_s4, %s6638_s13  ;;  %s499_s9 = sshll.u32 %s491_s3, 4  ;;  %s500_s9 = int_to_ptr.vmem [resolvable:$true] %s499_s9 }
  0x55   : > { %s5597_s19 = smov [#allocation9]   ;;  %s5289_s14 = scalar_lea.hbm %s5849_s18, 64 }
  0x56   : > { %s424_s20 = sshll.u32 %s5597_s19, 4  ;;  %p5290_p1 = scmp.ne.s32.totalorder %s5849_s18, %s5289_s14  ;;  %s425_s20 = int_to_ptr.vmem [resolvable:$true] %s424_s20 }
  0x57   : > { %s5294_s5 = scalar_lea.hbm %s6580_s4, 128  ;;  %p5295_p9 = scmp.lt.s32.totalorder %s5849_s18, %s6580_s4 }
  0x58   : > { %p5292_p4 = pnand %p5290_p1, %p5815_p8  ;;  %p5296_p12 = scmp.lt.s32.totalorder %s5294_s5, %s5289_s14 }
  0x5a   : > { %p5293_p6 = pneg %p5292_p4  ;;  %p5297_p13 = por %p5296_p12, %p5295_p9 }
  0x5c   : > { %p5298_p7 = pnand %p5297_p13, %p5293_p6 }
  0x5e   : > { %5301 = shalt.err (!%p5298_p7)
}
  0x5f   : > { %s5302_s3 = scalar_lea.vmem %s500_s9, 64  ;;  %s5598_s15 = smov [#allocation12]  }
  0x60   : > { %p5303_p0 = scmp.ne.s32.totalorder %s500_s9, %s5302_s3  ;;  %s5307_s30 = sshll.u32 %s5598_s15, 4  ;;  %s5308_s30 = int_to_ptr.vmem [resolvable:$false] %s5307_s30 }
  0x61   : > { %s5309_s19 = scalar_lea.vmem %s5308_s30, 128  ;;  %p5310_p10 = scmp.lt.s32.totalorder %s500_s9, %s5308_s30 }
  0x62   : > { %p5305_p3 = pnand %p5303_p0, %p5815_p8  ;;  %p5311_p11 = scmp.lt.s32.totalorder %s5309_s19, %s5302_s3 }
  0x64   : > { %p5306_p5 = pneg %p5305_p3  ;;  %p5312_p1 = por %p5311_p11, %p5310_p10 }
  0x66   : > { %p5313_p4 = pnand %p5312_p1, %p5306_p5 }
  0x68   : > { %5316 = shalt.err (!%p5313_p4)
}
  0x69   : > { %4928 = dma.hbm_to_vmem [thread:$0]  (!%p5803_p2), %s5849_s18, 64, %s500_s9, %s5809_s1  }
  0x6a   : > { %s4873_s5 = sshll.u32 %s5591_s25, 14  ;;  %s5328_s14 = scalar_lea.vmem %s425_s20, 128 }
  0x6b   : > { %p5329_p6 = scmp.ne.s32.totalorder %s425_s20, %s5328_s14  ;;  %p6639_p9 = scmp.ne.s32.totalorder %s6629_s16, 0 }
  0x6c   : > { %p5336_p0 = scmp.lt.s32.totalorder %s425_s20, %s425_s20  ;;  %p5337_p3 = scmp.lt.s32.totalorder %s5328_s14, %s5328_s14 }
  0x6d   : > { %p6640_p12 = pneg %p6639_p9 }
  0x6e   : > { %p5338_p10 = por %p5337_p3, %p5336_p0 }
  0x6f   : > { %p5331_p13 = pnand %p5329_p6, %p6640_p12 }
  0x71   : > { %p5332_p7 = pneg %p5331_p13 }
  0x73   : > { %p5339_p5 = pnand %p5338_p10, %p5332_p7 }
  0x75   : > { %5342 = shalt.err (!%p5339_p5)
}
  0x76   : > { %4915 = dma.hbm_to_vmem [thread:$0]  (!%p6639_p9), %s6578_s2, 128, %s425_s20, [#allocation10]  }
  0x77   : > { %s516_s22 = scalar_lea.hbm %s6586_s10, %s4873_s5  ;;  %s5348_s30 = scalar_lea.hbm %s6586_s10, 32768 }
  0x78   : > { %s5343_s13 = scalar_lea.hbm %s516_s22, 16384  ;;  %p5349_p6 = scmp.lt.s32.totalorder %s516_s22, %s6586_s10 }
  0x79   : > { %p5344_p11 = scmp.ne.s32.totalorder %s516_s22, %s5343_s13  ;;  %p5350_p12 = scmp.lt.s32.totalorder %s5348_s30, %s5343_s13 }
  0x7b   : > { %p5346_p1 = pnand %p5344_p11, %p5815_p8  ;;  %p5351_p13 = por %p5350_p12, %p5349_p6 }
  0x7d   : > { %p5347_p4 = pneg %p5346_p1 }
  0x7f   : > { %p5352_p7 = pnand %p5351_p13, %p5347_p4 }
  0x81   : > { %5355 = shalt.err (!%p5352_p7)
}
  0x82   : > { %s5356_s20 = scalar_lea.vmem %s5839_s24, 16384  ;;  %s5599_s29 = smov [#allocation16]  }
  0x83   : > { %p5357_p0 = scmp.ne.s32.totalorder %s5839_s24, %s5356_s20  ;;  %s5361_s27 = sshll.u32 %s5599_s29, 4  ;;  %s5362_s27 = int_to_ptr.vmem [resolvable:$false] %s5361_s27 }
  0x84   : > { %s5363_s9 = scalar_lea.vmem %s5362_s27, 32768  ;;  %p5364_p5 = scmp.lt.s32.totalorder %s5839_s24, %s5362_s27 }
  0x85   : > { %p5359_p3 = pnand %p5357_p0, %p5815_p8  ;;  %p5365_p11 = scmp.lt.s32.totalorder %s5363_s9, %s5356_s20 }
  0x87   : > { %p5360_p10 = pneg %p5359_p3  ;;  %p5366_p1 = por %p5365_p11, %p5364_p5 }
  0x89   : > { %p5367_p9 = pnand %p5366_p1, %p5360_p10 }
  0x8b   : > { %5370 = shalt.err (!%p5367_p9)
}
  0x8c   : > { %s6641_s18 = smov 32   ;;  %s6642_s13 = smov 512  }
  0x8d   : > { %4931 = dma.hbm_to_vmem [thread:$0]  (!%p5803_p2), %s516_s22, 16384, %s5839_s24, %s5809_s1, %s6642_s13, %s6642_s13, %s6641_s18  }
  0x8e   : > { %s5600_s3 = smov [#allocation13]   ;;  %s5601_s30 = smov [#allocation14]  }
  0x8f   : > { %s438_s15 = sshll.u32 %s5600_s3, 4  ;;  %s451_s19 = sshll.u32 %s5601_s30, 4  ;;  %s439_s15 = int_to_ptr.vmem [resolvable:$true] %s438_s15  ;;  %s452_s19 = int_to_ptr.vmem [resolvable:$true] %s451_s19 }
  0x90   : > { %s5382_s14 = scalar_lea.vmem %s439_s15, 64  ;;  %p6643_p6 = scmp.ne.s32.totalorder %s6629_s16, 0 }
  0x91   : > { %p5383_p4 = scmp.ne.s32.totalorder %s439_s15, %s5382_s14  ;;  %p5390_p7 = scmp.lt.s32.totalorder %s439_s15, %s439_s15 }
  0x92   : > { %p6644_p12 = pneg %p6643_p6  ;;  %p5391_p0 = scmp.lt.s32.totalorder %s5382_s14, %s5382_s14 }
  0x94   : > { %p5385_p13 = pnand %p5383_p4, %p6644_p12  ;;  %p5392_p3 = por %p5391_p0, %p5390_p7 }
  0x96   : > { %p5386_p9 = pneg %p5385_p13 }
  0x98   : > { %p5393_p10 = pnand %p5392_p3, %p5386_p9 }
  0x9a   : > { %5396 = shalt.err (!%p5393_p10)
}
  0x9b   : > { %4918 = dma.hbm_to_vmem [thread:$0]  (!%p6643_p6), %s6582_s6, 64, %s439_s15, [#allocation10]  }
  0x9c   : > { %s5916_s27 = scalar_lea.hbm %s6587_s11, %s4873_s5  ;;  %s5408_s9 = scalar_lea.vmem %s452_s19, 16384 }
  0x9d   : > { %p5409_p5 = scmp.ne.s32.totalorder %s452_s19, %s5408_s9  ;;  %p6645_p11 = pmov %p6644_p12 }
  0x9e   : > { %p5416_p12 = scmp.lt.s32.totalorder %s452_s19, %s452_s19  ;;  %p5417_p13 = scmp.lt.s32.totalorder %s5408_s9, %s5408_s9 }
  0x9f   : > { %p5411_p1 = pnand %p5409_p5, %p6645_p11 }
  0xa0   : > { %p5418_p9 = por %p5417_p13, %p5416_p12 }
  0xa1   : > { %p5412_p4 = pneg %p5411_p1 }
  0xa3   : > { %p5419_p7 = pnand %p5418_p9, %p5412_p4 }
  0xa5   : > { %5422 = shalt.err (!%p5419_p7)
}
  0xa6   : > { %s5602_s3 = smov 128   ;;  %s5603_s15 = smov 8  }
  0xa7   : > { %4921 = dma.hbm_to_vmem [thread:$0]  (!%p6643_p6), %s6584_s8, 16384, %s452_s19, [#allocation15], %s5602_s3, %s5602_s3, %s5603_s15  }
  0xa8   : > { %s5423_s14 = scalar_lea.hbm %s5916_s27, 16384  ;;  %s5428_s22 = scalar_lea.hbm %s6587_s11, 32768 }
  0xa9   : > { %p5424_p0 = scmp.ne.s32.totalorder %s5916_s27, %s5423_s14  ;;  %p5429_p5 = scmp.lt.s32.totalorder %s5916_s27, %s6587_s11 }
  0xaa   : > { %p5430_p11 = scmp.lt.s32.totalorder %s5428_s22, %s5423_s14 }
  0xab   : > { %p5426_p3 = pnand %p5424_p0, %p5815_p8 }
  0xac   : > { %p5431_p1 = por %p5430_p11, %p5429_p5 }
  0xad   : > { %p5427_p10 = pneg %p5426_p3 }
  0xaf   : > { %p5432_p4 = pnand %p5431_p1, %p5427_p10 }
  0xb1   : > { %5435 = shalt.err (!%p5432_p4)
}
  0xb2   : > { %s5436_s16 = scalar_lea.vmem %s5842_s17, 16384  ;;  %s5604_s19 = smov [#allocation17]  }
  0xb3   : > { %p5437_p6 = scmp.ne.s32.totalorder %s5842_s17, %s5436_s16  ;;  %s5441_s3 = sshll.u32 %s5604_s19, 4  ;;  %s5442_s3 = int_to_ptr.vmem [resolvable:$false] %s5441_s3 }
  0xb4   : > { %s5443_s15 = scalar_lea.vmem %s5442_s3, 32768  ;;  %p5444_p9 = scmp.lt.s32.totalorder %s5842_s17, %s5442_s3 }
  0xb5   : > { %p5439_p12 = pnand %p5437_p6, %p5815_p8  ;;  %p5445_p7 = scmp.lt.s32.totalorder %s5443_s15, %s5436_s16 }
  0xb7   : > { %p5440_p13 = pneg %p5439_p12  ;;  %p5446_p0 = por %p5445_p7, %p5444_p9 }
  0xb9   : > { %p5447_p3 = pnand %p5446_p0, %p5440_p13 }
  0xbb   : > { %5450 = shalt.err (!%p5447_p3)
}
  0xbc   : > { %4934 = dma.hbm_to_vmem [thread:$0]  (!%p5803_p2), %s5916_s27, 16384, %s5842_s17, %s5809_s1, %s6642_s13, %s6642_s13, %s6641_s18  }
  0xbd   : > { %p6646_p8 = scmp.ne.s32.totalorder %s6628_s28, 0 }
  0xbe   : > { %p6647_p10 = scmp.eq.s32.totalorder (!%p6646_p8), %s5721_s0, 0 }
  0xbf   : > { %557 = sbr.rel (%p6646_p8) target bundleno = 1954 (0x7a2), region = 68 }
  0xc4   : > { %5546 = dma.done.wait (%p6647_p10), [#allocation7], 1024   ;;  %p6648_p5 = pmov %p6647_p10 }
  0xc6   : > { %5548 = vsyncadd (%p6648_p5), [#allocation7], 4294966272  ;;  %p6649_p11 = pmov %p6648_p5 }
  0xc7   : > { %p6650_p1 = pmov %p6648_p5 }
  0xc8   : > { %5550 = dma.done.wait (%p6649_p11), [#allocation10], 128  }
  0xc9   : > { %5552 = vsyncadd (%p6650_p1), [#allocation10], 4294967168  ;;  %s567_s1 = sand.u32 1, %s5721_s0   ;;  %s5962_s21 = sand.u32 1, %s5583_s23  }
  0xca   : > { %s5965_s28 = sshll.u32 %s5962_s21, 2  ;;  %s568_s7 = scalar_lea.sflag [#allocation7], %s567_s1 }
  0xcb   : > { %s571_s17 = scalar_lea.vmem [#allocation11], %s5965_s28  ;;  %p6651_p2 = scmp.ne.s32.totalorder %s6625_s26, 0 }
  0xcd   : > { %5554 = dma.done.wait (%p6651_p2), %s568_s7, 128  }
  0xce   : > { %5556 = vsyncadd (%p6651_p2), %s568_s7, 4294967168  ;;  %s580_s18 = scalar_lea.vmem [#allocation12], %s5965_s28  ;;  %p6652_p4 = pmov %p6650_p1 }
  0xcf   : > { %p6653_p6 = pmov %p6650_p1 }
  0xd0   : > { %5558 = dma.done.wait (%p6652_p4), [#allocation10], 64  }
  0xd1   : > { %5560 = vsyncadd (%p6653_p6), [#allocation10], 4294967232  ;;  %p6654_p12 = pmov %p6650_p1 }
  0xd2   : > { %p6655_p13 = pmov %p6650_p1 }
  0xd3   : > { %5562 = dma.done.wait (%p6654_p12), [#allocation15], 16384  }
  0xd4   : > { %5564 = vsyncadd (%p6655_p13), [#allocation15], 4294950912  ;;  %s4452_s13 = sshll.u32 %s5962_s21, 10 }
  0xd5   : > { %s5984_s27 = scalar_lea.vmem [#allocation16], %s4452_s13 }
  0xd6   : > { %5566 = dma.done.wait (%p6651_p2), %s568_s7, 32768  }
  0xd7   : > { %5568 = vsyncadd (%p6651_p2), %s568_s7, 4294934528  ;;  %p680_p9 = scmp.lt.s32.totalorder %s5721_s0, 1  ;;  %s5997_s22 = scalar_lea.vmem [#allocation17], %s4452_s13 }
  0xd8   : > { %s6000_s29 = scalar_lea.vmem [#allocation18], %s5965_s28  ;;  %s672_s9 = scalar_lea.vmem [#allocation19], %s5965_s28 }
  0xd9   : > { %s681_s5 = scalar_select %p680_p9, %s5721_s0, 1 }
  0xda   : > { %s679_s26 = scalar_lea.vmem [#allocation21], %s5965_s28  ;;  %p6656_p7 = scmp.ne.s32.totalorder %s5721_s0, 0 }
  0xdb   : > { %s4457_s30 = sshll.u32 %s681_s5, 3  ;;  %s6657_s3 = sld [smem:[#allocation38_spill]] (!%p6656_p7) }
  0xdc   : > { %s5995_s24 = scalar_lea.vmem %s6588_s12, %s4457_s30  ;;  %688 = sbr.rel (%p6656_p7) target bundleno = 1393 (0x571), region = 104 }
  0xdd   : > { %s976_s15 = sld [smem:[#allocation4]] (!%p6656_p7) }
  0xde   : > { %s6658_s19 = sld [smem:[#allocation39_spill]] (!%p6656_p7) }
  0xe1   : > { %v700_v1 = vlaneseq  ;;  %v5605_v2 = vmov 1983009808   ;;  %v5606_v5 = vmov 0   ;;  %v738_v6 = vld [vmem:[#allocation13] sm:$0xf]  ;;  %v6021_v12 = vld [vmem:[#allocation6 + $0x20] sm:$0xff] }
  0xe2   : > { %v759_v3 = vunpack.c.l.s4 %v5605_v2  ;;  %5001 = vset.pattern.permute.xlu1 %v5606_v5  ;;  %5002 = vset.pattern.permute.xlu0 %v5606_v5  ;;  %v6023_v13 = vld [vmem:[#allocation6 + $0x28] sm:$0xff]  ;;  %v6025_v14 = vld [vmem:[#allocation6 + $0x30] sm:$0xff]  ;;  %v698_v15 = vld [vmem:[%s6657_s3] sm:$0xf]  ;;  %vm797_vm0 = vcmask 1041408   ;;  %vm850_vm1 = vcmask 1041409  }
  0xe3   : > { %v6007_v4 = vshrl.u32 %v700_v1, 7  ;;  %v6035_v21 = vld [vmem:[#allocation6 + $0x38] sm:$0xff]  ;;  %v697_v28 = vld [vmem:[#allocation9] sm:$0xff]  ;;  %v6046_v35 = vld [vmem:[#allocation6 + $0x8] sm:$0xff]  ;;  %v841_v0 = vand.u32 127, %v700_v1  ;;  %vm853_vm2 = vcmask 58368  }
  0xe4   : > { %v760_v7 = vunpack.c.0.s8 %v759_v3  ;;  %v6044_v34 = vld [vmem:[#allocation6] sm:$0xff]  ;;  %v6049_v41 = vld [vmem:[#allocation6 + $0x10] sm:$0xff]  ;;  %v6054_v50 = vld [vmem:[#allocation6 + $0x18] sm:$0xff]  ;;  %s977_s7 = sshra.s32 %s976_s15, 3  ;;  %s980_s13 = sand.u32 7, %s976_s15 }
  0xe5   : > { %v6010_v8 = vsub.s32 0, %v6007_v4  ;;  %v6013_v9 = vsub.s32 1, %v6007_v4  ;;  %v6016_v10 = vsub.s32 2, %v6007_v4  ;;  %v6019_v11 = vsub.s32 3, %v6007_v4  ;;  %v4459_v63 = vld [vmem:[#allocation5] ss:$0 sm:$0xff] }
  0xe6   : > { %v763_v16 = vsub.s32 %v760_v7, %v6007_v4  ;;  %v844_v2 = vsub.s32 %v841_v0, %v6007_v4  ;;  %v5032_v0 = vld [vmem:[#allocation14 + $0x330] ss:$8 sps:$4 sm:$0xff]   ;;  %s4875_s5 = sshll.u32 %s977_s7, 5 }
  0xe7   : > { %v743_v17 = vrot.slane %v738_v6, %v6010_v8  ;;  %v747_v18 = vrot.slane %v738_v6, %v6013_v9  ;;  %v751_v19 = vrot.slane %v738_v6, %v6016_v10  ;;  %v755_v20 = vrot.slane %v738_v6, %v6019_v11  ;;  %s983_s30 = sadd.s32 %s4875_s5, %s980_s13 }
  0xe8   : > { %v703_v22 = vrot.slane %v698_v15, %v6010_v8  ;;  %v707_v23 = vrot.slane %v698_v15, %v6013_v9  ;;  %v711_v24 = vrot.slane %v698_v15, %v6016_v10  ;;  %v715_v25 = vrot.slane %v698_v15, %v6019_v11  ;;  %s984_s14 = scalar_lea.vmem [#allocation6], %s983_s30 }
  0xe9   : > { %v756_v26 = vcombine.low %v743_v17, %v747_v18  ;;  %v757_v27 = vcombine.low %v751_v19, %v755_v20 }
  0xea   : > { %v724_v29 = vmul.f32 %v703_v22, %v6021_v12  ;;  %v725_v30 = vmul.f32 %v707_v23, %v6023_v13  ;;  %v726_v31 = vmul.f32 %v711_v24, %v6025_v14  ;;  %v727_v36 = vmul.f32 %v715_v25, %v6035_v21 }
  0xeb   : > { %v764_v32 = vrot.slane %v756_v26, %v763_v16  ;;  %v771_v33 = vrot.slane %v757_v27, %v763_v16  ;;  %v720_v43 = vmul.f32 %v703_v22, %v6044_v34  ;;  %v721_v44 = vmul.f32 %v707_v23, %v6046_v35 }
  0xec   : > { %v733_v37 = vadd.f32 %v725_v30, %v724_v29  ;;  %v722_v51 = vmul.f32 %v711_v24, %v6049_v41  ;;  %v723_v59 = vmul.f32 %v715_v25, %v6054_v50 }
  0xed   : > { %v772_v38 = vcombine.low %v764_v32, %v771_v33  ;;  %v728_v52 = vadd.f32 %v721_v44, %v720_v43  ;;  %v5003_v44 = vld [vmem:[#allocation14 + $0x274] ss:$8 sps:$4 sm:$0xff]  }
  0xee   : > { %v734_v39 = vadd.f32 %v733_v37, %v726_v31  ;;  %1523 = vmatprep.subr.bf16.mxu0 %v5003_v44  ;;  %v5069_v44 = vld [vmem:[#allocation14 + $0x2c4] ss:$8 sps:$4 sm:$0xff]  }
  0xef   : > { %v774_v40 = vmul.f32 %v772_v38, %v697_v28  ;;  %v729_v60 = vadd.f32 %v728_v52, %v722_v51  ;;  %v5013_v51 = vld [vmem:[#allocation14 + $0x260] ss:$8 sps:$4 sm:$0xff]  }
  0xf0   : > { %v735_v42 = vadd.f32 %v734_v39, %v727_v36  ;;  %v5014_v52 = vld [vmem:[#allocation14 + $0x360] ss:$8 sps:$4 sm:$0xff]  }
  0xf1   : > { %v776_v45 = vcombine.high %v774_v40, %v774_v40  ;;  %v783_v46 = vrot.slane %v774_v40, %v763_v16  ;;  %v730_v62 = vadd.f32 %v729_v60, %v723_v59  ;;  %v5025_v59 = vld [vmem:[#allocation14 + $0x240] ss:$8 sps:$4 sm:$0xff]  }
  0xf2   : > { %736 = vadd.xlane.f32.xlu1 %v735_v42  ;;  %v5026_v60 = vld [vmem:[#allocation14 + $0x340] ss:$8 sps:$4 sm:$0xff]  }
  0xf3   : > { %v790_v47 = vrot.slane %v776_v45, %v763_v16  ;;  %v791_v48 = vcombine.high %v783_v46, %v783_v46  ;;  %v798_v49 = vsel %vm797_vm0, %v783_v46, 0.0  ;;  %v5005_v45 = vld [vmem:[#allocation14 + $0x374] ss:$8 sps:$4 sm:$0xff]   ;;  %v5007_v46 = vld [vmem:[#allocation14 + $0x270] ss:$8 sps:$4 sm:$0xff]  }
  0xf4   : > { %1564 = vmatprep.subr.bf16.mxu1 %v5005_v45  ;;  %1524 = vmatpush1.bf16.msra.mxu0 %v5007_v46  ;;  %v5071_v45 = vld [vmem:[#allocation14 + $0x3c4] ss:$8 sps:$4 sm:$0xff]   ;;  %v5073_v46 = vld [vmem:[#allocation14 + $0x2c0] ss:$8 sps:$4 sm:$0xff]  }
  0xf5   : > { %v792_v53 = vcombine.high %v790_v47, %v790_v47  ;;  %v799_v54 = vsel %vm797_vm0, %v791_v48, 0.0  ;;  %v801_v55 = vsel %vm797_vm0, %v790_v47, 0.0  ;;  %v5008_v47 = vld [vmem:[#allocation14 + $0x370] ss:$8 sps:$4 sm:$0xff]   ;;  %v5009_v48 = vld [vmem:[#allocation14 + $0x264] ss:$8 sps:$4 sm:$0xff]  }
  0xf6   : > { %v800_v56 = vadd.f32 %v799_v54, %v798_v49  ;;  %v5011_v49 = vld [vmem:[#allocation14 + $0x364] ss:$8 sps:$4 sm:$0xff]   ;;  %1565 = vmatpush1.bf16.msra.mxu1 %v5008_v47  ;;  %1525 = vmatprep.subr.bf16.mxu0 %v5009_v48  ;;  %v5017_v54 = vld [vmem:[#allocation14 + $0x354] ss:$8 sps:$4 sm:$0xff]   ;;  %v5074_v47 = vld [vmem:[#allocation14 + $0x3c0] ss:$8 sps:$4 sm:$0xff]  }
  0xf7   : > { %v803_v57 = vsel %vm797_vm0, %v792_v53, 0.0  ;;  %1566 = vmatprep.subr.bf16.mxu1 %v5011_v49  ;;  %v5015_v53 = vld [vmem:[#allocation14 + $0x254] ss:$8 sps:$4 sm:$0xff]  }
  0xf8   : > { %v802_v58 = vadd.f32 %v801_v55, %v800_v56  ;;  %1526 = vmatpush1.bf16.msra.mxu0 %v5013_v51  ;;  %v5019_v55 = vld [vmem:[#allocation14 + $0x250] ss:$8 sps:$4 sm:$0xff]   ;;  %v5075_v49 = vld [vmem:[#allocation14 + $0x2b4] ss:$8 sps:$4 sm:$0xff]  }
  0xf9   : > { %v5020_v56 = vld [vmem:[#allocation14 + $0x350] ss:$8 sps:$4 sm:$0xff]   ;;  %1527 = vmatprep.subr.bf16.mxu0 %v5015_v53  ;;  %v5077_v51 = vld [vmem:[#allocation14 + $0x3b4] ss:$8 sps:$4 sm:$0xff]   ;;  %v5081_v53 = vld [vmem:[#allocation14 + $0x2a4] ss:$8 sps:$4 sm:$0xff]  }
  0xfa   : > { %v804_v61 = vadd.f32 %v803_v57, %v802_v58  ;;  %1567 = vmatpush1.bf16.msra.mxu1 %v5014_v52  ;;  %v5021_v57 = vld [vmem:[#allocation14 + $0x244] ss:$8 sps:$4 sm:$0xff]   ;;  %v5080_v52 = vld [vmem:[#allocation14 + $0x3b0] ss:$8 sps:$4 sm:$0xff]  }
  0xfb   : > { %1568 = vmatprep.subr.bf16.mxu1 %v5017_v54  ;;  %v5023_v58 = vld [vmem:[#allocation14 + $0x344] ss:$8 sps:$4 sm:$0xff]  }
  0xfc   : > { %805 = vadd.xlane.f32.xlu0 %v804_v61  ;;  %1528 = vmatpush1.bf16.msra.mxu0 %v5019_v55  ;;  %v5027_v61 = vld [vmem:[#allocation14 + $0x234] ss:$8 sps:$4 sm:$0xff]   ;;  %v5083_v54 = vld [vmem:[#allocation14 + $0x3a4] ss:$8 sps:$4 sm:$0xff]   ;;  %v5085_v55 = vld [vmem:[#allocation14 + $0x2a0] ss:$8 sps:$4 sm:$0xff]  }
  0xfd   : > { %1529 = vmatprep.subr.bf16.mxu0 %v5021_v57  ;;  %v5089_v57 = vld [vmem:[#allocation14 + $0x394] ss:$8 sps:$4 sm:$0xff]  }
  0xfe   : > { %1569 = vmatpush1.bf16.msra.mxu1 %v5020_v56  ;;  %v5086_v56 = vld [vmem:[#allocation14 + $0x3a0] ss:$8 sps:$4 sm:$0xff]  }
  0xff   : > { %1570 = vmatprep.subr.bf16.mxu1 %v5023_v58  ;;  %v5091_v58 = vld [vmem:[#allocation14 + $0x290] ss:$8 sps:$4 sm:$0xff]  }
 0x100   : > { %731 = vadd.xlane.f32.xlu0 %v730_v62  ;;  %v5029_v62 = vld [vmem:[#allocation14 + $0x334] ss:$8 sps:$4 sm:$0xff]   ;;  %1530 = vmatpush1.bf16.msra.mxu0 %v5025_v59  ;;  %v5092_v59 = vld [vmem:[#allocation14 + $0x390] ss:$8 sps:$4 sm:$0xff]  }
 0x101   : > { %1531 = vmatprep.subr.bf16.mxu0 %v5027_v61  ;;  %v5095_v61 = vld [vmem:[#allocation14 + $0x384] ss:$8 sps:$4 sm:$0xff]  }
 0x102   : > { %1571 = vmatpush1.bf16.msra.mxu1 %v5026_v60  ;;  %v5093_v60 = vld [vmem:[#allocation14 + $0x284] ss:$8 sps:$4 sm:$0xff]  }
 0x103   : > { %827 = vperm.xlu1 %5001, %v4459_v63   ;;  %v5031_v63 = vld [vmem:[#allocation14 + $0x230] ss:$8 sps:$4 sm:$0xff]   ;;  %1572 = vmatprep.subr.bf16.mxu1 %v5029_v62  ;;  %v5097_v62 = vld [vmem:[#allocation14 + $0x280] ss:$8 sps:$4 sm:$0xff]  }
 0x104   : > { %1532 = vmatpush1.bf16.msra.mxu0 %v5031_v63  ;;  %v5098_v63 = vld [vmem:[#allocation14 + $0x380] ss:$8 sps:$4 sm:$0xff]  }
 0x106   : > { %1573 = vmatpush1.bf16.msra.mxu1 %v5032_v0  ;;  %v5101_v0 = vld [vmem:[#allocation14 + $0x74] ss:$8 sps:$4 sm:$0xff]  }
 0x17b   : > { %v737_v3 = vpop.xlane.xlu1 %736 }
 0x17f   : > { %v828_v7 = vpop.permute.xlu1 %827 }
 0x185   : > { %v806_v5 = vpop.xlane.xlu0 %805 }
 0x186   : > { %v815_v6 = vrot.slane %v806_v5, %v6013_v9  ;;  %v811_v15 = vrot.slane %v806_v5, %v6010_v8  ;;  %v5037_v5 = vld [vmem:[#allocation14 + $0x220] ss:$8 sps:$4 sm:$0xff]  }
 0x188   : > { %v819_v16 = vadd.f32 %v815_v6, %v737_v3  ;;  %v5035_v3 = vld [vmem:[#allocation14 + $0x324] ss:$8 sps:$4 sm:$0xff]   ;;  %v5038_v6 = vld [vmem:[#allocation14 + $0x320] ss:$8 sps:$4 sm:$0xff]  }
 0x189   : > { %v732_v17 = vpop.xlane.xlu0 %731  ;;  %1574 = vmatprep.subr.bf16.mxu1 %v5035_v3  ;;  %v6081_v3 = vld [vmem:[%s984_s14 + $0x20] ss:$8 sm:$0xf] }
 0x18a   : > { %v831_v18 = vadd.f32 %v828_v7, %v819_v16  ;;  %v818_v19 = vadd.f32 %v811_v15, %v732_v17  ;;  %v5041_v15 = vld [vmem:[#allocation14 + $0x314] ss:$8 sps:$4 sm:$0xff]   ;;  %1575 = vmatpush1.bf16.msra.mxu1 %v5038_v6  ;;  %v5043_v16 = vld [vmem:[#allocation14 + $0x210] ss:$8 sps:$4 sm:$0xff]   ;;  %v1014_v6 = vrot.slane %v6081_v3, %v6013_v9 }
 0x18b   : > { %v5044_v17 = vld [vmem:[#allocation14 + $0x310] ss:$8 sps:$4 sm:$0xff]   ;;  %1576 = vmatprep.subr.bf16.mxu1 %v5041_v15 }
 0x18c   : > { %v830_v20 = vadd.f32 %v828_v7, %v818_v19  ;;  %838 = vperm.xlu1 %5001, %v831_v18   ;;  %v5039_v7 = vld [vmem:[#allocation14 + $0x214] ss:$8 sps:$4 sm:$0xff]   ;;  %v5047_v19 = vld [vmem:[#allocation14 + $0x304] ss:$8 sps:$4 sm:$0xff]  }
 0x18e   : > { %835 = vperm.xlu0 %5002, %v830_v20   ;;  %1577 = vmatpush1.bf16.msra.mxu1 %v5044_v17 }
 0x18f   : > { %1578 = vmatprep.subr.bf16.mxu1 %v5047_v19  ;;  %v6091_v19 = vld [vmem:[%s984_s14] ss:$8 sm:$0xf] }
 0x207   : > { %v839_v22 = vpop.permute.xlu1 %838 }
 0x208   : > { %v849_v1 = vrot.slane %v839_v22, %v844_v2  ;;  %v5050_v22 = vld [vmem:[#allocation14 + $0x300] ss:$8 sps:$4 sm:$0xff]  }
 0x209   : > { %v836_v23 = vpop.permute.xlu0 %835  ;;  %1579 = vmatpush1.bf16.msra.mxu1 %v5050_v22 }
 0x20a   : > { %v845_v24 = vrot.slane %v836_v23, %v844_v2  ;;  %v5051_v23 = vld [vmem:[#allocation14 + $0x2f4] ss:$8 sps:$4 sm:$0xff]  }
 0x20c   : > { %v851_v4 = vsel %vm850_vm1, %v849_v1, %v845_v24  ;;  %v5053_v1 = vld [vmem:[#allocation14 + $0x3f4] ss:$8 sps:$4 sm:$0xff]   ;;  %v5055_v24 = vld [vmem:[#allocation14 + $0x2f0] ss:$8 sps:$4 sm:$0xff]  }
 0x20d   : > { %v854_v25 = vsel %vm853_vm2, %v851_v4, -inf  ;;  %v5056_v4 = vld [vmem:[#allocation14 + $0x3f0] ss:$8 sps:$4 sm:$0xff]   ;;  %1580 = vmatprep.subr.bf16.mxu1 %v5053_v1 }
 0x20e   : > { %855 = vmax.xlane.f32.xlu1 %v854_v25  ;;  %v5057_v25 = vld [vmem:[#allocation14 + $0x2e4] ss:$8 sps:$4 sm:$0xff]   ;;  %1581 = vmatpush2.bf16.msra.mxu1 %v5056_v4  ;;  %v998_v4 = vrot.slane %v6091_v19, %v6013_v9 }
 0x297   : > { %v856_v26 = vpop.xlane.xlu1 %855 }
 0x298   : > { %v861_v27 = vrot.slane %v856_v26, %v6010_v8  ;;  %v865_v28 = vrot.slane %v856_v26, %v6013_v9  ;;  %v5059_v26 = vld [vmem:[#allocation14 + $0x3e4] ss:$8 sps:$4 sm:$0xff]  }
 0x299   : > { %1582 = vmatprep.subr.bf16.mxu1 %v5059_v26 }
 0x29a   : > { %v868_v29 = vsub.f32 %v830_v20, %v861_v27  ;;  %v869_v30 = vsub.f32 %v831_v18, %v865_v28  ;;  %v5045_v18 = vld [vmem:[#allocation14 + $0x204] ss:$8 sps:$4 sm:$0xff]   ;;  %v5049_v20 = vld [vmem:[#allocation14 + $0x200] ss:$8 sps:$4 sm:$0xff]  }
 0x29b   : > { %v5061_v27 = vld [vmem:[#allocation14 + $0x2e0] ss:$8 sps:$4 sm:$0xff]  }
 0x29c   : > { %v870_v31 = vmul.f32 1.442695, %v868_v29  ;;  %v872_v32 = vmul.f32 1.442695, %v869_v30  ;;  %v5062_v28 = vld [vmem:[#allocation14 + $0x3e0] ss:$8 sps:$4 sm:$0xff]  }
 0x29d   : > { %1583 = vmatpush2.bf16.msra.mxu1 %v5062_v28 }
 0x29e   : > { %5195 = vpow2.f32 %v870_v31 }
 0x29f   : > { %5197 = vpow2.f32 %v872_v32  ;;  %v5063_v32 = vld [vmem:[#allocation14 + $0x2d4] ss:$8 sps:$4 sm:$0xff]  }
 0x2ab   : > { %v6069_v33 = vpop.eup %5195 }
 0x2ac   : > { %877 = vperm.xlu0 %5002, %v6069_v33   ;;  %v6072_v36 = vpop.eup %5197 }
 0x2b0   : > { %880 = vperm.xlu0 %5002, %v6072_v36  }
 0x327   : > { %v878_v37 = vpop.permute.xlu0 %877 }
 0x328   : > { %v885_v39 = vrot.slane %v878_v37, %v844_v2  ;;  %v5065_v37 = vld [vmem:[#allocation14 + $0x3d4] ss:$8 sps:$4 sm:$0xff]  }
 0x329   : > { %1584 = vmatprep.subr.bf16.mxu1 %v5065_v37 }
 0x32b   : > { %v881_v38 = vpop.permute.xlu0 %880 }
 0x32c   : > { %v889_v40 = vrot.slane %v881_v38, %v844_v2  ;;  %v5033_v2 = vld [vmem:[#allocation14 + $0x224] ss:$8 sps:$4 sm:$0xff]  }
 0x32d   : > { %1533 = vmatprep.subr.bf16.mxu0 %v5033_v2  ;;  %v5104_v2 = vld [vmem:[#allocation14 + $0x174] ss:$8 sps:$4 sm:$0xff]  }
 0x32e   : > { %v890_v42 = vsel %vm850_vm1, %v889_v40, %v885_v39  ;;  %1534 = vmatpush1.bf16.msra.mxu0 %v5037_v5  ;;  %v5067_v39 = vld [vmem:[#allocation14 + $0x2d0] ss:$8 sps:$4 sm:$0xff]  }
 0x32f   : > { %v892_v43 = vsel %vm853_vm2, %v890_v42, 0.0  ;;  %1535 = vmatprep.subr.bf16.mxu0 %v5039_v7  ;;  %v5068_v40 = vld [vmem:[#allocation14 + $0x3d0] ss:$8 sps:$4 sm:$0xff]   ;;  %v1022_v7 = vrot.slane %v6081_v3, %v6019_v11 }
 0x330   : > { %893 = vadd.xlane.f32.xlu0 %v892_v43  ;;  %1585 = vmatpush2.bf16.msra.mxu1 %v5068_v40 }
 0x331   : > { %1586 = vmatprep.subr.bf16.mxu1 %v5071_v45  ;;  %v1038_v26 = vpack.c.bf16 %v1022_v7, %v1022_v7 }
 0x332   : > { %1536 = vmatpush1.bf16.msra.mxu0 %v5043_v16 }
 0x333   : > { %1537 = vmatprep.subr.bf16.mxu0 %v5045_v18 }
 0x334   : > { %1587 = vmatpush2.bf16.msra.mxu1 %v5074_v47 }
 0x335   : > { %1588 = vmatprep.subr.bf16.mxu1 %v5077_v51 }
 0x336   : > { %1538 = vmatpush1.bf16.msra.mxu0 %v5049_v20 }
 0x337   : > { %1539 = vmatprep.subr.bf16.mxu0 %v5051_v23 }
 0x338   : > { %1589 = vmatpush2.bf16.msra.mxu1 %v5080_v52 }
 0x339   : > { %1590 = vmatprep.subr.bf16.mxu1 %v5083_v54 }
 0x33a   : > { %1540 = vmatpush2.bf16.msra.mxu0 %v5055_v24 }
 0x33b   : > { %1541 = vmatprep.subr.bf16.mxu0 %v5057_v25  ;;  %v1036_v25 = vpack.c.bf16 %v1014_v6, %v1014_v6 }
 0x33c   : > { %1591 = vmatpush2.bf16.msra.mxu1 %v5086_v56 }
 0x33d   : > { %1592 = vmatprep.subr.bf16.mxu1 %v5089_v57 }
 0x33e   : > { %1542 = vmatpush2.bf16.msra.mxu0 %v5061_v27 }
 0x33f   : > { %1543 = vmatprep.subr.bf16.mxu0 %v5063_v32 }
 0x340   : > { %1593 = vmatpush2.bf16.msra.mxu1 %v5092_v59 }
 0x341   : > { %1594 = vmatprep.subr.bf16.mxu1 %v5095_v61 }
 0x342   : > { %1544 = vmatpush2.bf16.msra.mxu0 %v5067_v39 }
 0x343   : > { %1545 = vmatprep.subr.bf16.mxu0 %v5069_v44 }
 0x344   : > { %1595 = vmatpush2.bf16.msra.mxu1 %v5098_v63  ;;  %v1032_v63 = vpack.c.bf16 %v998_v4, %v998_v4 }
 0x345   : > { %1998 = vmatprep.subr.bf16.mxu1 %v5104_v2 }
 0x346   : > { %1546 = vmatpush2.bf16.msra.mxu0 %v5073_v46 }
 0x347   : > { %1547 = vmatprep.subr.bf16.mxu0 %v5075_v49 }
 0x3b9   : > { %v894_v29 = vpop.xlane.xlu0 %893 }
 0x3ba   : > { %v899_v30 = vrot.slane %v894_v29, %v6010_v8  ;;  %v903_v31 = vrot.slane %v894_v29, %v6013_v9 }
 0x3bc   : > { %5199 = vrcp.f32 %v899_v30 }
 0x3bd   : > { %5201 = vrcp.f32 %v903_v31 }
 0x3c9   : > { %v5200_v38 = vpop.eup %5199 }
 0x3ca   : > { %v907_v42 = vmul.f32 %v5200_v38, %v6069_v33  ;;  %v5202_v43 = vpop.eup %5201  ;;  %v5079_v33 = vld [vmem:[#allocation14 + $0x2b0] ss:$8 sps:$4 sm:$0xff]  }
 0x3cb   : > { %v909_v48 = vmul.f32 %v5202_v43, %v6072_v36  ;;  %1548 = vmatpush2.bf16.msra.mxu0 %v5079_v33  ;;  %v5087_v36 = vld [vmem:[#allocation14 + $0x294] ss:$8 sps:$4 sm:$0xff]  }
 0x3cc   : > { %912 = vperm.xlu1 %5001, %v907_v42   ;;  %1549 = vmatprep.subr.bf16.mxu0 %v5081_v53 }
 0x3cf   : > { %1550 = vmatpush2.bf16.msra.mxu0 %v5085_v55 }
 0x3d0   : > { %917 = vperm.xlu1 %5001, %v909_v48   ;;  %1551 = vmatprep.subr.bf16.mxu0 %v5087_v36 }
 0x3d3   : > { %1552 = vmatpush2.bf16.msra.mxu0 %v5091_v58 }
 0x3d4   : > { %1553 = vmatprep.subr.bf16.mxu0 %v5093_v60 }
 0x3d7   : > { %1554 = vmatpush2.bf16.msra.mxu0 %v5097_v62 }
 0x3d8   : > { %1957 = vmatprep.subr.bf16.mxu0 %v5101_v0  ;;  %v1618_v0 = vunpack.c.l.b16 %v1036_v25 }
 0x447   : > { %v913_v5 = vpop.permute.xlu1 %912 }
 0x448   : > { %v920_v15 = vmul.f32 %v913_v5, %v6044_v34  ;;  %v921_v16 = vmul.f32 %v913_v5, %v6046_v35  ;;  %v922_v17 = vmul.f32 %v913_v5, %v6049_v41  ;;  %v923_v18 = vmul.f32 %v913_v5, %v6054_v50 }
 0x449   : > { %v1006_v34 = vrot.slane %v6091_v19, %v6019_v11  ;;  %v1620_v5 = vunpack.c.l.b16 %v1038_v26 }
 0x44a   : > { %v928_v20 = vrot.slane %v920_v15, 4  ;;  %v934_v22 = vrot.slane %v921_v16, 4  ;;  %v940_v23 = vrot.slane %v922_v17, 4  ;;  %v946_v1 = vrot.slane %v923_v18, 4 }
 0x44b   : > { %v918_v24 = vpop.permute.xlu1 %917  ;;  %v1034_v2 = vpack.c.bf16 %v1006_v34, %v1006_v34 }
 0x44c   : > { %v929_v35 = vadd.f32 %v928_v20, %v920_v15  ;;  %v935_v27 = vadd.f32 %v934_v22, %v921_v16  ;;  %v941_v41 = vadd.f32 %v940_v23, %v922_v17  ;;  %v947_v28 = vadd.f32 %v946_v1, %v923_v18 }
 0x44d   : > { %v924_v50 = vmul.f32 %v918_v24, %v6021_v12  ;;  %v925_v29 = vmul.f32 %v918_v24, %v6023_v13  ;;  %v926_v30 = vmul.f32 %v918_v24, %v6025_v14  ;;  %v927_v31 = vmul.f32 %v918_v24, %v6035_v21 }
 0x44e   : > { %v930_v32 = vrot.slane %v929_v35, 2  ;;  %v942_v37 = vrot.slane %v941_v41, 2  ;;  %v936_v38 = vrot.slane %v935_v27, 2  ;;  %v948_v39 = vrot.slane %v947_v28, 2 }
 0x44f   : > { %v952_v40 = vrot.slane %v924_v50, 4  ;;  %v958_v42 = vrot.slane %v925_v29, 4  ;;  %v964_v11 = vrot.slane %v926_v30, 4  ;;  %v970_v43 = vrot.slane %v927_v31, 4 }
 0x450   : > { %v931_v44 = vadd.f32 %v930_v32, %v929_v35  ;;  %v943_v45 = vadd.f32 %v942_v37, %v941_v41  ;;  %v937_v46 = vadd.f32 %v936_v38, %v935_v27  ;;  %v949_v47 = vadd.f32 %v948_v39, %v947_v28 }
 0x451   : > { %v953_v48 = vadd.f32 %v952_v40, %v924_v50  ;;  %v959_v12 = vadd.f32 %v958_v42, %v925_v29  ;;  %v965_v49 = vadd.f32 %v964_v11, %v926_v30  ;;  %v971_v13 = vadd.f32 %v970_v43, %v927_v31 }
 0x452   : > { %v938_v51 = vrot.slane %v937_v46, 1  ;;  %v950_v14 = vrot.slane %v949_v47, 1  ;;  %v932_v33 = vrot.slane %v931_v44, 1  ;;  %v944_v21 = vrot.slane %v943_v45, 1 }
 0x453   : > { %v954_v52 = vrot.slane %v953_v48, 2  ;;  %v960_v53 = vrot.slane %v959_v12, 2  ;;  %v966_v54 = vrot.slane %v965_v49, 2  ;;  %v972_v55 = vrot.slane %v971_v13, 2 }
 0x454   : > { %v939_v56 = vadd.f32 %v938_v51, %v937_v46  ;;  %v951_v36 = vadd.f32 %v950_v14, %v949_v47  ;;  %v933_v57 = vadd.f32 %v932_v33, %v931_v44  ;;  %v945_v58 = vadd.f32 %v944_v21, %v943_v45  ;;  %v5107_v14 = vld [vmem:[#allocation14 + $0x64] ss:$8 sps:$4 sm:$0xff]  }
 0x455   : > { %v955_v59 = vadd.f32 %v954_v52, %v953_v48  ;;  %v961_v60 = vadd.f32 %v960_v53, %v959_v12  ;;  %v967_v61 = vadd.f32 %v966_v54, %v965_v49  ;;  %v973_v62 = vadd.f32 %v972_v55, %v971_v13  ;;  %v5099_v12 = vld [vmem:[#allocation14 + $0x70] ss:$8 sps:$4 sm:$0xff]   ;;  %v5110_v33 = vld [vmem:[#allocation14 + $0x164] ss:$8 sps:$4 sm:$0xff]   ;;  %v5105_v53 = vld [vmem:[#allocation14 + $0x60] ss:$8 sps:$4 sm:$0xff]  }
 0x456   : > { %v1104_v17 = vpack.c.bf16 %v939_v56, %v939_v56  ;;  %v1106_v18 = vpack.c.bf16 %v951_v36, %v951_v36  ;;  %v1103_v20 = vpack.c.bf16 %v933_v57, %v933_v57  ;;  %v1105_v22 = vpack.c.bf16 %v945_v58, %v945_v58  ;;  %v5102_v49 = vld [vmem:[#allocation14 + $0x170] ss:$8 sps:$4 sm:$0xff]   ;;  %v5108_v54 = vld [vmem:[#allocation14 + $0x160] ss:$8 sps:$4 sm:$0xff]   ;;  %v5113_v55 = vld [vmem:[#allocation14 + $0x54] ss:$8 sps:$4 sm:$0xff]  }
 0x457   : > { %v956_v6 = vrot.slane %v955_v59, 1  ;;  %v968_v7 = vrot.slane %v967_v61, 1  ;;  %v962_v15 = vrot.slane %v961_v60, 1  ;;  %v974_v16 = vrot.slane %v973_v62, 1  ;;  %v5116_v56 = vld [vmem:[#allocation14 + $0x154] ss:$8 sps:$4 sm:$0xff]  }
 0x458   : > { %v1614_v27 = vunpack.c.l.b16 %v1032_v63  ;;  %v1623_v41 = vrot.slane %v1618_v0, 7  ;;  %v1616_v28 = vunpack.c.l.b16 %v1034_v2  ;;  %v1627_v50 = vrot.slane %v1620_v5, 7  ;;  %v5111_v36 = vld [vmem:[#allocation14 + $0x50] ss:$8 sps:$4 sm:$0xff]   ;;  %v5119_v58 = vld [vmem:[#allocation14 + $0x44] ss:$8 sps:$4 sm:$0xff]  }
 0x459   : > { %v957_v23 = vadd.f32 %v956_v6, %v955_v59  ;;  %v969_v1 = vadd.f32 %v968_v7, %v967_v61  ;;  %v963_v24 = vadd.f32 %v962_v15, %v961_v60  ;;  %v975_v35 = vadd.f32 %v974_v16, %v973_v62  ;;  %v5114_v57 = vld [vmem:[#allocation14 + $0x150] ss:$8 sps:$4 sm:$0xff]   ;;  %v5122_v59 = vld [vmem:[#allocation14 + $0x144] ss:$8 sps:$4 sm:$0xff]   ;;  %v5117_v60 = vld [vmem:[#allocation14 + $0x40] ss:$8 sps:$4 sm:$0xff]  }
 0x45a   : > { %v1184_v29 = vunpack.c.l.b16 %v1104_v17  ;;  %v1186_v30 = vunpack.c.l.b16 %v1106_v18  ;;  %v1183_v31 = vunpack.c.l.b16 %v1103_v20  ;;  %v1185_v32 = vunpack.c.l.b16 %v1105_v22  ;;  %v5120_v61 = vld [vmem:[#allocation14 + $0x140] ss:$8 sps:$4 sm:$0xff]   ;;  %v5125_v62 = vld [vmem:[#allocation14 + $0x34] ss:$8 sps:$4 sm:$0xff]   ;;  %v5123_v0 = vld [vmem:[#allocation14 + $0x30] ss:$8 sps:$4 sm:$0xff]  }
 0x45b   : > { %v1108_v4 = vpack.c.bf16 %v963_v24, %v963_v24  ;;  %v1110_v25 = vpack.c.bf16 %v975_v35, %v975_v35  ;;  %v1107_v34 = vpack.c.bf16 %v957_v23, %v957_v23  ;;  %v1109_v26 = vpack.c.bf16 %v969_v1, %v969_v1  ;;  %v5128_v63 = vld [vmem:[#allocation14 + $0x134] ss:$8 sps:$4 sm:$0xff]   ;;  %v5126_v2 = vld [vmem:[#allocation14 + $0x130] ss:$8 sps:$4 sm:$0xff]   ;;  %v5131_v5 = vld [vmem:[#allocation14 + $0x24] ss:$8 sps:$4 sm:$0xff]  }
 0x45c   : > { %v1624_v42 = vsel %vm850_vm1, %v1623_v41, %v1614_v27  ;;  %v1628_v11 = vsel %vm850_vm1, %v1627_v50, %v1616_v28  ;;  %v5134_v6 = vld [vmem:[#allocation14 + $0x124] ss:$8 sps:$4 sm:$0xff]   ;;  %v5129_v7 = vld [vmem:[#allocation14 + $0x20] ss:$8 sps:$4 sm:$0xff]   ;;  %v5137_v16 = vld [vmem:[#allocation14 + $0x14] ss:$8 sps:$4 sm:$0xff]  }
 0x45d   : > { %v1188_v37 = vunpack.c.l.b16 %v1108_v4  ;;  %v1190_v38 = vunpack.c.l.b16 %v1110_v25  ;;  %v1187_v39 = vunpack.c.l.b16 %v1107_v34  ;;  %v1189_v40 = vunpack.c.l.b16 %v1109_v26  ;;  %v5132_v15 = vld [vmem:[#allocation14 + $0x120] ss:$8 sps:$4 sm:$0xff]   ;;  %v5140_v17 = vld [vmem:[#allocation14 + $0x114] ss:$8 sps:$4 sm:$0xff]   ;;  %v5135_v18 = vld [vmem:[#allocation14 + $0x10] ss:$8 sps:$4 sm:$0xff]  }
 0x45e   : > { %v1630_v21 = vpack.c.b16 %v1624_v42, %v1624_v42  ;;  %v1632_v52 = vpack.c.b16 %v1628_v11, %v1628_v11  ;;  %v5138_v20 = vld [vmem:[#allocation14 + $0x110] ss:$8 sps:$4 sm:$0xff]   ;;  %v5143_v22 = vld [vmem:[#allocation14 + $0x4] ss:$8 sps:$4 sm:$0xff]   ;;  %v5141_v1 = vld [vmem:[#allocation14] ss:$8 sps:$4 sm:$0xff]   ;;  %v1018_v42 = vrot.slane %v6081_v3, %v6016_v10 }
 0x45f   : > { %v1192_v43 = vsel %vm850_vm1, %v1188_v37, %v1184_v29  ;;  %v1194_v44 = vsel %vm850_vm1, %v1190_v38, %v1186_v30  ;;  %v1191_v45 = vsel %vm850_vm1, %v1187_v39, %v1183_v31  ;;  %v1193_v46 = vsel %vm850_vm1, %v1189_v40, %v1185_v32  ;;  %v5146_v23 = vld [vmem:[#allocation14 + $0x104] ss:$8 sps:$4 sm:$0xff]   ;;  %v5144_v24 = vld [vmem:[#allocation14 + $0x100] ss:$8 sps:$4 sm:$0xff]   ;;  %v5149_v35 = vld [vmem:[#allocation14 + $0xf4] ss:$8 sps:$4 sm:$0xff]  }
 0x460   : > { %v1196_v47 = vpack.c.b16 %v1192_v43, %v1192_v43  ;;  %v1198_v48 = vpack.c.b16 %v1194_v44, %v1194_v44  ;;  %v1195_v13 = vpack.c.b16 %v1191_v45, %v1191_v45  ;;  %v1197_v51 = vpack.c.b16 %v1193_v46, %v1193_v46  ;;  %v5152_v27 = vld [vmem:[#allocation14 + $0x1f4] ss:$8 sps:$4 sm:$0xff]   ;;  %v5147_v41 = vld [vmem:[#allocation14 + $0xf0] ss:$8 sps:$4 sm:$0xff]   ;;  %v5155_v50 = vld [vmem:[#allocation14 + $0xe4] ss:$8 sps:$4 sm:$0xff]  }
 0x461   : > { %v5150_v28 = vld [vmem:[#allocation14 + $0x1f0] ss:$8 sps:$4 sm:$0xff]   ;;  %v5158_v4 = vld [vmem:[#allocation14 + $0x1e4] ss:$8 sps:$4 sm:$0xff]   ;;  %v5153_v25 = vld [vmem:[#allocation14 + $0xe0] ss:$8 sps:$4 sm:$0xff]   ;;  %v1010_v38 = vrot.slane %v6081_v3, %v6010_v8 }
 0x462   : > { %1555 = vmatprep.mubr.bf16.mxu0 %v1196_v47  ;;  %1596 = vmatprep.mubr.bf16.mxu1 %v1198_v48  ;;  %v5156_v34 = vld [vmem:[#allocation14 + $0x1e0] ss:$8 sps:$4 sm:$0xff]   ;;  %v5161_v26 = vld [vmem:[#allocation14 + $0xd4] ss:$8 sps:$4 sm:$0xff]   ;;  %v5159_v30 = vld [vmem:[#allocation14 + $0xd0] ss:$8 sps:$4 sm:$0xff]   ;;  %v994_v47 = vrot.slane %v6091_v19, %v6010_v8  ;;  %v1002_v48 = vrot.slane %v6091_v19, %v6016_v10 }
 0x463   : > { %1556 = vmatmul.mubr.bf16.vlgmr.msra.gmra.mxu0 %v1195_v13  ;;  %1597 = vmatmul.mubr.bf16.vlgmr.msra.gmra.mxu1 %v1197_v51  ;;  %v5164_v29 = vld [vmem:[#allocation14 + $0x1d4] ss:$8 sps:$4 sm:$0xff]   ;;  %v5162_v31 = vld [vmem:[#allocation14 + $0x1d0] ss:$8 sps:$4 sm:$0xff]   ;;  %v5167_v32 = vld [vmem:[#allocation14 + $0xc4] ss:$8 sps:$4 sm:$0xff]   ;;  %v1035_v44 = vpack.c.bf16 %v1010_v38, %v1010_v38 }
 0x464   : > { %1958 = vmatpush1.bf16.msra.mxu0 %v5099_v12  ;;  %1999 = vmatpush1.bf16.msra.mxu1 %v5102_v49  ;;  %v5170_v37 = vld [vmem:[#allocation14 + $0x1c4] ss:$8 sps:$4 sm:$0xff]   ;;  %v5165_v39 = vld [vmem:[#allocation14 + $0xc0] ss:$8 sps:$4 sm:$0xff]   ;;  %v5173_v11 = vld [vmem:[#allocation14 + $0xb4] ss:$8 sps:$4 sm:$0xff]   ;;  %v1037_v12 = vpack.c.bf16 %v1018_v42, %v1018_v42 }
 0x465   : > { %1959 = vmatprep.subr.bf16.mxu0 %v5107_v14  ;;  %2000 = vmatprep.subr.bf16.mxu1 %v5110_v33  ;;  %v5168_v40 = vld [vmem:[#allocation14 + $0x1c0] ss:$8 sps:$4 sm:$0xff]   ;;  %v5176_v43 = vld [vmem:[#allocation14 + $0x1b4] ss:$8 sps:$4 sm:$0xff]   ;;  %v5171_v45 = vld [vmem:[#allocation14 + $0xb0] ss:$8 sps:$4 sm:$0xff]   ;;  %v1031_v14 = vpack.c.bf16 %v994_v47, %v994_v47  ;;  %v1617_v33 = vunpack.c.l.b16 %v1035_v44 }
 0x466   : > { %1989 = vmatprep.mubr.bf16.mxu0 %v1630_v21  ;;  %2030 = vmatprep.mubr.bf16.mxu1 %v1632_v52  ;;  %v5174_v46 = vld [vmem:[#allocation14 + $0x1b0] ss:$8 sps:$4 sm:$0xff]   ;;  %v5179_v49 = vld [vmem:[#allocation14 + $0xa4] ss:$8 sps:$4 sm:$0xff]   ;;  %v5177_v13 = vld [vmem:[#allocation14 + $0xa0] ss:$8 sps:$4 sm:$0xff]   ;;  %v1033_v21 = vpack.c.bf16 %v1002_v48, %v1002_v48  ;;  %v1619_v52 = vunpack.c.l.b16 %v1037_v12 }
 0x467   : > { %v5182_v3 = vld [vmem:[#allocation14 + $0x1a4] ss:$8 sps:$4 sm:$0xff]   ;;  %v5180_v51 = vld [vmem:[#allocation14 + $0x1a0] ss:$8 sps:$4 sm:$0xff]   ;;  %v5183_v10 = vld [vmem:[#allocation14 + $0x90] ss:$8 sps:$4 sm:$0xff]  }
 0x468   : > { %1960 = vmatpush1.bf16.msra.mxu0 %v5105_v53  ;;  %2001 = vmatpush1.bf16.msra.mxu1 %v5108_v54  ;;  %v5185_v53 = vld [vmem:[#allocation14 + $0x94] ss:$8 sps:$4 sm:$0xff]   ;;  %v5186_v19 = vld [vmem:[#allocation14 + $0x190] ss:$8 sps:$4 sm:$0xff]  }
 0x469   : > { %1961 = vmatprep.subr.bf16.mxu0 %v5113_v55  ;;  %2002 = vmatprep.subr.bf16.mxu1 %v5116_v56  ;;  %v5188_v54 = vld [vmem:[#allocation14 + $0x194] ss:$8 sps:$4 sm:$0xff]   ;;  %v1613_v55 = vunpack.c.l.b16 %v1031_v14  ;;  %v1621_v56 = vrot.slane %v1617_v33, 7 }
 0x46c   : > { %1962 = vmatpush1.bf16.msra.mxu0 %v5111_v36  ;;  %2003 = vmatpush1.bf16.msra.mxu1 %v5114_v57  ;;  %v1615_v36 = vunpack.c.l.b16 %v1033_v21  ;;  %v1625_v57 = vrot.slane %v1619_v52, 7 }
 0x46d   : > { %1963 = vmatprep.subr.bf16.mxu0 %v5119_v58  ;;  %2004 = vmatprep.subr.bf16.mxu1 %v5122_v59  ;;  %v5191_v58 = vld [vmem:[#allocation14 + $0x84] ss:$8 sps:$4 sm:$0xff]  }
 0x46e   : > { %v5194_v59 = vld [vmem:[#allocation14 + $0x184] ss:$8 sps:$4 sm:$0xff]  }
 0x470   : > { %1964 = vmatpush1.bf16.msra.mxu0 %v5117_v60  ;;  %2005 = vmatpush1.bf16.msra.mxu1 %v5120_v61  ;;  %v5189_v60 = vld [vmem:[#allocation14 + $0x80] ss:$8 sps:$4 sm:$0xff]  }
 0x471   : > { %1965 = vmatprep.subr.bf16.mxu0 %v5125_v62  ;;  %2006 = vmatprep.subr.bf16.mxu1 %v5128_v63  ;;  %v5192_v61 = vld [vmem:[#allocation14 + $0x180] ss:$8 sps:$4 sm:$0xff]   ;;  %v1622_v62 = vsel %vm850_vm1, %v1621_v56, %v1613_v55  ;;  %v1626_v63 = vsel %vm850_vm1, %v1625_v57, %v1615_v36 }
 0x474   : > { %1966 = vmatpush1.bf16.msra.mxu0 %v5123_v0  ;;  %2007 = vmatpush1.bf16.msra.mxu1 %v5126_v2  ;;  %v1629_v0 = vpack.c.b16 %v1622_v62, %v1622_v62  ;;  %v1631_v2 = vpack.c.b16 %v1626_v63, %v1626_v63 }
 0x475   : > { %1967 = vmatprep.subr.bf16.mxu0 %v5131_v5  ;;  %2008 = vmatprep.subr.bf16.mxu1 %v5134_v6 }
 0x478   : > { %1968 = vmatpush1.bf16.msra.mxu0 %v5129_v7  ;;  %2009 = vmatpush1.bf16.msra.mxu1 %v5132_v15 }
 0x479   : > { %1969 = vmatprep.subr.bf16.mxu0 %v5137_v16  ;;  %2010 = vmatprep.subr.bf16.mxu1 %v5140_v17 }
 0x47c   : > { %1970 = vmatpush1.bf16.msra.mxu0 %v5135_v18  ;;  %2011 = vmatpush1.bf16.msra.mxu1 %v5138_v20 }
 0x47d   : > { %1971 = vmatprep.subr.bf16.mxu0 %v5143_v22  ;;  %2012 = vmatprep.subr.bf16.mxu1 %v5146_v23  ;;  %v2039_v23 = vld [vmem:[%s6658_s19] sm:$0x3] }
 0x480   : > { %1972 = vmatpush1.bf16.msra.mxu0 %v5141_v1  ;;  %2013 = vmatpush1.bf16.msra.mxu1 %v5144_v24 }
 0x481   : > { %1973 = vmatprep.subr.bf16.mxu0 %v5149_v35  ;;  %2014 = vmatprep.subr.bf16.mxu1 %v5152_v27 }
 0x484   : > { %1974 = vmatpush2.bf16.msra.mxu0 %v5147_v41  ;;  %2015 = vmatpush2.bf16.msra.mxu1 %v5150_v28  ;;  %v2044_v41 = vrot.slane %v2039_v23, %v6010_v8 }
 0x485   : > { %1975 = vmatprep.subr.bf16.mxu0 %v5155_v50  ;;  %2016 = vmatprep.subr.bf16.mxu1 %v5158_v4 }
 0x488   : > { %1976 = vmatpush2.bf16.msra.mxu0 %v5153_v25  ;;  %2017 = vmatpush2.bf16.msra.mxu1 %v5156_v34  ;;  %v2048_v34 = vrot.slane %v2039_v23, %v6013_v9 }
 0x489   : > { %1977 = vmatprep.subr.bf16.mxu0 %v5161_v26  ;;  %2018 = vmatprep.subr.bf16.mxu1 %v5164_v29 }
 0x48c   : > { %1978 = vmatpush2.bf16.msra.mxu0 %v5159_v30  ;;  %2019 = vmatpush2.bf16.msra.mxu1 %v5162_v31 }
 0x48d   : > { %1979 = vmatprep.subr.bf16.mxu0 %v5167_v32  ;;  %2020 = vmatprep.subr.bf16.mxu1 %v5170_v37 }
 0x490   : > { %1980 = vmatpush2.bf16.msra.mxu0 %v5165_v39  ;;  %2021 = vmatpush2.bf16.msra.mxu1 %v5168_v40 }
 0x491   : > { %1981 = vmatprep.subr.bf16.mxu0 %v5173_v11  ;;  %2022 = vmatprep.subr.bf16.mxu1 %v5176_v43 }
 0x494   : > { %1982 = vmatpush2.bf16.msra.mxu0 %v5171_v45  ;;  %2023 = vmatpush2.bf16.msra.mxu1 %v5174_v46 }
 0x495   : > { %1983 = vmatprep.subr.bf16.mxu0 %v5179_v49  ;;  %2024 = vmatprep.subr.bf16.mxu1 %v5182_v3 }
 0x498   : > { %1984 = vmatpush2.bf16.msra.mxu0 %v5177_v13  ;;  %2025 = vmatpush2.bf16.msra.mxu1 %v5180_v51 }
 0x499   : > { %1985 = vmatprep.subr.bf16.mxu0 %v5185_v53  ;;  %2026 = vmatprep.subr.bf16.mxu1 %v5188_v54 }
 0x49c   : > { %1986 = vmatpush2.bf16.msra.mxu0 %v5183_v10  ;;  %2027 = vmatpush2.bf16.msra.mxu1 %v5186_v19 }
 0x49d   : > { %1987 = vmatprep.subr.bf16.mxu0 %v5191_v58  ;;  %2028 = vmatprep.subr.bf16.mxu1 %v5194_v59 }
 0x4a0   : > { %1988 = vmatpush2.bf16.msra.mxu0 %v5189_v60  ;;  %2029 = vmatpush2.bf16.msra.mxu1 %v5192_v61 }
 0x4a3   : > { %1990 = vmatmul.mubr.bf16.vlgmr.msra.gmra.mxu0 %v1629_v0  ;;  %2031 = vmatmul.mubr.bf16.vlgmr.msra.gmra.mxu1 %v1631_v2 }
 0x523   : > { %v1557_v5 = vpop.f32.mrf.mxu0  ;;  %v1598_v6 = vpop.f32.mrf.mxu1 }
 0x524   : > { %v1599_v7 = vadd.f32 %v1598_v6, %v1557_v5 }
 0x525   : > { %v1559_v15 = vpop.f32.mrf.mxu0  ;;  %v1600_v16 = vpop.f32.mrf.mxu1 }
 0x526   : > { %v1601_v35 = vadd.f32 %v1600_v16, %v1559_v15 }
 0x527   : > { %v1561_v17 = vpop.f32.mrf.mxu0  ;;  %v1602_v18 = vpop.f32.mrf.mxu1 }
 0x529   : > { %v1562_v20 = vpop.f32.mrf.mxu0  ;;  %v1603_v22 = vpop.f32.mrf.mxu1 }
 0x563   : > { %v1991_v1 = vpop.f32.mrf.mxu0  ;;  %v2032_v24 = vpop.f32.mrf.mxu1 }
 0x564   : > { %v1992_v27 = vadd.f32 %v1991_v1, %v1599_v7 }
 0x565   : > { %v1993_v28 = vpop.f32.mrf.mxu0  ;;  %v2034_v50 = vpop.f32.mrf.mxu1 }
 0x566   : > { %v2033_v4 = vadd.f32 %v2032_v24, %v1992_v27  ;;  %v1994_v25 = vadd.f32 %v1993_v28, %v1601_v35 }
 0x567   : > { %v1995_v26 = vpop.f32.mrf.mxu0  ;;  %v2036_v29 = vpop.f32.mrf.mxu1 }
 0x568   : > { %v2051_v30 = vadd.f32 %v2044_v41, %v2033_v4  ;;  %v2035_v31 = vadd.f32 %v2034_v50, %v1994_v25 }
 0x569   : > { %v1996_v32 = vpop.f32.mrf.mxu0  ;;  %v2037_v37 = vpop.f32.mrf.mxu1 }
 0x56a   : > { %v2052_v38 = vadd.f32 %v2048_v34, %v2035_v31  ;;  %v2053_v39 = vmax.f32 %v2051_v30, 0.0 }
 0x56c   : > { %v2054_v40 = vmax.f32 %v2052_v38, 0.0 }
 0x56e   : > { %v2057_v42 = vcombine.low %v2053_v39, %v2054_v40 }
 0x570   : > { %4592 = vst.sshfl [vmem:[#allocation2] sm:$0x33 pattern:$0x76325410] %v2057_v42 }
 0x571 PF: > { %v2252_v8 = vld [vmem:[%s5997_s22 + $0x1c0] sm:$0xff]  ;;  %v2253_v11 = vld [vmem:[%s5997_s22 + $0x1c8] sm:$0xff]  ;;  %s6660_s15 = sld [smem:[#allocation41_spill]]  ;;  %s4876_s13 = sshll.u32 %s5721_s0, 5 }
 0x572   : > { %v2256_v9 = vld [vmem:[%s5997_s22 + $0x1e0] sm:$0xff]  ;;  %v2257_v44 = vld [vmem:[%s5997_s22 + $0x1e8] sm:$0xff]  ;;  %s6661_s14 = sld [smem:[#allocation42_spill]]  ;;  %s4147_s3 = sshll.u32 %s6000_s29, 4  ;;  %s6524_s3 = int_to_ptr.vmem [resolvable:$true] %s4147_s3 }
 0x573   : > { %v4652_v43 = vcombine.high %v2252_v8, %v2256_v9  ;;  %v4651_v45 = vcombine.low %v2252_v8, %v2256_v9  ;;  %v2244_v46 = vld [vmem:[%s5997_s22 + $0x180] sm:$0xff]  ;;  %v4654_v48 = vcombine.high %v2253_v11, %v2257_v44  ;;  %v4653_v12 = vcombine.low %v2253_v11, %v2257_v44  ;;  %v2245_v3 = vld [vmem:[%s5997_s22 + $0x188] sm:$0xff]  ;;  %s6662_s19 = sld [smem:[#allocation40_spill]]  ;;  %s5608_s28 = smov [#allocation19]  }
 0x574   : > { %v2248_v47 = vld [vmem:[%s5997_s22 + $0x1a0] sm:$0xff]  ;;  %v2249_v13 = vld [vmem:[%s5997_s22 + $0x1a8] sm:$0xff] }
 0x575   : > { %v4644_v49 = vcombine.high %v2244_v46, %v2248_v47  ;;  %v2236_v51 = vld [vmem:[%s5997_s22 + $0x140] sm:$0xff]  ;;  %2993 = vmatprep.subr.bf16.mxu0 %v4652_v43  ;;  %v4646_v14 = vcombine.high %v2245_v3, %v2249_v13  ;;  %v2237_v21 = vld [vmem:[%s5997_s22 + $0x148] sm:$0xff]  ;;  %3034 = vmatprep.subr.bf16.mxu1 %v4654_v48  ;;  %v4643_v53 = vcombine.low %v2244_v46, %v2248_v47 }
 0x576   : > { %v2240_v33 = vld [vmem:[%s5997_s22 + $0x160] sm:$0xff]  ;;  %v2241_v52 = vld [vmem:[%s5997_s22 + $0x168] sm:$0xff]  ;;  %2994 = vmatpush1.bf16.msra.mxu0 %v4651_v45  ;;  %3035 = vmatpush1.bf16.msra.mxu1 %v4653_v12  ;;  %v4645_v54 = vcombine.low %v2245_v3, %v2249_v13 }
 0x577   : > { %2995 = vmatprep.subr.bf16.mxu0 %v4644_v49  ;;  %v4636_v10 = vcombine.high %v2236_v51, %v2240_v33  ;;  %3036 = vmatprep.subr.bf16.mxu1 %v4646_v14  ;;  %v4638_v19 = vcombine.high %v2237_v21, %v2241_v52  ;;  %v2228_v55 = vld [vmem:[%s5997_s22 + $0x100] sm:$0xff]  ;;  %v2229_v36 = vld [vmem:[%s5997_s22 + $0x108] sm:$0xff]  ;;  %v4635_v58 = vcombine.low %v2236_v51, %v2240_v33 }
 0x578   : > { %v2232_v56 = vld [vmem:[%s5997_s22 + $0x120] sm:$0xff]  ;;  %v2233_v57 = vld [vmem:[%s5997_s22 + $0x128] sm:$0xff]  ;;  %v4637_v59 = vcombine.low %v2237_v21, %v2241_v52 }
 0x579   : > { %v4628_v60 = vcombine.high %v2228_v55, %v2232_v56  ;;  %v4630_v61 = vcombine.high %v2229_v36, %v2233_v57  ;;  %v2220_v62 = vld [vmem:[%s5997_s22 + $0xc0] sm:$0xff]  ;;  %v2221_v0 = vld [vmem:[%s5997_s22 + $0xc8] sm:$0xff]  ;;  %v4627_v5 = vcombine.low %v2228_v55, %v2232_v56  ;;  %v4629_v6 = vcombine.low %v2229_v36, %v2233_v57 }
 0x57a   : > { %2996 = vmatpush1.bf16.msra.mxu0 %v4643_v53  ;;  %3037 = vmatpush1.bf16.msra.mxu1 %v4645_v54  ;;  %v2224_v63 = vld [vmem:[%s5997_s22 + $0xe0] sm:$0xff]  ;;  %v2225_v2 = vld [vmem:[%s5997_s22 + $0xe8] sm:$0xff] }
 0x57b   : > { %2997 = vmatprep.subr.bf16.mxu0 %v4636_v10  ;;  %3038 = vmatprep.subr.bf16.mxu1 %v4638_v19  ;;  %v4620_v7 = vcombine.high %v2220_v62, %v2224_v63  ;;  %v4622_v15 = vcombine.high %v2221_v0, %v2225_v2  ;;  %v2212_v16 = vld [vmem:[%s5997_s22 + $0x80] sm:$0xff]  ;;  %v2213_v18 = vld [vmem:[%s5997_s22 + $0x88] sm:$0xff]  ;;  %v4619_v22 = vcombine.low %v2220_v62, %v2224_v63 }
 0x57c   : > { %v2216_v17 = vld [vmem:[%s5997_s22 + $0xa0] sm:$0xff]  ;;  %v2217_v20 = vld [vmem:[%s5997_s22 + $0xa8] sm:$0xff]  ;;  %v4621_v23 = vcombine.low %v2221_v0, %v2225_v2 }
 0x57d   : > { %v4612_v1 = vcombine.high %v2212_v16, %v2216_v17  ;;  %v4614_v24 = vcombine.high %v2213_v18, %v2217_v20  ;;  %v2204_v35 = vld [vmem:[%s5997_s22 + $0x40] sm:$0xff]  ;;  %v2205_v41 = vld [vmem:[%s5997_s22 + $0x48] sm:$0xff]  ;;  %v4611_v50 = vcombine.low %v2212_v16, %v2216_v17  ;;  %v4613_v4 = vcombine.low %v2213_v18, %v2217_v20 }
 0x57e   : > { %2998 = vmatpush1.bf16.msra.mxu0 %v4635_v58  ;;  %3039 = vmatpush1.bf16.msra.mxu1 %v4637_v59  ;;  %v2208_v27 = vld [vmem:[%s5997_s22 + $0x60] sm:$0xff]  ;;  %v2209_v28 = vld [vmem:[%s5997_s22 + $0x68] sm:$0xff] }
 0x57f   : > { %2999 = vmatprep.subr.bf16.mxu0 %v4628_v60  ;;  %3040 = vmatprep.subr.bf16.mxu1 %v4630_v61  ;;  %v4604_v25 = vcombine.high %v2204_v35, %v2208_v27  ;;  %v6152_v34 = vld.sshfl [vmem:[%s571_s17] sm:$0x33 pattern:$0x76325410]  ;;  %v4606_v26 = vcombine.high %v2205_v41, %v2209_v28  ;;  %v2196_v29 = vld [vmem:[%s5997_s22] sm:$0xff]  ;;  %v4603_v38 = vcombine.low %v2204_v35, %v2208_v27  ;;  %s4877_s17 = sshll.u32 %s5721_s0, 6 }
 0x580   : > { %v2200_v30 = vld [vmem:[%s5997_s22 + $0x20] sm:$0xff]  ;;  %v2348_v31 = vcombine.high %v6152_v34, %v6152_v34  ;;  %v2197_v32 = vld [vmem:[%s5997_s22 + $0x8] sm:$0xff]  ;;  %v4605_v40 = vcombine.low %v2205_v41, %v2209_v28  ;;  %s6449_s7 = scalar_lea.hbm %s6660_s15, %s4877_s17  ;;  %s6457_s20 = scalar_lea.hbm %s6661_s14, %s4877_s17 }
 0x581   : > { %v2201_v37 = vld [vmem:[%s5997_s22 + $0x28] sm:$0xff]  ;;  %v4596_v42 = vcombine.high %v2196_v29, %v2200_v30  ;;  %v2316_v9 = vld [vmem:[%s5997_s22 + $0x3c0] sm:$0xff]  ;;  %v4595_v45 = vcombine.low %v2196_v29, %v2200_v30  ;;  %s6477_s17 = scalar_lea.sflag [#allocation20], %s567_s1 }
 0x582   : > { %3000 = vmatpush1.bf16.msra.mxu0 %v4627_v5  ;;  %3041 = vmatpush1.bf16.msra.mxu1 %v4629_v6  ;;  %v6160_v39 = vpack.c.bf16 %v2348_v31, %v2348_v31  ;;  %v4598_v8 = vcombine.high %v2197_v32, %v2201_v37  ;;  %v2320_v11 = vld [vmem:[%s5997_s22 + $0x3e0] sm:$0xff]  ;;  %v2317_v43 = vld [vmem:[%s5997_s22 + $0x3c8] sm:$0xff]  ;;  %v4597_v46 = vcombine.low %v2197_v32, %v2201_v37 }
 0x583   : > { %3001 = vmatprep.subr.bf16.mxu0 %v4620_v7  ;;  %3042 = vmatprep.subr.bf16.mxu1 %v4622_v15  ;;  %v2321_v44 = vld [vmem:[%s5997_s22 + $0x3e8] sm:$0xff]  ;;  %v4716_v47 = vcombine.high %v2316_v9, %v2320_v11  ;;  %v2308_v12 = vld [vmem:[%s5997_s22 + $0x380] sm:$0xff]  ;;  %v4715_v51 = vcombine.low %v2316_v9, %v2320_v11 }
 0x584   : > { %3025 = vmatprep.mubr.bf16.mxu0 %v6160_v39  ;;  %3066 = vmatprep.mubr.bf16.mxu1 %v6160_v39  ;;  %v4718_v48 = vcombine.high %v2317_v43, %v2321_v44  ;;  %v2312_v49 = vld [vmem:[%s5997_s22 + $0x3a0] sm:$0xff]  ;;  %v2309_v3 = vld [vmem:[%s5997_s22 + $0x388] sm:$0xff]  ;;  %v4717_v14 = vcombine.low %v2317_v43, %v2321_v44  ;;  %v2254_v43 = vld [vmem:[%s5997_s22 + $0x1d0] sm:$0xff] }
 0x585   : > { %v2313_v13 = vld [vmem:[%s5997_s22 + $0x3a8] sm:$0xff]  ;;  %v4708_v33 = vcombine.high %v2308_v12, %v2312_v49  ;;  %v2300_v52 = vld [vmem:[%s5997_s22 + $0x340] sm:$0xff]  ;;  %v4707_v19 = vcombine.low %v2308_v12, %v2312_v49  ;;  %v2258_v44 = vld [vmem:[%s5997_s22 + $0x1f0] sm:$0xff] }
 0x586   : > { %3002 = vmatpush1.bf16.msra.mxu0 %v4619_v22  ;;  %3043 = vmatpush1.bf16.msra.mxu1 %v4621_v23  ;;  %v4710_v21 = vcombine.high %v2309_v3, %v2313_v13  ;;  %v2304_v53 = vld [vmem:[%s5997_s22 + $0x360] sm:$0xff]  ;;  %v2301_v54 = vld [vmem:[%s5997_s22 + $0x348] sm:$0xff]  ;;  %v4709_v55 = vcombine.low %v2309_v3, %v2313_v13  ;;  %v4656_v12 = vcombine.high %v2254_v43, %v2258_v44  ;;  %v2246_v3 = vld [vmem:[%s5997_s22 + $0x190] sm:$0xff] }
 0x587   : > { %3003 = vmatprep.subr.bf16.mxu0 %v4612_v1  ;;  %3044 = vmatprep.subr.bf16.mxu1 %v4614_v24  ;;  %v2305_v10 = vld [vmem:[%s5997_s22 + $0x368] sm:$0xff]  ;;  %v4700_v56 = vcombine.high %v2300_v52, %v2304_v53  ;;  %v2292_v57 = vld [vmem:[%s5997_s22 + $0x300] sm:$0xff]  ;;  %v4699_v61 = vcombine.low %v2300_v52, %v2304_v53  ;;  %v2250_v13 = vld [vmem:[%s5997_s22 + $0x1b0] sm:$0xff] }
 0x588   : > { %v4702_v36 = vcombine.high %v2301_v54, %v2305_v10  ;;  %v2296_v58 = vld [vmem:[%s5997_s22 + $0x320] sm:$0xff]  ;;  %v2293_v59 = vld [vmem:[%s5997_s22 + $0x308] sm:$0xff]  ;;  %v4701_v62 = vcombine.low %v2301_v54, %v2305_v10  ;;  %v4648_v53 = vcombine.high %v2246_v3, %v2250_v13  ;;  %v2238_v10 = vld [vmem:[%s5997_s22 + $0x150] sm:$0xff] }
 0x589   : > { %v2297_v60 = vld [vmem:[%s5997_s22 + $0x328] sm:$0xff]  ;;  %v4692_v63 = vcombine.high %v2292_v57, %v2296_v58  ;;  %v2284_v2 = vld [vmem:[%s5997_s22 + $0x2c0] sm:$0xff]  ;;  %v4691_v15 = vcombine.low %v2292_v57, %v2296_v58 }
 0x58a   : > { %3004 = vmatpush1.bf16.msra.mxu0 %v4611_v50  ;;  %3045 = vmatpush1.bf16.msra.mxu1 %v4613_v4  ;;  %v4694_v0 = vcombine.high %v2293_v59, %v2297_v60  ;;  %v2288_v5 = vld [vmem:[%s5997_s22 + $0x2e0] sm:$0xff]  ;;  %v2285_v6 = vld [vmem:[%s5997_s22 + $0x2c8] sm:$0xff]  ;;  %v4693_v16 = vcombine.low %v2293_v59, %v2297_v60  ;;  %v2230_v59 = vld [vmem:[%s5997_s22 + $0x110] sm:$0xff] }
 0x58b   : > { %3005 = vmatprep.subr.bf16.mxu0 %v4604_v25  ;;  %3046 = vmatprep.subr.bf16.mxu1 %v4606_v26  ;;  %v2289_v7 = vld [vmem:[%s5997_s22 + $0x2e8] sm:$0xff]  ;;  %v4684_v17 = vcombine.high %v2284_v2, %v2288_v5  ;;  %v2276_v20 = vld [vmem:[%s5997_s22 + $0x280] sm:$0xff]  ;;  %v4683_v24 = vcombine.low %v2284_v2, %v2288_v5  ;;  %v2234_v60 = vld [vmem:[%s5997_s22 + $0x130] sm:$0xff] }
 0x58c   : > { %v4686_v18 = vcombine.high %v2285_v6, %v2289_v7  ;;  %v2280_v22 = vld [vmem:[%s5997_s22 + $0x2a0] sm:$0xff]  ;;  %v2277_v23 = vld [vmem:[%s5997_s22 + $0x288] sm:$0xff]  ;;  %v4685_v35 = vcombine.low %v2285_v6, %v2289_v7  ;;  %v4632_v2 = vcombine.high %v2230_v59, %v2234_v60  ;;  %v2222_v6 = vld [vmem:[%s5997_s22 + $0xd0] sm:$0xff] }
 0x58d   : > { %v2281_v1 = vld [vmem:[%s5997_s22 + $0x2a8] sm:$0xff]  ;;  %v4676_v27 = vcombine.high %v2276_v20, %v2280_v22  ;;  %v2268_v28 = vld [vmem:[%s5997_s22 + $0x240] sm:$0xff]  ;;  %v4675_v26 = vcombine.low %v2276_v20, %v2280_v22  ;;  %v2226_v7 = vld [vmem:[%s5997_s22 + $0xf0] sm:$0xff] }
 0x58e   : > { %3006 = vmatpush1.bf16.msra.mxu0 %v4603_v38  ;;  %3047 = vmatpush1.bf16.msra.mxu1 %v4605_v40  ;;  %v4678_v41 = vcombine.high %v2277_v23, %v2281_v1  ;;  %v2272_v50 = vld [vmem:[%s5997_s22 + $0x260] sm:$0xff]  ;;  %v2269_v4 = vld [vmem:[%s5997_s22 + $0x248] sm:$0xff]  ;;  %v4677_v29 = vcombine.low %v2277_v23, %v2281_v1  ;;  %v2214_v22 = vld [vmem:[%s5997_s22 + $0x90] sm:$0xff] }
 0x58f   : > { %3007 = vmatprep.subr.bf16.mxu0 %v4596_v42  ;;  %3048 = vmatprep.subr.bf16.mxu1 %v4598_v8  ;;  %v2273_v25 = vld [vmem:[%s5997_s22 + $0x268] sm:$0xff]  ;;  %v4668_v30 = vcombine.high %v2268_v28, %v2272_v50  ;;  %v2260_v32 = vld [vmem:[%s5997_s22 + $0x200] sm:$0xff]  ;;  %v4667_v42 = vcombine.low %v2268_v28, %v2272_v50  ;;  %v2218_v23 = vld [vmem:[%s5997_s22 + $0xb0] sm:$0xff] }
 0x590   : > { %v4670_v31 = vcombine.high %v2269_v4, %v2273_v25  ;;  %v2264_v37 = vld [vmem:[%s5997_s22 + $0x220] sm:$0xff]  ;;  %v2261_v38 = vld [vmem:[%s5997_s22 + $0x208] sm:$0xff]  ;;  %v4669_v8 = vcombine.low %v2269_v4, %v2273_v25  ;;  %v2215_v1 = vld [vmem:[%s5997_s22 + $0x98] sm:$0xff] }
 0x591   : > { %v2265_v40 = vld [vmem:[%s5997_s22 + $0x228] sm:$0xff]  ;;  %v4660_v9 = vcombine.high %v2260_v32, %v2264_v37  ;;  %v2206_v50 = vld [vmem:[%s5997_s22 + $0x50] sm:$0xff]  ;;  %v2207_v25 = vld [vmem:[%s5997_s22 + $0x58] sm:$0xff] }
 0x592   : > { %3008 = vmatpush1.bf16.msra.mxu0 %v4595_v45  ;;  %3049 = vmatpush1.bf16.msra.mxu1 %v4597_v46  ;;  %v4662_v11 = vcombine.high %v2261_v38, %v2265_v40  ;;  %v2255_v45 = vld [vmem:[%s5997_s22 + $0x1d8] sm:$0xff]  ;;  %v2210_v4 = vld [vmem:[%s5997_s22 + $0x70] sm:$0xff] }
 0x593   : > { %3009 = vmatprep.subr.bf16.mxu0 %v4716_v47  ;;  %3050 = vmatprep.subr.bf16.mxu1 %v4718_v48  ;;  %v2259_v46 = vld [vmem:[%s5997_s22 + $0x1f8] sm:$0xff]  ;;  %v4659_v47 = vcombine.low %v2260_v32, %v2264_v37  ;;  %v4661_v48 = vcombine.low %v2261_v38, %v2265_v40  ;;  %v2198_v37 = vld [vmem:[%s5997_s22 + $0x10] sm:$0xff] }
 0x594   : > { %v4658_v49 = vcombine.high %v2255_v45, %v2259_v46  ;;  %v4657_v52 = vcombine.low %v2255_v45, %v2259_v46  ;;  %v2202_v38 = vld [vmem:[%s5997_s22 + $0x30] sm:$0xff]  ;;  %v2199_v40 = vld [vmem:[%s5997_s22 + $0x18] sm:$0xff] }
 0x595   : > { %v2322_v45 = vld [vmem:[%s5997_s22 + $0x3f0] sm:$0xff]  ;;  %v2319_v46 = vld [vmem:[%s5997_s22 + $0x3d8] sm:$0xff] }
 0x596   : > { %3010 = vmatpush2.bf16.msra.mxu0 %v4715_v51  ;;  %3051 = vmatpush2.bf16.msra.mxu1 %v4717_v14  ;;  %v6204_v51 = vpack.c.bf16 %v6152_v34, %v6152_v34  ;;  %v2247_v14 = vld [vmem:[%s5997_s22 + $0x198] sm:$0xff] }
 0x597   : > { %3011 = vmatprep.subr.bf16.mxu0 %v4708_v33  ;;  %3052 = vmatprep.subr.bf16.mxu1 %v4710_v21  ;;  %v2251_v33 = vld [vmem:[%s5997_s22 + $0x1b8] sm:$0xff]  ;;  %v4655_v21 = vcombine.low %v2254_v43, %v2258_v44  ;;  %v2318_v44 = vld [vmem:[%s5997_s22 + $0x3d0] sm:$0xff] }
 0x598   : > { %v4650_v54 = vcombine.high %v2247_v14, %v2251_v33  ;;  %v2239_v34 = vld [vmem:[%s5997_s22 + $0x158] sm:$0xff] }
 0x59a   : > { %3012 = vmatpush2.bf16.msra.mxu0 %v4707_v19  ;;  %3053 = vmatpush2.bf16.msra.mxu1 %v4709_v55  ;;  %v2242_v19 = vld [vmem:[%s5997_s22 + $0x170] sm:$0xff]  ;;  %v2243_v55 = vld [vmem:[%s5997_s22 + $0x178] sm:$0xff] }
 0x59b   : > { %3013 = vmatprep.subr.bf16.mxu0 %v4700_v56  ;;  %3054 = vmatprep.subr.bf16.mxu1 %v4702_v36  ;;  %v4647_v56 = vcombine.low %v2246_v3, %v2250_v13  ;;  %v4649_v36 = vcombine.low %v2247_v14, %v2251_v33  ;;  %v4640_v57 = vcombine.high %v2238_v10, %v2242_v19  ;;  %v2310_v13 = vld [vmem:[%s5997_s22 + $0x390] sm:$0xff]  ;;  %v2311_v33 = vld [vmem:[%s5997_s22 + $0x398] sm:$0xff] }
 0x59c   : > { %v4642_v58 = vcombine.high %v2239_v34, %v2243_v55  ;;  %v2314_v14 = vld [vmem:[%s5997_s22 + $0x3b0] sm:$0xff] }
 0x59e   : > { %3014 = vmatpush2.bf16.msra.mxu0 %v4699_v61  ;;  %3055 = vmatpush2.bf16.msra.mxu1 %v4701_v62  ;;  %v2231_v61 = vld [vmem:[%s5997_s22 + $0x118] sm:$0xff] }
 0x59f   : > { %3015 = vmatprep.subr.bf16.mxu0 %v4692_v63  ;;  %3056 = vmatprep.subr.bf16.mxu1 %v4694_v0  ;;  %v2235_v62 = vld [vmem:[%s5997_s22 + $0x138] sm:$0xff]  ;;  %v4639_v63 = vcombine.low %v2238_v10, %v2242_v19  ;;  %v4641_v0 = vcombine.low %v2239_v34, %v2243_v55  ;;  %v2302_v19 = vld [vmem:[%s5997_s22 + $0x350] sm:$0xff] }
 0x5a0   : > { %v4634_v5 = vcombine.high %v2231_v61, %v2235_v62  ;;  %v2306_v34 = vld [vmem:[%s5997_s22 + $0x370] sm:$0xff]  ;;  %v2303_v55 = vld [vmem:[%s5997_s22 + $0x358] sm:$0xff] }
 0x5a2   : > { %3016 = vmatpush2.bf16.msra.mxu0 %v4691_v15  ;;  %3057 = vmatpush2.bf16.msra.mxu1 %v4693_v16  ;;  %v2223_v15 = vld [vmem:[%s5997_s22 + $0xd8] sm:$0xff] }
 0x5a3   : > { %3017 = vmatprep.subr.bf16.mxu0 %v4684_v17  ;;  %3058 = vmatprep.subr.bf16.mxu1 %v4686_v18  ;;  %v2227_v16 = vld [vmem:[%s5997_s22 + $0xf8] sm:$0xff]  ;;  %v4631_v17 = vcombine.low %v2230_v59, %v2234_v60  ;;  %v4624_v18 = vcombine.high %v2222_v6, %v2226_v7  ;;  %v2294_v60 = vld [vmem:[%s5997_s22 + $0x310] sm:$0xff] }
 0x5a4   : > { %v4626_v20 = vcombine.high %v2223_v15, %v2227_v16 }
 0x5a6   : > { %3018 = vmatpush2.bf16.msra.mxu0 %v4683_v24  ;;  %3059 = vmatpush2.bf16.msra.mxu1 %v4685_v35  ;;  %v2219_v24 = vld [vmem:[%s5997_s22 + $0xb8] sm:$0xff]  ;;  %v4623_v35 = vcombine.low %v2222_v6, %v2226_v7  ;;  %v2286_v7 = vld [vmem:[%s5997_s22 + $0x2d0] sm:$0xff] }
 0x5a7   : > { %3019 = vmatprep.subr.bf16.mxu0 %v4676_v27  ;;  %3060 = vmatprep.subr.bf16.mxu1 %v4678_v41  ;;  %v4625_v27 = vcombine.low %v2223_v15, %v2227_v16  ;;  %v4616_v41 = vcombine.high %v2214_v22, %v2218_v23  ;;  %v4618_v28 = vcombine.high %v2215_v1, %v2219_v24  ;;  %v2290_v15 = vld [vmem:[%s5997_s22 + $0x2f0] sm:$0xff]  ;;  %v2287_v16 = vld [vmem:[%s5997_s22 + $0x2d8] sm:$0xff] }
 0x5aa   : > { %3020 = vmatpush2.bf16.msra.mxu0 %v4675_v26  ;;  %3061 = vmatpush2.bf16.msra.mxu1 %v4677_v29  ;;  %v2211_v26 = vld [vmem:[%s5997_s22 + $0x78] sm:$0xff]  ;;  %v4615_v29 = vcombine.low %v2214_v22, %v2218_v23  ;;  %v2278_v23 = vld [vmem:[%s5997_s22 + $0x290] sm:$0xff] }
 0x5ab   : > { %3021 = vmatprep.subr.bf16.mxu0 %v4668_v30  ;;  %3062 = vmatprep.subr.bf16.mxu1 %v4670_v31  ;;  %v4617_v30 = vcombine.low %v2215_v1, %v2219_v24  ;;  %v4608_v31 = vcombine.high %v2206_v50, %v2210_v4  ;;  %v4610_v32 = vcombine.high %v2207_v25, %v2211_v26  ;;  %v2282_v1 = vld [vmem:[%s5997_s22 + $0x2b0] sm:$0xff]  ;;  %v2279_v24 = vld [vmem:[%s5997_s22 + $0x298] sm:$0xff] }
 0x5ae   : > { %3022 = vmatpush2.bf16.msra.mxu0 %v4667_v42  ;;  %3063 = vmatpush2.bf16.msra.mxu1 %v4669_v8  ;;  %v2203_v42 = vld [vmem:[%s5997_s22 + $0x38] sm:$0xff]  ;;  %v4607_v8 = vcombine.low %v2206_v50, %v2210_v4  ;;  %v2270_v4 = vld [vmem:[%s5997_s22 + $0x250] sm:$0xff] }
 0x5af   : > { %3023 = vmatprep.subr.bf16.mxu0 %v4660_v9  ;;  %3064 = vmatprep.subr.bf16.mxu1 %v4662_v11  ;;  %v4609_v9 = vcombine.low %v2207_v25, %v2211_v26  ;;  %v4600_v11 = vcombine.high %v2198_v37, %v2202_v38  ;;  %v4602_v43 = vcombine.high %v2199_v40, %v2203_v42  ;;  %v2274_v25 = vld [vmem:[%s5997_s22 + $0x270] sm:$0xff]  ;;  %v2271_v26 = vld [vmem:[%s5997_s22 + $0x258] sm:$0xff] }
 0x5b2   : > { %3024 = vmatpush2.bf16.msra.mxu0 %v4659_v47  ;;  %3065 = vmatpush2.bf16.msra.mxu1 %v4661_v48  ;;  %v2323_v47 = vld [vmem:[%s5997_s22 + $0x3f8] sm:$0xff]  ;;  %v4599_v48 = vcombine.low %v2198_v37, %v2202_v38  ;;  %v2262_v38 = vld [vmem:[%s5997_s22 + $0x210] sm:$0xff] }
 0x5b3   : > { %3075 = vmatprep.subr.bf16.mxu0 %v4656_v12  ;;  %3116 = vmatprep.subr.bf16.mxu1 %v4658_v49  ;;  %v4601_v12 = vcombine.low %v2199_v40, %v2203_v42  ;;  %v4720_v49 = vcombine.high %v2318_v44, %v2322_v45  ;;  %v4722_v3 = vcombine.high %v2319_v46, %v2323_v47  ;;  %v2266_v40 = vld [vmem:[%s5997_s22 + $0x230] sm:$0xff]  ;;  %v2263_v42 = vld [vmem:[%s5997_s22 + $0x218] sm:$0xff] }
 0x5b5   : > { %3026 = vmatmul.mubr.bf16.vlgmr.msra.gmra.mxu0 %v6204_v51  ;;  %3067 = vmatmul.mubr.bf16.vlgmr.msra.gmra.mxu1 %v6204_v51 }
 0x5b6   : > { %3076 = vmatpush1.bf16.msra.mxu0 %v4655_v21  ;;  %3117 = vmatpush1.bf16.msra.mxu1 %v4657_v52  ;;  %v2315_v21 = vld [vmem:[%s5997_s22 + $0x3b8] sm:$0xff]  ;;  %v4719_v52 = vcombine.low %v2318_v44, %v2322_v45  ;;  %v2124_v45 = vld [vmem:[%s5984_s27 + $0x1c0] sm:$0xff] }
 0x5b7   : > { %3077 = vmatprep.subr.bf16.mxu0 %v4648_v53  ;;  %3118 = vmatprep.subr.bf16.mxu1 %v4650_v54  ;;  %v4721_v53 = vcombine.low %v2319_v46, %v2323_v47  ;;  %v4712_v54 = vcombine.high %v2310_v13, %v2314_v14  ;;  %v4714_v10 = vcombine.high %v2311_v33, %v2315_v21  ;;  %v2128_v46 = vld [vmem:[%s5984_s27 + $0x1e0] sm:$0xff]  ;;  %v2125_v47 = vld [vmem:[%s5984_s27 + $0x1c8] sm:$0xff] }
 0x5b8   : > { %3107 = vmatprep.mubr.bf16.mxu0 %v6160_v39  ;;  %3148 = vmatprep.mubr.bf16.mxu1 %v6160_v39  ;;  %v4633_v39 = vcombine.low %v2231_v61, %v2235_v62  ;;  %v2298_v61 = vld [vmem:[%s5997_s22 + $0x330] sm:$0xff]  ;;  %v2295_v62 = vld [vmem:[%s5997_s22 + $0x318] sm:$0xff] }
 0x5ba   : > { %3078 = vmatpush1.bf16.msra.mxu0 %v4647_v56  ;;  %3119 = vmatpush1.bf16.msra.mxu1 %v4649_v36  ;;  %v2307_v56 = vld [vmem:[%s5997_s22 + $0x378] sm:$0xff]  ;;  %v4711_v36 = vcombine.low %v2310_v13, %v2314_v14  ;;  %v4780_v13 = vcombine.high %v2124_v45, %v2128_v46 }
 0x5bb   : > { %3079 = vmatprep.subr.bf16.mxu0 %v4640_v57  ;;  %3120 = vmatprep.subr.bf16.mxu1 %v4642_v58  ;;  %v4713_v57 = vcombine.low %v2311_v33, %v2315_v21  ;;  %v4704_v58 = vcombine.high %v2302_v19, %v2306_v34  ;;  %v4706_v59 = vcombine.high %v2303_v55, %v2307_v56  ;;  %v2116_v33 = vld [vmem:[%s5984_s27 + $0x180] sm:$0xff] }
 0x5bc   : > { %v2120_v21 = vld [vmem:[%s5984_s27 + $0x1a0] sm:$0xff] }
 0x5be   : > { %3080 = vmatpush1.bf16.msra.mxu0 %v4639_v63  ;;  %3121 = vmatpush1.bf16.msra.mxu1 %v4641_v0  ;;  %v2299_v63 = vld [vmem:[%s5997_s22 + $0x338] sm:$0xff]  ;;  %v4703_v0 = vcombine.low %v2302_v19, %v2306_v34  ;;  %v4772_v34 = vcombine.high %v2116_v33, %v2120_v21 }
 0x5bf   : > { %3081 = vmatprep.subr.bf16.mxu0 %v4632_v2  ;;  %3122 = vmatprep.subr.bf16.mxu1 %v4634_v5  ;;  %v4705_v2 = vcombine.low %v2303_v55, %v2307_v56  ;;  %v4696_v5 = vcombine.high %v2294_v60, %v2298_v61  ;;  %v4698_v6 = vcombine.high %v2295_v62, %v2299_v63  ;;  %v2108_v56 = vld [vmem:[%s5984_s27 + $0x140] sm:$0xff] }
 0x5c2   : > { %3082 = vmatpush1.bf16.msra.mxu0 %v4631_v17  ;;  %3123 = vmatpush1.bf16.msra.mxu1 %v4633_v39  ;;  %v2291_v17 = vld [vmem:[%s5997_s22 + $0x2f8] sm:$0xff]  ;;  %v4695_v39 = vcombine.low %v2294_v60, %v2298_v61  ;;  %v4771_v60 = vcombine.low %v2116_v33, %v2120_v21 }
 0x5c3   : > { %3083 = vmatprep.subr.bf16.mxu0 %v4624_v18  ;;  %3124 = vmatprep.subr.bf16.mxu1 %v4626_v20  ;;  %v4697_v18 = vcombine.low %v2295_v62, %v2299_v63  ;;  %v4688_v20 = vcombine.high %v2286_v7, %v2290_v15  ;;  %v4690_v22 = vcombine.high %v2287_v16, %v2291_v17 }
 0x5c6   : > { %3084 = vmatpush1.bf16.msra.mxu0 %v4623_v35  ;;  %3125 = vmatpush1.bf16.msra.mxu1 %v4625_v27  ;;  %v2283_v35 = vld [vmem:[%s5997_s22 + $0x2b8] sm:$0xff]  ;;  %v4687_v27 = vcombine.low %v2286_v7, %v2290_v15 }
 0x5c7   : > { %3085 = vmatprep.subr.bf16.mxu0 %v4616_v41  ;;  %3126 = vmatprep.subr.bf16.mxu1 %v4618_v28  ;;  %v4689_v41 = vcombine.low %v2287_v16, %v2291_v17  ;;  %v4680_v28 = vcombine.high %v2278_v23, %v2282_v1  ;;  %v4682_v50 = vcombine.high %v2279_v24, %v2283_v35  ;;  %v2092_v17 = vld [vmem:[%s5984_s27 + $0xc0] sm:$0xff] }
 0x5ca   : > { %3086 = vmatpush1.bf16.msra.mxu0 %v4615_v29  ;;  %3127 = vmatpush1.bf16.msra.mxu1 %v4617_v30  ;;  %v2275_v29 = vld [vmem:[%s5997_s22 + $0x278] sm:$0xff]  ;;  %v4679_v30 = vcombine.low %v2278_v23, %v2282_v1 }
 0x5cb   : > { %3087 = vmatprep.subr.bf16.mxu0 %v4608_v31  ;;  %3128 = vmatprep.subr.bf16.mxu1 %v4610_v32  ;;  %v4681_v31 = vcombine.low %v2279_v24, %v2283_v35  ;;  %v4672_v32 = vcombine.high %v2270_v4, %v2274_v25  ;;  %v4674_v37 = vcombine.high %v2271_v26, %v2275_v29  ;;  %v2084_v35 = vld [vmem:[%s5984_s27 + $0x80] sm:$0xff] }
 0x5ce   : > { %3088 = vmatpush1.bf16.msra.mxu0 %v4607_v8  ;;  %3129 = vmatpush1.bf16.msra.mxu1 %v4609_v9  ;;  %v2267_v8 = vld [vmem:[%s5997_s22 + $0x238] sm:$0xff]  ;;  %v4671_v9 = vcombine.low %v2270_v4, %v2274_v25  ;;  %s6467_s22 = scalar_lea.hbm %s6662_s19, %s4876_s13 }
 0x5cf   : > { %3089 = vmatprep.subr.bf16.mxu0 %v4600_v11  ;;  %3130 = vmatprep.subr.bf16.mxu1 %v4602_v43  ;;  %v4673_v11 = vcombine.low %v2271_v26, %v2275_v29  ;;  %v4664_v43 = vcombine.high %v2262_v38, %v2266_v40  ;;  %v4666_v44 = vcombine.high %v2263_v42, %v2267_v8  ;;  %v2076_v29 = vld [vmem:[%s5984_s27 + $0x40] sm:$0xff] }
 0x5d2   : > { %3090 = vmatpush1.bf16.msra.mxu0 %v4599_v48  ;;  %3131 = vmatpush1.bf16.msra.mxu1 %v4601_v12  ;;  %v2129_v48 = vld [vmem:[%s5984_s27 + $0x1e8] sm:$0xff]  ;;  %v6272_v12 = vld.sshfl [vmem:[#allocation2] sm:$0x33 pattern:$0x76325410] }
 0x5d3   : > { %3091 = vmatprep.subr.bf16.mxu0 %v4720_v49  ;;  %3132 = vmatprep.subr.bf16.mxu1 %v4722_v3  ;;  %v4663_v49 = vcombine.low %v2262_v38, %v2266_v40  ;;  %v4665_v3 = vcombine.low %v2263_v42, %v2267_v8  ;;  %v4782_v14 = vcombine.high %v2125_v47, %v2129_v48  ;;  %v2068_v8 = vld [vmem:[%s5984_s27] sm:$0xff] }
 0x5d4   : > { %v4781_v19 = vcombine.low %v2125_v47, %v2129_v48  ;;  %v2188_v48 = vld [vmem:[%s5984_s27 + $0x3c0] sm:$0xff] }
 0x5d6   : > { %3092 = vmatpush2.bf16.msra.mxu0 %v4719_v52  ;;  %3133 = vmatpush2.bf16.msra.mxu1 %v4721_v53  ;;  %v2335_v52 = vcombine.high %v6272_v12, %v6272_v12  ;;  %v2117_v53 = vld [vmem:[%s5984_s27 + $0x188] sm:$0xff] }
 0x5d7   : > { %3093 = vmatprep.subr.bf16.mxu0 %v4712_v54  ;;  %3134 = vmatprep.subr.bf16.mxu1 %v4714_v10  ;;  %v2121_v54 = vld [vmem:[%s5984_s27 + $0x1a8] sm:$0xff]  ;;  %v4779_v10 = vcombine.low %v2124_v45, %v2128_v46 }
 0x5d8   : > { %v4774_v55 = vcombine.high %v2117_v53, %v2121_v54  ;;  %v4773_v61 = vcombine.low %v2117_v53, %v2121_v54  ;;  %v2180_v53 = vld [vmem:[%s5984_s27 + $0x380] sm:$0xff] }
 0x5d9   : > { %v2184_v54 = vld [vmem:[%s5984_s27 + $0x3a0] sm:$0xff] }
 0x5da   : > { %3094 = vmatpush2.bf16.msra.mxu0 %v4711_v36  ;;  %3135 = vmatpush2.bf16.msra.mxu1 %v4713_v57  ;;  %v2112_v36 = vld [vmem:[%s5984_s27 + $0x160] sm:$0xff]  ;;  %v6282_v57 = vpack.c.bf16 %v2335_v52, %v2335_v52 }
 0x5db   : > { %3095 = vmatprep.subr.bf16.mxu0 %v4704_v58  ;;  %3136 = vmatprep.subr.bf16.mxu1 %v4706_v59  ;;  %v2109_v58 = vld [vmem:[%s5984_s27 + $0x148] sm:$0xff]  ;;  %v4764_v62 = vcombine.high %v2108_v56, %v2112_v36 }
 0x5dc   : > { %v2113_v59 = vld [vmem:[%s5984_s27 + $0x168] sm:$0xff] }
 0x5dd   : > { %v4766_v63 = vcombine.high %v2109_v58, %v2113_v59  ;;  %v4765_v7 = vcombine.low %v2109_v58, %v2113_v59  ;;  %v2172_v58 = vld [vmem:[%s5984_s27 + $0x340] sm:$0xff] }
 0x5de   : > { %3096 = vmatpush2.bf16.msra.mxu0 %v4703_v0  ;;  %3137 = vmatpush2.bf16.msra.mxu1 %v4705_v2  ;;  %v2100_v0 = vld [vmem:[%s5984_s27 + $0x100] sm:$0xff] }
 0x5df   : > { %3097 = vmatprep.subr.bf16.mxu0 %v4696_v5  ;;  %3138 = vmatprep.subr.bf16.mxu1 %v4698_v6  ;;  %v2104_v2 = vld [vmem:[%s5984_s27 + $0x120] sm:$0xff]  ;;  %v2101_v5 = vld [vmem:[%s5984_s27 + $0x108] sm:$0xff] }
 0x5e0   : > { %v2105_v6 = vld [vmem:[%s5984_s27 + $0x128] sm:$0xff]  ;;  %v4756_v15 = vcombine.high %v2100_v0, %v2104_v2  ;;  %v2176_v59 = vld [vmem:[%s5984_s27 + $0x360] sm:$0xff] }
 0x5e1   : > { %v4758_v16 = vcombine.high %v2101_v5, %v2105_v6  ;;  %v4757_v23 = vcombine.low %v2101_v5, %v2105_v6  ;;  %v2164_v5 = vld [vmem:[%s5984_s27 + $0x300] sm:$0xff] }
 0x5e2   : > { %3098 = vmatpush2.bf16.msra.mxu0 %v4695_v39  ;;  %3139 = vmatpush2.bf16.msra.mxu1 %v4697_v18  ;;  %v2096_v39 = vld [vmem:[%s5984_s27 + $0xe0] sm:$0xff]  ;;  %v2093_v18 = vld [vmem:[%s5984_s27 + $0xc8] sm:$0xff] }
 0x5e3   : > { %3099 = vmatprep.subr.bf16.mxu0 %v4688_v20  ;;  %3140 = vmatprep.subr.bf16.mxu1 %v4690_v22  ;;  %v2097_v20 = vld [vmem:[%s5984_s27 + $0xe8] sm:$0xff]  ;;  %v4755_v22 = vcombine.low %v2100_v0, %v2104_v2  ;;  %v4748_v1 = vcombine.high %v2092_v17, %v2096_v39  ;;  %v4828_v0 = vcombine.high %v2172_v58, %v2176_v59  ;;  %v2168_v6 = vld [vmem:[%s5984_s27 + $0x320] sm:$0xff] }
 0x5e4   : > { %v4750_v24 = vcombine.high %v2093_v18, %v2097_v20  ;;  %v4749_v4 = vcombine.low %v2093_v18, %v2097_v20  ;;  %v2156_v18 = vld [vmem:[%s5984_s27 + $0x2c0] sm:$0xff] }
 0x5e5   : > { %v2160_v20 = vld [vmem:[%s5984_s27 + $0x2e0] sm:$0xff] }
 0x5e6   : > { %3100 = vmatpush2.bf16.msra.mxu0 %v4687_v27  ;;  %3141 = vmatpush2.bf16.msra.mxu1 %v4689_v41  ;;  %v2088_v27 = vld [vmem:[%s5984_s27 + $0xa0] sm:$0xff]  ;;  %v2085_v41 = vld [vmem:[%s5984_s27 + $0x88] sm:$0xff] }
 0x5e7   : > { %3101 = vmatprep.subr.bf16.mxu0 %v4680_v28  ;;  %3142 = vmatprep.subr.bf16.mxu1 %v4682_v50  ;;  %v2089_v28 = vld [vmem:[%s5984_s27 + $0xa8] sm:$0xff]  ;;  %v4747_v50 = vcombine.low %v2092_v17, %v2096_v39  ;;  %v4740_v25 = vcombine.high %v2084_v35, %v2088_v27  ;;  %v4820_v17 = vcombine.high %v2164_v5, %v2168_v6 }
 0x5e8   : > { %v4742_v26 = vcombine.high %v2085_v41, %v2089_v28  ;;  %v4741_v38 = vcombine.low %v2085_v41, %v2089_v28  ;;  %v2148_v41 = vld [vmem:[%s5984_s27 + $0x280] sm:$0xff] }
 0x5e9   : > { %v2152_v28 = vld [vmem:[%s5984_s27 + $0x2a0] sm:$0xff] }
 0x5ea   : > { %3102 = vmatpush2.bf16.msra.mxu0 %v4679_v30  ;;  %3143 = vmatpush2.bf16.msra.mxu1 %v4681_v31  ;;  %v2080_v30 = vld [vmem:[%s5984_s27 + $0x60] sm:$0xff]  ;;  %v2077_v31 = vld [vmem:[%s5984_s27 + $0x48] sm:$0xff] }
 0x5eb   : > { %3103 = vmatprep.subr.bf16.mxu0 %v4672_v32  ;;  %3144 = vmatprep.subr.bf16.mxu1 %v4674_v37  ;;  %v2081_v32 = vld [vmem:[%s5984_s27 + $0x68] sm:$0xff]  ;;  %v4739_v37 = vcombine.low %v2084_v35, %v2088_v27  ;;  %v4732_v40 = vcombine.high %v2076_v29, %v2080_v30  ;;  %v4812_v35 = vcombine.high %v2156_v18, %v2160_v20 }
 0x5ec   : > { %v4734_v42 = vcombine.high %v2077_v31, %v2081_v32  ;;  %v4733_v45 = vcombine.low %v2077_v31, %v2081_v32  ;;  %v2140_v31 = vld [vmem:[%s5984_s27 + $0x240] sm:$0xff] }
 0x5ed   : > { %v2144_v32 = vld [vmem:[%s5984_s27 + $0x260] sm:$0xff] }
 0x5ee   : > { %3104 = vmatpush2.bf16.msra.mxu0 %v4671_v9  ;;  %3145 = vmatpush2.bf16.msra.mxu1 %v4673_v11  ;;  %v2072_v9 = vld [vmem:[%s5984_s27 + $0x20] sm:$0xff]  ;;  %v2069_v11 = vld [vmem:[%s5984_s27 + $0x8] sm:$0xff] }
 0x5ef   : > { %3105 = vmatprep.subr.bf16.mxu0 %v4664_v43  ;;  %3146 = vmatprep.subr.bf16.mxu1 %v4666_v44  ;;  %v2073_v43 = vld [vmem:[%s5984_s27 + $0x28] sm:$0xff]  ;;  %v4731_v44 = vcombine.low %v2076_v29, %v2080_v30  ;;  %v4724_v46 = vcombine.high %v2068_v8, %v2072_v9  ;;  %v4804_v29 = vcombine.high %v2148_v41, %v2152_v28 }
 0x5f0   : > { %v4726_v47 = vcombine.high %v2069_v11, %v2073_v43  ;;  %v4725_v33 = vcombine.low %v2069_v11, %v2073_v43  ;;  %v2132_v11 = vld [vmem:[%s5984_s27 + $0x200] sm:$0xff] }
 0x5f1   : > { %v2136_v43 = vld [vmem:[%s5984_s27 + $0x220] sm:$0xff] }
 0x5f2   : > { %3106 = vmatpush2.bf16.msra.mxu0 %v4663_v49  ;;  %3147 = vmatpush2.bf16.msra.mxu1 %v4665_v3  ;;  %v2192_v49 = vld [vmem:[%s5984_s27 + $0x3e0] sm:$0xff]  ;;  %v2189_v3 = vld [vmem:[%s5984_s27 + $0x3c8] sm:$0xff] }
 0x5f3   : > { %3797 = vmatprep.subr.bf16.mxu0 %v4780_v13  ;;  %3838 = vmatprep.subr.bf16.mxu1 %v4782_v14  ;;  %v2193_v13 = vld [vmem:[%s5984_s27 + $0x3e8] sm:$0xff]  ;;  %v4723_v14 = vcombine.low %v2068_v8, %v2072_v9  ;;  %v4844_v21 = vcombine.high %v2188_v48, %v2192_v49  ;;  %v4796_v8 = vcombine.high %v2140_v31, %v2144_v32 }
 0x5f4   : > { %v4846_v52 = vcombine.high %v2189_v3, %v2193_v13 }
 0x5f5   : > { %3108 = vmatmul.mubr.bf16.vlgmr.msra.gmra.mxu0 %v6204_v51  ;;  %3149 = vmatmul.mubr.bf16.vlgmr.msra.gmra.mxu1 %v6204_v51  ;;  %v4763_v51 = vcombine.low %v2108_v56, %v2112_v36  ;;  %v4836_v56 = vcombine.high %v2180_v53, %v2184_v54 }
 0x5f6   : > { %3798 = vmatpush1.bf16.msra.mxu0 %v4779_v10  ;;  %3839 = vmatpush1.bf16.msra.mxu1 %v4781_v19  ;;  %v2181_v10 = vld [vmem:[%s5984_s27 + $0x388] sm:$0xff] }
 0x5f7   : > { %3799 = vmatprep.subr.bf16.mxu0 %v4772_v34  ;;  %3840 = vmatprep.subr.bf16.mxu1 %v4774_v55  ;;  %v2185_v19 = vld [vmem:[%s5984_s27 + $0x3a8] sm:$0xff]  ;;  %v4843_v34 = vcombine.low %v2188_v48, %v2192_v49  ;;  %v4845_v55 = vcombine.low %v2189_v3, %v2193_v13  ;;  %v4788_v48 = vcombine.high %v2132_v11, %v2136_v43  ;;  %v2126_v3 = vld [vmem:[%s5984_s27 + $0x1d0] sm:$0xff] }
 0x5f8   : > { %3829 = vmatprep.mubr.bf16.mxu0 %v6282_v57  ;;  %3870 = vmatprep.mubr.bf16.mxu1 %v6282_v57  ;;  %v4838_v36 = vcombine.high %v2181_v10, %v2185_v19  ;;  %v2130_v13 = vld [vmem:[%s5984_s27 + $0x1f0] sm:$0xff] }
 0x5fa   : > { %3800 = vmatpush1.bf16.msra.mxu0 %v4771_v60  ;;  %3841 = vmatpush1.bf16.msra.mxu1 %v4773_v61  ;;  %v2173_v60 = vld [vmem:[%s5984_s27 + $0x348] sm:$0xff] }
 0x5fb   : > { %3801 = vmatprep.subr.bf16.mxu0 %v4764_v62  ;;  %3842 = vmatprep.subr.bf16.mxu1 %v4766_v63  ;;  %v2177_v61 = vld [vmem:[%s5984_s27 + $0x368] sm:$0xff]  ;;  %v4835_v62 = vcombine.low %v2180_v53, %v2184_v54  ;;  %v4837_v63 = vcombine.low %v2181_v10, %v2185_v19  ;;  %v4784_v53 = vcombine.high %v2126_v3, %v2130_v13  ;;  %v2118_v10 = vld [vmem:[%s5984_s27 + $0x190] sm:$0xff] }
 0x5fc   : > { %v4830_v2 = vcombine.high %v2173_v60, %v2177_v61  ;;  %v2122_v19 = vld [vmem:[%s5984_s27 + $0x1b0] sm:$0xff] }
 0x5fe   : > { %3802 = vmatpush1.bf16.msra.mxu0 %v4763_v51  ;;  %3843 = vmatpush1.bf16.msra.mxu1 %v4765_v7  ;;  %v2165_v51 = vld [vmem:[%s5984_s27 + $0x308] sm:$0xff] }
 0x5ff   : > { %3803 = vmatprep.subr.bf16.mxu0 %v4756_v15  ;;  %3844 = vmatprep.subr.bf16.mxu1 %v4758_v16  ;;  %v2169_v7 = vld [vmem:[%s5984_s27 + $0x328] sm:$0xff]  ;;  %v4827_v15 = vcombine.low %v2172_v58, %v2176_v59  ;;  %v4829_v16 = vcombine.low %v2173_v60, %v2177_v61  ;;  %v4776_v59 = vcombine.high %v2118_v10, %v2122_v19  ;;  %v2110_v61 = vld [vmem:[%s5984_s27 + $0x150] sm:$0xff] }
 0x600   : > { %v4822_v39 = vcombine.high %v2165_v51, %v2169_v7 }
 0x602   : > { %3804 = vmatpush1.bf16.msra.mxu0 %v4755_v22  ;;  %3845 = vmatpush1.bf16.msra.mxu1 %v4757_v23  ;;  %v2157_v22 = vld [vmem:[%s5984_s27 + $0x2c8] sm:$0xff] }
 0x603   : > { %3805 = vmatprep.subr.bf16.mxu0 %v4748_v1  ;;  %3846 = vmatprep.subr.bf16.mxu1 %v4750_v24  ;;  %v2161_v23 = vld [vmem:[%s5984_s27 + $0x2e8] sm:$0xff]  ;;  %v4819_v1 = vcombine.low %v2164_v5, %v2168_v6  ;;  %v4821_v24 = vcombine.low %v2165_v51, %v2169_v7  ;;  %v2102_v51 = vld [vmem:[%s5984_s27 + $0x110] sm:$0xff] }
 0x604   : > { %v4814_v27 = vcombine.high %v2157_v22, %v2161_v23  ;;  %v2106_v7 = vld [vmem:[%s5984_s27 + $0x130] sm:$0xff] }
 0x606   : > { %3806 = vmatpush1.bf16.msra.mxu0 %v4747_v50  ;;  %3847 = vmatpush1.bf16.msra.mxu1 %v4749_v4  ;;  %v2149_v50 = vld [vmem:[%s5984_s27 + $0x288] sm:$0xff] }
 0x607   : > { %3807 = vmatprep.subr.bf16.mxu0 %v4740_v25  ;;  %3848 = vmatprep.subr.bf16.mxu1 %v4742_v26  ;;  %v2153_v4 = vld [vmem:[%s5984_s27 + $0x2a8] sm:$0xff]  ;;  %v4811_v25 = vcombine.low %v2156_v18, %v2160_v20  ;;  %v4813_v26 = vcombine.low %v2157_v22, %v2161_v23  ;;  %v4760_v18 = vcombine.high %v2102_v51, %v2106_v7  ;;  %v2094_v22 = vld [vmem:[%s5984_s27 + $0xd0] sm:$0xff] }
 0x608   : > { %v4806_v30 = vcombine.high %v2149_v50, %v2153_v4  ;;  %v2098_v23 = vld [vmem:[%s5984_s27 + $0xf0] sm:$0xff] }
 0x60a   : > { %3808 = vmatpush1.bf16.msra.mxu0 %v4739_v37  ;;  %3849 = vmatpush1.bf16.msra.mxu1 %v4741_v38  ;;  %v2141_v37 = vld [vmem:[%s5984_s27 + $0x248] sm:$0xff] }
 0x60b   : > { %3809 = vmatprep.subr.bf16.mxu0 %v4732_v40  ;;  %3850 = vmatprep.subr.bf16.mxu1 %v4734_v42  ;;  %v2145_v38 = vld [vmem:[%s5984_s27 + $0x268] sm:$0xff]  ;;  %v4803_v40 = vcombine.low %v2148_v41, %v2152_v28  ;;  %v4805_v42 = vcombine.low %v2149_v50, %v2153_v4  ;;  %v2086_v28 = vld [vmem:[%s5984_s27 + $0x90] sm:$0xff]  ;;  %v2087_v4 = vld [vmem:[%s5984_s27 + $0x98] sm:$0xff] }
 0x60c   : > { %v4798_v9 = vcombine.high %v2141_v37, %v2145_v38  ;;  %v2090_v50 = vld [vmem:[%s5984_s27 + $0xb0] sm:$0xff] }
 0x60e   : > { %3810 = vmatpush1.bf16.msra.mxu0 %v4731_v44  ;;  %3851 = vmatpush1.bf16.msra.mxu1 %v4733_v45  ;;  %v2133_v44 = vld [vmem:[%s5984_s27 + $0x208] sm:$0xff] }
 0x60f   : > { %3811 = vmatprep.subr.bf16.mxu0 %v4724_v46  ;;  %3852 = vmatprep.subr.bf16.mxu1 %v4726_v47  ;;  %v2137_v45 = vld [vmem:[%s5984_s27 + $0x228] sm:$0xff]  ;;  %v4795_v46 = vcombine.low %v2140_v31, %v2144_v32  ;;  %v4797_v47 = vcombine.low %v2141_v37, %v2145_v38  ;;  %v2078_v32 = vld [vmem:[%s5984_s27 + $0x50] sm:$0xff]  ;;  %v2079_v38 = vld [vmem:[%s5984_s27 + $0x58] sm:$0xff] }
 0x610   : > { %v4790_v49 = vcombine.high %v2133_v44, %v2137_v45  ;;  %v2082_v37 = vld [vmem:[%s5984_s27 + $0x70] sm:$0xff] }
 0x612   : > { %3812 = vmatpush1.bf16.msra.mxu0 %v4723_v14  ;;  %3853 = vmatpush1.bf16.msra.mxu1 %v4725_v33  ;;  %v2127_v14 = vld [vmem:[%s5984_s27 + $0x1d8] sm:$0xff] }
 0x613   : > { %3813 = vmatprep.subr.bf16.mxu0 %v4844_v21  ;;  %3854 = vmatprep.subr.bf16.mxu1 %v4846_v52  ;;  %v2131_v33 = vld [vmem:[%s5984_s27 + $0x1f8] sm:$0xff]  ;;  %v4787_v21 = vcombine.low %v2132_v11, %v2136_v43  ;;  %v4789_v52 = vcombine.low %v2133_v44, %v2137_v45  ;;  %v2070_v43 = vld [vmem:[%s5984_s27 + $0x10] sm:$0xff] }
 0x614   : > { %v4786_v54 = vcombine.high %v2127_v14, %v2131_v33  ;;  %v4785_v58 = vcombine.low %v2127_v14, %v2131_v33  ;;  %v2074_v44 = vld [vmem:[%s5984_s27 + $0x30] sm:$0xff]  ;;  %v2071_v45 = vld [vmem:[%s5984_s27 + $0x18] sm:$0xff] }
 0x615   : > { %v2194_v14 = vld [vmem:[%s5984_s27 + $0x3f0] sm:$0xff]  ;;  %v2191_v33 = vld [vmem:[%s5984_s27 + $0x3d8] sm:$0xff] }
 0x616   : > { %3814 = vmatpush2.bf16.msra.mxu0 %v4843_v34  ;;  %3855 = vmatpush2.bf16.msra.mxu1 %v4845_v55  ;;  %v6350_v34 = vpack.c.bf16 %v6272_v12, %v6272_v12  ;;  %v2119_v55 = vld [vmem:[%s5984_s27 + $0x198] sm:$0xff] }
 0x617   : > { %3815 = vmatprep.subr.bf16.mxu0 %v4836_v56  ;;  %3856 = vmatprep.subr.bf16.mxu1 %v4838_v36  ;;  %v2123_v56 = vld [vmem:[%s5984_s27 + $0x1b8] sm:$0xff]  ;;  %v4783_v36 = vcombine.low %v2126_v3, %v2130_v13  ;;  %v2190_v13 = vld [vmem:[%s5984_s27 + $0x3d0] sm:$0xff] }
 0x618   : > { %v4778_v60 = vcombine.high %v2119_v55, %v2123_v56  ;;  %v2111_v12 = vld [vmem:[%s5984_s27 + $0x158] sm:$0xff] }
 0x61a   : > { %3816 = vmatpush2.bf16.msra.mxu0 %v4835_v62  ;;  %3857 = vmatpush2.bf16.msra.mxu1 %v4837_v63  ;;  %v2114_v62 = vld [vmem:[%s5984_s27 + $0x170] sm:$0xff]  ;;  %v2115_v63 = vld [vmem:[%s5984_s27 + $0x178] sm:$0xff] }
 0x61b   : > { %3817 = vmatprep.subr.bf16.mxu0 %v4828_v0  ;;  %3858 = vmatprep.subr.bf16.mxu1 %v4830_v2  ;;  %v4775_v0 = vcombine.low %v2118_v10, %v2122_v19  ;;  %v4777_v2 = vcombine.low %v2119_v55, %v2123_v56  ;;  %v4768_v5 = vcombine.high %v2110_v61, %v2114_v62  ;;  %v2182_v19 = vld [vmem:[%s5984_s27 + $0x390] sm:$0xff]  ;;  %v2183_v56 = vld [vmem:[%s5984_s27 + $0x398] sm:$0xff] }
 0x61c   : > { %v4770_v6 = vcombine.high %v2111_v12, %v2115_v63  ;;  %v2186_v55 = vld [vmem:[%s5984_s27 + $0x3b0] sm:$0xff] }
 0x61e   : > { %3818 = vmatpush2.bf16.msra.mxu0 %v4827_v15  ;;  %3859 = vmatpush2.bf16.msra.mxu1 %v4829_v16  ;;  %v2103_v15 = vld [vmem:[%s5984_s27 + $0x118] sm:$0xff] }
 0x61f   : > { %3819 = vmatprep.subr.bf16.mxu0 %v4820_v17  ;;  %3860 = vmatprep.subr.bf16.mxu1 %v4822_v39  ;;  %v2107_v16 = vld [vmem:[%s5984_s27 + $0x138] sm:$0xff]  ;;  %v4767_v17 = vcombine.low %v2110_v61, %v2114_v62  ;;  %v4769_v39 = vcombine.low %v2111_v12, %v2115_v63  ;;  %v2174_v62 = vld [vmem:[%s5984_s27 + $0x350] sm:$0xff] }
 0x620   : > { %v4762_v20 = vcombine.high %v2103_v15, %v2107_v16  ;;  %v2178_v12 = vld [vmem:[%s5984_s27 + $0x370] sm:$0xff]  ;;  %v2175_v63 = vld [vmem:[%s5984_s27 + $0x358] sm:$0xff] }
 0x622   : > { %3820 = vmatpush2.bf16.msra.mxu0 %v4819_v1  ;;  %3861 = vmatpush2.bf16.msra.mxu1 %v4821_v24  ;;  %v2095_v1 = vld [vmem:[%s5984_s27 + $0xd8] sm:$0xff] }
 0x623   : > { %3821 = vmatprep.subr.bf16.mxu0 %v4812_v35  ;;  %3862 = vmatprep.subr.bf16.mxu1 %v4814_v27  ;;  %v2099_v24 = vld [vmem:[%s5984_s27 + $0xf8] sm:$0xff]  ;;  %v4759_v35 = vcombine.low %v2102_v51, %v2106_v7  ;;  %v4752_v27 = vcombine.high %v2094_v22, %v2098_v23  ;;  %v2166_v7 = vld [vmem:[%s5984_s27 + $0x310] sm:$0xff] }
 0x624   : > { %v4754_v41 = vcombine.high %v2095_v1, %v2099_v24 }
 0x626   : > { %3822 = vmatpush2.bf16.msra.mxu0 %v4811_v25  ;;  %3863 = vmatpush2.bf16.msra.mxu1 %v4813_v26  ;;  %v2091_v25 = vld [vmem:[%s5984_s27 + $0xb8] sm:$0xff]  ;;  %v4751_v26 = vcombine.low %v2094_v22, %v2098_v23  ;;  %v2158_v23 = vld [vmem:[%s5984_s27 + $0x2d0] sm:$0xff] }
 0x627   : > { %3823 = vmatprep.subr.bf16.mxu0 %v4804_v29  ;;  %3864 = vmatprep.subr.bf16.mxu1 %v4806_v30  ;;  %v4753_v29 = vcombine.low %v2095_v1, %v2099_v24  ;;  %v4744_v30 = vcombine.high %v2086_v28, %v2090_v50  ;;  %v4746_v31 = vcombine.high %v2087_v4, %v2091_v25  ;;  %v2162_v1 = vld [vmem:[%s5984_s27 + $0x2f0] sm:$0xff]  ;;  %v2159_v24 = vld [vmem:[%s5984_s27 + $0x2d8] sm:$0xff] }
 0x62a   : > { %3824 = vmatpush2.bf16.msra.mxu0 %v4803_v40  ;;  %3865 = vmatpush2.bf16.msra.mxu1 %v4805_v42  ;;  %v2083_v40 = vld [vmem:[%s5984_s27 + $0x78] sm:$0xff]  ;;  %v4743_v42 = vcombine.low %v2086_v28, %v2090_v50  ;;  %v2150_v50 = vld [vmem:[%s5984_s27 + $0x290] sm:$0xff] }
 0x62b   : > { %3825 = vmatprep.subr.bf16.mxu0 %v4796_v8  ;;  %3866 = vmatprep.subr.bf16.mxu1 %v4798_v9  ;;  %v4745_v8 = vcombine.low %v2087_v4, %v2091_v25  ;;  %v4736_v9 = vcombine.high %v2078_v32, %v2082_v37  ;;  %v4738_v11 = vcombine.high %v2079_v38, %v2083_v40  ;;  %v2154_v4 = vld [vmem:[%s5984_s27 + $0x2b0] sm:$0xff]  ;;  %v2151_v25 = vld [vmem:[%s5984_s27 + $0x298] sm:$0xff] }
 0x62e   : > { %3826 = vmatpush2.bf16.msra.mxu0 %v4795_v46  ;;  %3867 = vmatpush2.bf16.msra.mxu1 %v4797_v47  ;;  %v2075_v46 = vld [vmem:[%s5984_s27 + $0x38] sm:$0xff]  ;;  %v4735_v47 = vcombine.low %v2078_v32, %v2082_v37  ;;  %v2142_v37 = vld [vmem:[%s5984_s27 + $0x250] sm:$0xff] }
 0x62f   : > { %3827 = vmatprep.subr.bf16.mxu0 %v4788_v48  ;;  %3868 = vmatprep.subr.bf16.mxu1 %v4790_v49  ;;  %v4737_v48 = vcombine.low %v2079_v38, %v2083_v40  ;;  %v4728_v49 = vcombine.high %v2070_v43, %v2074_v44  ;;  %v4730_v3 = vcombine.high %v2071_v45, %v2075_v46  ;;  %v2146_v38 = vld [vmem:[%s5984_s27 + $0x270] sm:$0xff]  ;;  %v2143_v40 = vld [vmem:[%s5984_s27 + $0x258] sm:$0xff] }
 0x632   : > { %3828 = vmatpush2.bf16.msra.mxu0 %v4787_v21  ;;  %3869 = vmatpush2.bf16.msra.mxu1 %v4789_v52  ;;  %v2195_v21 = vld [vmem:[%s5984_s27 + $0x3f8] sm:$0xff]  ;;  %v4727_v52 = vcombine.low %v2070_v43, %v2074_v44  ;;  %v2134_v44 = vld [vmem:[%s5984_s27 + $0x210] sm:$0xff] }
 0x633   : > { %3879 = vmatprep.subr.bf16.mxu0 %v4784_v53  ;;  %3920 = vmatprep.subr.bf16.mxu1 %v4786_v54  ;;  %v4729_v53 = vcombine.low %v2071_v45, %v2075_v46  ;;  %v4848_v54 = vcombine.high %v2190_v13, %v2194_v14  ;;  %v4850_v10 = vcombine.high %v2191_v33, %v2195_v21  ;;  %v2138_v45 = vld [vmem:[%s5984_s27 + $0x230] sm:$0xff]  ;;  %v2135_v46 = vld [vmem:[%s5984_s27 + $0x218] sm:$0xff] }
 0x635   : > { %3830 = vmatmul.mubr.bf16.vlgmr.msra.gmra.mxu0 %v6350_v34  ;;  %3871 = vmatmul.mubr.bf16.vlgmr.msra.gmra.mxu1 %v6350_v34 }
 0x636   : > { %3880 = vmatpush1.bf16.msra.mxu0 %v4783_v36  ;;  %3921 = vmatpush1.bf16.msra.mxu1 %v4785_v58  ;;  %v2187_v36 = vld [vmem:[%s5984_s27 + $0x3b8] sm:$0xff]  ;;  %v4847_v58 = vcombine.low %v2190_v13, %v2194_v14  ;;  %v4791_v14 = vcombine.low %v2134_v44, %v2138_v45 }
 0x637   : > { %3881 = vmatprep.subr.bf16.mxu0 %v4776_v59  ;;  %3922 = vmatprep.subr.bf16.mxu1 %v4778_v60  ;;  %v4849_v59 = vcombine.low %v2191_v33, %v2195_v21  ;;  %v4840_v60 = vcombine.high %v2182_v19, %v2186_v55  ;;  %v4842_v61 = vcombine.high %v2183_v56, %v2187_v36 }
 0x638   : > { %3911 = vmatprep.mubr.bf16.mxu0 %v6282_v57  ;;  %3952 = vmatprep.mubr.bf16.mxu1 %v6282_v57  ;;  %v4761_v57 = vcombine.low %v2103_v15, %v2107_v16  ;;  %v2170_v15 = vld [vmem:[%s5984_s27 + $0x330] sm:$0xff]  ;;  %v2167_v16 = vld [vmem:[%s5984_s27 + $0x318] sm:$0xff] }
 0x63a   : > { %3882 = vmatpush1.bf16.msra.mxu0 %v4775_v0  ;;  %3923 = vmatpush1.bf16.msra.mxu1 %v4777_v2  ;;  %v2179_v0 = vld [vmem:[%s5984_s27 + $0x378] sm:$0xff]  ;;  %v4839_v2 = vcombine.low %v2182_v19, %v2186_v55 }
 0x63b   : > { %3883 = vmatprep.subr.bf16.mxu0 %v4768_v5  ;;  %3924 = vmatprep.subr.bf16.mxu1 %v4770_v6  ;;  %v4841_v5 = vcombine.low %v2183_v56, %v2187_v36  ;;  %v4832_v6 = vcombine.high %v2174_v62, %v2178_v12  ;;  %v4834_v51 = vcombine.high %v2175_v63, %v2179_v0 }
 0x63e   : > { %3884 = vmatpush1.bf16.msra.mxu0 %v4767_v17  ;;  %3925 = vmatpush1.bf16.msra.mxu1 %v4769_v39  ;;  %v2171_v17 = vld [vmem:[%s5984_s27 + $0x338] sm:$0xff]  ;;  %v4831_v39 = vcombine.low %v2174_v62, %v2178_v12 }
 0x63f   : > { %3885 = vmatprep.subr.bf16.mxu0 %v4760_v18  ;;  %3926 = vmatprep.subr.bf16.mxu1 %v4762_v20  ;;  %v4833_v18 = vcombine.low %v2175_v63, %v2179_v0  ;;  %v4824_v20 = vcombine.high %v2166_v7, %v2170_v15  ;;  %v4826_v22 = vcombine.high %v2167_v16, %v2171_v17 }
 0x642   : > { %3886 = vmatpush1.bf16.msra.mxu0 %v4759_v35  ;;  %3927 = vmatpush1.bf16.msra.mxu1 %v4761_v57  ;;  %v2163_v35 = vld [vmem:[%s5984_s27 + $0x2f8] sm:$0xff]  ;;  %v4823_v57 = vcombine.low %v2166_v7, %v2170_v15 }
 0x643   : > { %3887 = vmatprep.subr.bf16.mxu0 %v4752_v27  ;;  %3928 = vmatprep.subr.bf16.mxu1 %v4754_v41  ;;  %v4825_v27 = vcombine.low %v2167_v16, %v2171_v17  ;;  %v4816_v41 = vcombine.high %v2158_v23, %v2162_v1  ;;  %v4818_v28 = vcombine.high %v2159_v24, %v2163_v35  ;;  %v3962_v16 = vlaneseq }
 0x645   : > { %v6421_v17 = vshrl.u32 %v3962_v16, 7  ;;  %vm6471_vm3 = vcmp.lt.s32.totalorder %v3962_v16, 256 }
 0x646   : > { %3888 = vmatpush1.bf16.msra.mxu0 %v4751_v26  ;;  %3929 = vmatpush1.bf16.msra.mxu1 %v4753_v29  ;;  %v2155_v26 = vld [vmem:[%s5984_s27 + $0x2b8] sm:$0xff]  ;;  %v4815_v29 = vcombine.low %v2158_v23, %v2162_v1 }
 0x647   : > { %3889 = vmatprep.subr.bf16.mxu0 %v4744_v30  ;;  %3930 = vmatprep.subr.bf16.mxu1 %v4746_v31  ;;  %v4817_v30 = vcombine.low %v2159_v24, %v2163_v35  ;;  %v4808_v31 = vcombine.high %v2150_v50, %v2154_v4  ;;  %v4810_v32 = vcombine.high %v2151_v25, %v2155_v26  ;;  %v3968_v24 = vsub.s32 1, %v6421_v17 }
 0x64a   : > { %3890 = vmatpush1.bf16.msra.mxu0 %v4743_v42  ;;  %3931 = vmatpush1.bf16.msra.mxu1 %v4745_v8  ;;  %v2147_v42 = vld [vmem:[%s5984_s27 + $0x278] sm:$0xff]  ;;  %v4807_v8 = vcombine.low %v2150_v50, %v2154_v4 }
 0x64b   : > { %3891 = vmatprep.subr.bf16.mxu0 %v4736_v9  ;;  %3932 = vmatprep.subr.bf16.mxu1 %v4738_v11  ;;  %v4809_v9 = vcombine.low %v2151_v25, %v2155_v26  ;;  %v4800_v11 = vcombine.high %v2142_v37, %v2146_v38  ;;  %v4802_v43 = vcombine.high %v2143_v40, %v2147_v42 }
 0x64e   : > { %3892 = vmatpush1.bf16.msra.mxu0 %v4735_v47  ;;  %3933 = vmatpush1.bf16.msra.mxu1 %v4737_v48  ;;  %v2139_v47 = vld [vmem:[%s5984_s27 + $0x238] sm:$0xff]  ;;  %v4799_v48 = vcombine.low %v2142_v37, %v2146_v38  ;;  %s6659_s27 = sld [smem:[#allocation35_spill]] }
 0x64f   : > { %3893 = vmatprep.subr.bf16.mxu0 %v4728_v49  ;;  %3934 = vmatprep.subr.bf16.mxu1 %v4730_v3  ;;  %v4801_v49 = vcombine.low %v2143_v40, %v2147_v42  ;;  %v4792_v3 = vcombine.high %v2134_v44, %v2138_v45  ;;  %v4794_v13 = vcombine.high %v2135_v46, %v2139_v47  ;;  %v3980_v40 = vsub.s32 4, %v6421_v17 }
 0x650   : > { %v4793_v33 = vcombine.low %v2135_v46, %v2139_v47  ;;  %v3992_v44 = vsub.s32 7, %v6421_v17 }
 0x652   : > { %3894 = vmatpush1.bf16.msra.mxu0 %v4727_v52  ;;  %3935 = vmatpush1.bf16.msra.mxu1 %v4729_v53 }
 0x653   : > { %3895 = vmatprep.subr.bf16.mxu0 %v4848_v54  ;;  %3936 = vmatprep.subr.bf16.mxu1 %v4850_v10 }
 0x654   : > { %p6665_p3 = scmp.ne.s32.totalorder %s6659_s27, 0 }
 0x656   : > { %3896 = vmatpush2.bf16.msra.mxu0 %v4847_v58  ;;  %3937 = vmatpush2.bf16.msra.mxu1 %v4849_v59 }
 0x657   : > { %3897 = vmatprep.subr.bf16.mxu0 %v4840_v60  ;;  %3938 = vmatprep.subr.bf16.mxu1 %v4842_v61 }
 0x65a   : > { %3898 = vmatpush2.bf16.msra.mxu0 %v4839_v2  ;;  %3939 = vmatpush2.bf16.msra.mxu1 %v4841_v5 }
 0x65b   : > { %3899 = vmatprep.subr.bf16.mxu0 %v4832_v6  ;;  %3940 = vmatprep.subr.bf16.mxu1 %v4834_v51 }
 0x65e   : > { %3900 = vmatpush2.bf16.msra.mxu0 %v4831_v39  ;;  %3941 = vmatpush2.bf16.msra.mxu1 %v4833_v18  ;;  %v3964_v39 = vsub.s32 0, %v6421_v17  ;;  %v2324_v18 = vld [vmem:[%s5995_s24] sm:$0xff]  ;;  %s4178_s24 = sshll.u32 %s679_s26, 4  ;;  %s6459_s24 = int_to_ptr.vmem [resolvable:$true] %s4178_s24 }
 0x65f   : > { %3901 = vmatprep.subr.bf16.mxu0 %v4824_v20  ;;  %3942 = vmatprep.subr.bf16.mxu1 %v4826_v22  ;;  %v3972_v20 = vsub.s32 2, %v6421_v17  ;;  %v3976_v22 = vsub.s32 3, %v6421_v17  ;;  %v3969_v4 = vrot.slane %v2324_v18, %v3968_v24  ;;  %v3981_v47 = vrot.slane %v2324_v18, %v3980_v40 }
 0x660   : > { %v3965_v1 = vrot.slane %v2324_v18, %v3964_v39 }
 0x662   : > { %3902 = vmatpush2.bf16.msra.mxu0 %v4823_v57  ;;  %3943 = vmatpush2.bf16.msra.mxu1 %v4825_v27  ;;  %v3973_v57 = vrot.slane %v2324_v18, %v3972_v20 }
 0x663   : > { %3903 = vmatprep.subr.bf16.mxu0 %v4816_v41  ;;  %3944 = vmatprep.subr.bf16.mxu1 %v4818_v28  ;;  %v3977_v41 = vrot.slane %v2324_v18, %v3976_v22 }
 0x666   : > { %3904 = vmatpush2.bf16.msra.mxu0 %v4815_v29  ;;  %3945 = vmatpush2.bf16.msra.mxu1 %v4817_v30 }
 0x667   : > { %3905 = vmatprep.subr.bf16.mxu0 %v4808_v31  ;;  %3946 = vmatprep.subr.bf16.mxu1 %v4810_v32 }
 0x66a   : > { %3906 = vmatpush2.bf16.msra.mxu0 %v4807_v8  ;;  %3947 = vmatpush2.bf16.msra.mxu1 %v4809_v9  ;;  %v3988_v8 = vsub.s32 6, %v6421_v17 }
 0x66b   : > { %3907 = vmatprep.subr.bf16.mxu0 %v4800_v11  ;;  %3948 = vmatprep.subr.bf16.mxu1 %v4802_v43  ;;  %v3984_v11 = vsub.s32 5, %v6421_v17 }
 0x66e   : > { %3908 = vmatpush2.bf16.msra.mxu0 %v4799_v48  ;;  %3949 = vmatpush2.bf16.msra.mxu1 %v4801_v49 }
 0x66f   : > { %3909 = vmatprep.subr.bf16.mxu0 %v4792_v3  ;;  %3950 = vmatprep.subr.bf16.mxu1 %v4794_v13  ;;  %v3989_v3 = vrot.slane %v2324_v18, %v3988_v8 }
 0x672   : > { %3910 = vmatpush2.bf16.msra.mxu0 %v4791_v14  ;;  %3951 = vmatpush2.bf16.msra.mxu1 %v4793_v33  ;;  %v3985_v33 = vrot.slane %v2324_v18, %v3984_v11 }
 0x675   : > { %v3027_v21 = vpop.f32.mrf.mxu0  ;;  %3912 = vmatmul.mubr.bf16.vlgmr.msra.gmra.mxu0 %v6350_v34  ;;  %v3068_v52 = vpop.f32.mrf.mxu1  ;;  %3953 = vmatmul.mubr.bf16.vlgmr.msra.gmra.mxu1 %v6350_v34 }
 0x677   : > { %v3029_v53 = vpop.f32.mrf.mxu0  ;;  %v3070_v54 = vpop.f32.mrf.mxu1 }
 0x679   : > { %v3031_v10 = vpop.f32.mrf.mxu0  ;;  %v3072_v19 = vpop.f32.mrf.mxu1 }
 0x67b   : > { %v3032_v55 = vpop.f32.mrf.mxu0  ;;  %v3073_v56 = vpop.f32.mrf.mxu1 }
 0x6b5   : > { %v3109_v36 = vpop.f32.mrf.mxu0  ;;  %v3150_v58 = vpop.f32.mrf.mxu1 }
 0x6b7   : > { %v6416_v59 = vpop.f32.mrf.mxu0  ;;  %v6418_v60 = vpop.f32.mrf.mxu1 }
 0x6b9   : > { %v3113_v61 = vpop.f32.mrf.mxu0  ;;  %v3154_v62 = vpop.f32.mrf.mxu1 }
 0x6bb   : > { %v3114_v12 = vpop.f32.mrf.mxu0  ;;  %v3155_v63 = vpop.f32.mrf.mxu1 }
 0x6f5   : > { %v3831_v0 = vpop.f32.mrf.mxu0  ;;  %v3872_v2 = vpop.f32.mrf.mxu1 }
 0x6f6   : > { %v3832_v23 = vadd.f32 %v3831_v0, %v3027_v21  ;;  %v3873_v35 = vadd.f32 %v3872_v2, %v3068_v52 }
 0x6f7   : > { %v3833_v34 = vpop.f32.mrf.mxu0  ;;  %v3874_v5 = vpop.f32.mrf.mxu1 }
 0x6f8   : > { %v3875_v27 = vadd.f32 %v3874_v5, %v3070_v54  ;;  %v4002_v28 = vadd.f32 %v3965_v1, %v3832_v23  ;;  %v3834_v50 = vadd.f32 %v3833_v34, %v3029_v53  ;;  %v4004_v25 = vadd.f32 %v3973_v57, %v3873_v35 }
 0x6f9   : > { %v3835_v6 = vpop.f32.mrf.mxu0  ;;  %v3876_v51 = vpop.f32.mrf.mxu1  ;;  %v3993_v54 = vrot.slane %v2324_v18, %v3992_v44 }
 0x6fa   : > { %v4005_v26 = vadd.f32 %v3977_v41, %v3875_v27  ;;  %v4851_v29 = vmul.f32 -1.442695, %v4002_v28  ;;  %v4003_v30 = vadd.f32 %v3969_v4, %v3834_v50  ;;  %v4853_v31 = vmul.f32 -1.442695, %v4004_v25 }
 0x6fb   : > { %v3836_v7 = vpop.f32.mrf.mxu0  ;;  %v3877_v15 = vpop.f32.mrf.mxu1  ;;  %v5607_v50 = vmov 1966171168  }
 0x6fc   : > { %v4854_v32 = vmul.f32 -1.442695, %v4005_v26  ;;  %5203 = vpow2.f32 %v4851_v29  ;;  %v4852_v37 = vmul.f32 -1.442695, %v4003_v30  ;;  %v4094_v4 = vunpack.c.l.s4 %v5607_v50 }
 0x6fd   : > { %5205 = vpow2.f32 %v4853_v31 }
 0x6fe   : > { %5207 = vpow2.f32 %v4854_v32  ;;  %v4095_v26 = vunpack.c.0.s8 %v4094_v4 }
 0x6ff   : > { %5209 = vpow2.f32 %v4852_v37 }
 0x709   : > { %v5204_v38 = vpop.eup %5203 }
 0x70a   : > { %v5206_v42 = vpop.eup %5205  ;;  %v4016_v43 = vadd.f32 1.0, %v5204_v38  ;;  %v6442_v38 = vsub.s32 %v4095_v26, %v6421_v17 }
 0x70b   : > { %v5208_v9 = vpop.eup %5207  ;;  %v4028_v46 = vadd.f32 1.0, %v5206_v42 }
 0x70c   : > { %v5210_v45 = vpop.eup %5209  ;;  %v4029_v48 = vadd.f32 1.0, %v5208_v9  ;;  %5211 = vrcp.f32 %v4016_v43 }
 0x70d   : > { %v4017_v21 = vadd.f32 1.0, %v5210_v45  ;;  %5213 = vrcp.f32 %v4028_v46 }
 0x70e   : > { %5215 = vrcp.f32 %v4029_v48 }
 0x719   : > { %v5212_v5 = vpop.eup %5211 }
 0x71a   : > { %v5214_v6 = vpop.eup %5213 }
 0x71b   : > { %v5216_v51 = vpop.eup %5215 }
 0x735   : > { %v3913_v49 = vpop.f32.mrf.mxu0  ;;  %v3954_v14 = vpop.f32.mrf.mxu1 }
 0x736   : > { %v3914_v13 = vadd.f32 %v3913_v49, %v3109_v36  ;;  %v3955_v52 = vadd.f32 %v3954_v14, %v3150_v58 }
 0x737   : > { %v3915_v53 = vpop.f32.mrf.mxu0  ;;  %v3956_v55 = vpop.f32.mrf.mxu1 }
 0x738   : > { %v4006_v10 = vadd.f32 %v3981_v47, %v3914_v13  ;;  %v3916_v19 = vadd.f32 %v3915_v53, %v6416_v59  ;;  %v4008_v56 = vadd.f32 %v3989_v3, %v3955_v52  ;;  %v3957_v61 = vadd.f32 %v3956_v55, %v6418_v60  ;;  %v4857_v59 = vld.sshfl [vmem:[%s580_s18] sm:$0x33 pattern:$0x76325410]  ;;  %s4164_s18 = sshll.u32 %s672_s9, 4  ;;  %s6452_s18 = int_to_ptr.vmem [resolvable:$true] %s4164_s18 }
 0x739   : > { %v3917_v62 = vpop.f32.mrf.mxu0  ;;  %v3958_v12 = vpop.f32.mrf.mxu1  ;;  %v4056_v7 = vcombine.high %v4857_v59, %v4857_v59  ;;  %v4059_v39 = vmul.f32 %v5214_v6, %v4857_v59  ;;  %s5451_s5 = scalar_lea.vmem %s6452_s18, 64 }
 0x73a   : > { %5217 = vtanh.f32 %v4006_v10  ;;  %v4007_v36 = vadd.f32 %v3985_v33, %v3916_v19  ;;  %v4855_v63 = vmul.f32 -1.442695, %v4008_v56  ;;  %v4009_v0 = vadd.f32 %v3993_v54, %v3957_v61  ;;  %p5452_p0 = scmp.ne.s32.totalorder %s6452_s18, %s5451_s5 }
 0x73b   : > { %5219 = vrcp.f32 %v4017_v21  ;;  %v3918_v58 = vpop.f32.mrf.mxu0  ;;  %v3959_v2 = vpop.f32.mrf.mxu1  ;;  %v4060_v1 = vmul.f32 %v5216_v51, %v4056_v7 }
 0x73c   : > { %5221 = vtanh.f32 %v4007_v36  ;;  %v4856_v34 = vmul.f32 -1.442695, %v4009_v0  ;;  %p5453_p8 = pnand %p5452_p0, %p6665_p3 }
 0x73d   : > { %5223 = vpow2.f32 %v4855_v63 }
 0x73e   : > { %5225 = vpow2.f32 %v4856_v34  ;;  %p5454_p10 = pneg %p5453_p8 }
 0x747   : > { %v5218_v60 = vpop.eup %5217 }
 0x748   : > { %v5220_v15 = vpop.eup %5219  ;;  %v4061_v18 = vmul.f32 %v5218_v60, %v5212_v5 }
 0x749   : > { %v5222_v20 = vpop.eup %5221 }
 0x74a   : > { %v5224_v22 = vpop.eup %5223  ;;  %v4063_v23 = vadd.f32 %v4061_v18, %v4059_v39  ;;  %v4062_v24 = vmul.f32 %v5222_v20, %v5220_v15 }
 0x74b   : > { %v4042_v35 = vadd.f32 1.0, %v5224_v22  ;;  %v5226_v57 = vpop.eup %5225 }
 0x74c   : > { %5227 = vtanh.f32 %v4063_v23  ;;  %v4064_v27 = vadd.f32 %v4062_v24, %v4060_v1  ;;  %v4043_v41 = vadd.f32 1.0, %v5226_v57 }
 0x74d   : > { %5229 = vrcp.f32 %v4042_v35 }
 0x74e   : > { %5231 = vtanh.f32 %v4064_v27  ;;  %v4083_v28 = vcombine.low %v4063_v23, %v4064_v27 }
 0x74f   : > { %5233 = vrcp.f32 %v4043_v41 }
 0x750   : > { %4859 = vst.sshfl [vmem:[%s679_s26] sm:$0x33 pattern:$0x76325410] %v4083_v28 }
 0x759   : > { %v5228_v25 = vpop.eup %5227 }
 0x75a   : > { %v5230_v29 = vpop.eup %5229 }
 0x75b   : > { %v5232_v30 = vpop.eup %5231  ;;  %v4067_v32 = vmul.f32 %v5230_v29, %v5228_v25 }
 0x75c   : > { %v5234_v31 = vpop.eup %5233 }
 0x75d   : > { %v4068_v37 = vmul.f32 %v5234_v31, %v5232_v30 }
 0x75f   : > { %v4071_v40 = vcombine.low %v4067_v32, %v4068_v37 }
 0x761   : > { %4858 = vst.sshfl [vmem:[%s672_s9] sm:$0x33 pattern:$0x76325410] %v4071_v40  ;;  %v4099_v17 = vrot.slane %v4071_v40, %v6442_v38  ;;  %s5455_s9 = sshll.u32 %s5608_s28, 4  ;;  %s5456_s9 = int_to_ptr.vmem [resolvable:$false] %s5455_s9 }
 0x762   : > { %s5457_s30 = scalar_lea.vmem %s5456_s9, 128  ;;  %p5458_p5 = scmp.lt.s32.totalorder %s6452_s18, %s5456_s9 }
 0x763   : > { %p5459_p11 = scmp.lt.s32.totalorder %s5457_s30, %s5451_s5 }
 0x765   : > { %p5460_p1 = por %p5459_p11, %p5458_p5 }
 0x767   : > { %p5461_p2 = pnand %p5460_p1, %p5454_p10 }
 0x769   : > { %5464 = shalt.err (!%p5461_p2)
}
 0x76a   : > { %s5465_s0 = scalar_lea.hbm %s6449_s7, 64  ;;  %s5469_s26 = scalar_lea.hbm %s6660_s15, 128 }
 0x76b   : > { %p5466_p4 = scmp.ne.s32.totalorder %s6449_s7, %s5465_s0  ;;  %p5470_p13 = scmp.lt.s32.totalorder %s6449_s7, %s6660_s15 }
 0x76c   : > { %p5471_p9 = scmp.lt.s32.totalorder %s5469_s26, %s5465_s0 }
 0x76d   : > { %p5467_p6 = pnand %p5466_p4, %p6665_p3 }
 0x76e   : > { %p5472_p7 = por %p5471_p9, %p5470_p13 }
 0x76f   : > { %p5468_p12 = pneg %p5467_p6 }
 0x771   : > { %p5473_p0 = pnand %p5472_p7, %p5468_p12 }
 0x773   : > { %5476 = shalt.err (!%p5473_p0)
}
 0x774   : > { %4904 = dma.vmem_to_hbm [thread:$0]  (%p6665_p3), %s6452_s18, 64, %s6449_s7, %s6477_s17   ;;  %v4100_v16 = vcombine.high %v4099_v17, %v4099_v17  ;;  %v4107_v8 = vrot.slane %v4099_v17, %v6442_v38 }
 0x775   : > { %s5477_s5 = scalar_lea.vmem %s6459_s24, 64  ;;  %s5609_s9 = smov [#allocation21]  }
 0x776   : > { %p5478_p8 = scmp.ne.s32.totalorder %s6459_s24, %s5477_s5  ;;  %s5481_s30 = sshll.u32 %s5609_s9, 4  ;;  %s5482_s30 = int_to_ptr.vmem [resolvable:$false] %s5481_s30 }
 0x777   : > { %s5483_s0 = scalar_lea.vmem %s5482_s30, 128  ;;  %p5484_p11 = scmp.lt.s32.totalorder %s6459_s24, %s5482_s30 }
 0x778   : > { %p5479_p10 = pnand %p5478_p8, %p6665_p3  ;;  %p5485_p1 = scmp.lt.s32.totalorder %s5483_s0, %s5477_s5 }
 0x77a   : > { %p5480_p5 = pneg %p5479_p10  ;;  %p5486_p2 = por %p5485_p1, %p5484_p11 }
 0x77c   : > { %p5487_p4 = pnand %p5486_p2, %p5480_p5 }
 0x77e   : > { %5490 = shalt.err (!%p5487_p4)
}
 0x77f   : > { %s5491_s18 = scalar_lea.hbm %s6457_s20, 64  ;;  %s5495_s13 = scalar_lea.hbm %s6661_s14, 128 }
 0x780   : > { %p5492_p6 = scmp.ne.s32.totalorder %s6457_s20, %s5491_s18  ;;  %p5496_p9 = scmp.lt.s32.totalorder %s6457_s20, %s6661_s14 }
 0x781   : > { %p5497_p7 = scmp.lt.s32.totalorder %s5495_s13, %s5491_s18 }
 0x782   : > { %p5493_p12 = pnand %p5492_p6, %p6665_p3 }
 0x783   : > { %p5498_p0 = por %p5497_p7, %p5496_p9 }
 0x784   : > { %p5494_p13 = pneg %p5493_p12 }
 0x786   : > { %p5499_p8 = pnand %p5498_p0, %p5494_p13 }
 0x788   : > { %5502 = shalt.err (!%p5499_p8)
}
 0x789   : > { %4905 = dma.vmem_to_hbm [thread:$0]  (%p6665_p3), %s6459_s24, 64, %s6457_s20, %s6477_s17   ;;  %v4114_v9 = vrot.slane %v4100_v16, %v6442_v38  ;;  %4121 = vst.msk [vmem:[%s6000_s29] sm:$0x3] %vm6471_vm3, %v4107_v8 }
 0x78a   : > { %s4124_s28 = scalar_lea.sflag [#allocation8], %s5962_s21  ;;  %s5503_s5 = scalar_lea.vmem %s6524_s3, 64 }
 0x78b   : > { %4122 = vst.msk [vmem:[%s6000_s29 + $0x2] sm:$0x3] %vm6471_vm3, %v4114_v9  ;;  %p5504_p10 = scmp.ne.s32.totalorder %s6524_s3, %s5503_s5  ;;  %s5610_s24 = smov [#allocation18]  }
 0x78c   : > { %s5507_s20 = sshll.u32 %s5610_s24, 4  ;;  %s5508_s20 = int_to_ptr.vmem [resolvable:$false] %s5507_s20 }
 0x78d   : > { %p5505_p5 = pnand %p5504_p10, %p6665_p3  ;;  %s5509_s17 = scalar_lea.vmem %s5508_s20, 128 }
 0x78e   : > { %p5510_p1 = scmp.lt.s32.totalorder %s6524_s3, %s5508_s20  ;;  %p5511_p2 = scmp.lt.s32.totalorder %s5509_s17, %s5503_s5 }
 0x78f   : > { %p5506_p11 = pneg %p5505_p5 }
 0x790   : > { %p5512_p4 = por %p5511_p2, %p5510_p1 }
 0x792   : > { %p5513_p6 = pnand %p5512_p4, %p5506_p11 }
 0x794   : > { %5516 = shalt.err (!%p5513_p6)
}
 0x795   : > { %s5517_s29 = scalar_lea.hbm %s6467_s22, 64  ;;  %s5521_s0 = scalar_lea.hbm %s6662_s19, 128 }
 0x796   : > { %p5518_p12 = scmp.ne.s32.totalorder %s6467_s22, %s5517_s29  ;;  %p5522_p7 = scmp.lt.s32.totalorder %s6467_s22, %s6662_s19 }
 0x797   : > { %p5523_p0 = scmp.lt.s32.totalorder %s5521_s0, %s5517_s29 }
 0x798   : > { %p5519_p13 = pnand %p5518_p12, %p6665_p3 }
 0x799   : > { %p5524_p8 = por %p5523_p0, %p5522_p7 }
 0x79a   : > { %p5520_p9 = pneg %p5519_p13 }
 0x79c   : > { %p5525_p10 = pnand %p5524_p8, %p5520_p9 }
 0x79e   : > { %5528 = shalt.err (!%p5525_p10)
}
 0x79f   : > { %s5611_s1 = smov 32   ;;  %s5612_s13 = smov 64  }
 0x7a0   : > { %s5613_s26 = smov 2  }
 0x7a1   : > { %4903 = dma.vmem_to_hbm [thread:$0]  (%p6665_p3), %s6524_s3, 64, %s6467_s22, %s4124_s28, %s5611_s1, %s5612_s13, %s5613_s26  }
 0x7a2 PF: > { %s6666_s16 = sld [smem:[#allocation30_spill]]  ;;  %p6669_p11 = scmp.ge.s32.totalorder %s5591_s25, 2 }
 0x7a3   : > { %s6667_s5 = sld [smem:[#allocation32_spill]] }
 0x7a8   : > { %s4190_s24 = sand.u32 1, %s6666_s16  }
 0x7a9   : > { %p6668_p5 = scmp.ne.s32.totalorder %s6667_s5, 0  ;;  %s4191_s20 = scalar_lea.sflag [#allocation8], %s4190_s24 }
 0x7ab   : > { %p4936_p1 = pnand %p6669_p11, %p6668_p5 }
 0x7ad   : > { %p4937_p2 = pneg %p4936_p1 }
 0x7af   : > { %5570 = dma.done.wait (%p4937_p2), %s4191_s20, 64  }
 0x7b0   : > { %5572 = vsyncadd (%p4937_p2), %s4191_s20, 4294967232  ;;  %s6670_s17 = sadd.s32 4294967294, %s5591_s25  }
 0x7b1   : > { %s4199_s29 = sand.u32 1, %s6670_s17  }
 0x7b2   : > { %s4200_s9 = scalar_lea.sflag [#allocation20], %s4199_s29 }
 0x7b3   : > { %5574 = dma.done.wait (%p4937_p2), %s4200_s9, 128  }
 0x7b4   : > { %5576 = vsyncadd (%p4937_p2), %s4200_s9, 4294967168  ;;  %s6671_s25 = sld [smem:[#allocation33_spill]]  ;;  %s6674_s22 = smov %s5583_s23 }
 0x7b5   : > { %s6672_s21 = sld [smem:[#allocation31_spill]] }
 0x7b6   : > { %s6673_s24 = sld [smem:[#allocation34_spill]] }
 0x7ba   : > { %p35_p3 = scmp.ge.s32.totalorder %s6671_s25, 4  }
 0x7bb   : > { %s6675_s23 = smov %s6672_s21 }
 0x7bc   :  { %37 = sbr.rel (!%p35_p3) target bundleno = 17 (0x11), region = 202 }
 0x7c1   :  { %4214 = vsyncpa [#allocation7], 1 }
 0x7c2   :  { %4216 = vsyncpa [#allocation7 + $0x1], 1 }
 0x7c3   :  { %4217 = vsyncpa [#allocation10], 1 }
 0x7c4   :  { %4218 = vsyncpa [#allocation15], 1 }
 0x7c5   :  { %4219 = vsyncpa [#allocation8], 1 }
 0x7c6   :  { %4221 = vsyncpa [#allocation8 + $0x1], 1 }
 0x7c7   :  { %4222 = vsyncpa [#allocation20], 1 }
 0x7c8   :  { %4224 = vsyncpa [#allocation20 + $0x1], 1 }

</bundles_post_ra>
